<compile_context>
chip_gen: v7x
topology: tpu7x:2x2x1
jax: 0.10.0
libtpu: 0.0.40
codegen_flags: <defaults>
</compile_context>

<pallas_src>
import functools

import jax
import jax.numpy as jnp
from jax.experimental import pallas as pl
from jax.experimental.pallas import tpu as pltpu


def _round_up(x, m):
    return ((x + m - 1) // m) * m


# ----------------------------------------------------------------------------
# Pallas GEMM: bf16 operands, f32 accumulation in the resident output block,
# bias + optional activation fused into the last-K epilogue.
# ----------------------------------------------------------------------------
def _matmul_bias_kernel(a_ref, b_ref, bias_ref, o_ref, *, act):
    k = pl.program_id(2)

    @pl.when(k == 0)
    def _():
        o_ref[...] = jnp.zeros_like(o_ref)

    o_ref[...] += jnp.dot(a_ref[...], b_ref[...],
                          preferred_element_type=jnp.float32)

    @pl.when(k == pl.num_programs(2) - 1)
    def _():
        y = o_ref[...] + bias_ref[...]
        if act == "relu":
            y = jnp.maximum(y, 0.0)
        elif act == "tanh":
            y = jnp.tanh(y)
        o_ref[...] = y


def pallas_matmul_bias_act(a, b, bias, act="none", tm=256, tk=512, tn=256):
    """a: (M,K), b: (K,N) (cast to bf16), bias: (N,) f32 -> (M,N) f32."""
    M, K = a.shape
    K2, N = b.shape
    assert K == K2
    tm = min(tm, _round_up(M, 8))
    tk = min(tk, _round_up(K, 128))
    tn = min(tn, _round_up(N, 128))
    Mp, Kp, Np = _round_up(M, tm), _round_up(K, tk), _round_up(N, tn)
    a_p = jnp.pad(a.astype(jnp.bfloat16), ((0, Mp - M), (0, Kp - K)))
    b_p = jnp.pad(b.astype(jnp.bfloat16), ((0, Kp - K), (0, Np - N)))
    bias_p = jnp.pad(bias.astype(jnp.float32).reshape(1, N),
                     ((0, 0), (0, Np - N)))

    out = pl.pallas_call(
        functools.partial(_matmul_bias_kernel, act=act),
        out_shape=jax.ShapeDtypeStruct((Mp, Np), jnp.float32),
        grid_spec=pltpu.PrefetchScalarGridSpec(
            num_scalar_prefetch=0,
            grid=(Mp // tm, Np // tn, Kp // tk),
            in_specs=[pl.BlockSpec((tm, tk), lambda i, j, k: (i, k)),
                      pl.BlockSpec((tk, tn), lambda i, j, k: (k, j)),
                      pl.BlockSpec((1, tn), lambda i, j, k: (0, j))],
            out_specs=pl.BlockSpec((tm, tn), lambda i, j, k: (i, j))),
        compiler_params=pltpu.CompilerParams(
            dimension_semantics=("parallel", "parallel", "arbitrary")),
    )(a_p, b_p, bias_p)
    return out[:M, :N]


# ----------------------------------------------------------------------------
# InstanceNorm (+ fused ReLU / fused residual add) on NHWC activations.
# Two-pass (mean-subtracted) variance in f32. One HBM read + one write.
# ----------------------------------------------------------------------------
def _in_kernel(x_ref, o_ref, *, inv_hw, eps, relu):
    x = x_ref[...].astype(jnp.float32)
    mean = jnp.sum(x, axis=(1, 2), keepdims=True) * inv_hw
    d = x - mean
    var = jnp.sum(d * d, axis=(1, 2), keepdims=True) * inv_hw
    y = d * jax.lax.rsqrt(var + eps)
    if relu:
        y = jnp.maximum(y, 0.0)
    o_ref[...] = y


def _in_res_kernel(x_ref, r_ref, o_ref, *, inv_hw, eps):
    x = x_ref[...].astype(jnp.float32)
    mean = jnp.sum(x, axis=(1, 2), keepdims=True) * inv_hw
    d = x - mean
    var = jnp.sum(d * d, axis=(1, 2), keepdims=True) * inv_hw
    o_ref[...] = d * jax.lax.rsqrt(var + eps) + r_ref[...]


def instance_norm(x, act="relu", residual=None, eps=1e-5):
    """InstanceNorm2d (affine=False, biased var). x: (N,H,W,C) f32.
    If `residual` is given, computes residual + IN(x) (no activation)."""
    N, H, W, C = x.shape
    tc = 128 if C % 128 == 0 else C
    grid = (N, C // tc)
    spec = pl.BlockSpec((1, H, W, tc), lambda n, c: (n, 0, 0, c))
    inv_hw = 1.0 / float(H * W)
    # TODO(synk): one (H, W, tc) slab per grid step must fit VMEM; add a
    # spatial-chunk accumulator pass for very large images.
    cparams = pltpu.CompilerParams(dimension_semantics=("parallel", "parallel"))
    if residual is None:
        kern = functools.partial(_in_kernel, inv_hw=inv_hw, eps=eps,
                                 relu=(act == "relu"))
        return pl.pallas_call(
            kern, out_shape=jax.ShapeDtypeStruct(x.shape, jnp.float32),
            grid=grid, in_specs=[spec], out_specs=spec,
            compiler_params=cparams)(x)
    kern = functools.partial(_in_res_kernel, inv_hw=inv_hw, eps=eps)
    return pl.pallas_call(
        kern, out_shape=jax.ShapeDtypeStruct(x.shape, jnp.float32),
        grid=grid, in_specs=[spec, spec], out_specs=spec,
        compiler_params=cparams)(x, residual)


# ----------------------------------------------------------------------------
# Convolutions (NHWC) via im2col + Pallas GEMM (bias/act fused in the GEMM).
# ----------------------------------------------------------------------------
def conv2d_nhwc(x, w, b, stride=1, padding=0, pad_mode="zeros", act="none"):
    """x: (N,H,W,Cin), w: (Cout,Cin,kh,kw), b: (Cout,) -> (N,Ho,Wo,Cout) f32."""
    Cout, Cin, kh, kw = w.shape
    x = x.astype(jnp.bfloat16)
    if padding > 0:
        mode = "reflect" if pad_mode == "reflect" else "constant"
        x = jnp.pad(x, ((0, 0), (padding, padding), (padding, padding), (0, 0)),
                    mode=mode)
    N, H, W, _ = x.shape
    Ho = (H - kh) // stride + 1
    Wo = (W - kw) // stride + 1

    # TODO(synk): im2col patches are still materialized in HBM (kh*kw x activation
    # traffic, halved by bf16); a fully implicit-GEMM conv needs halo-window
    # BlockSpecs / in-kernel patch formation.
    cols = []
    for i in range(kh):
        for j in range(kw):
            cols.append(x[:, i:i + (Ho - 1) * stride + 1:stride,
                          j:j + (Wo - 1) * stride + 1:stride, :])
    patches = jnp.stack(cols, axis=3)                    # (N,Ho,Wo,kh*kw,Cin) bf16
    a = patches.reshape(N * Ho * Wo, kh * kw * Cin)
    wmat = jnp.transpose(w, (2, 3, 1, 0)).reshape(kh * kw * Cin, Cout)
    out = pallas_matmul_bias_act(a, wmat, b, act=act)    # (N*Ho*Wo, Cout) f32
    return out.reshape(N, Ho, Wo, Cout)


def conv_transpose2d_nhwc(x, w, b, stride=2, padding=1):
    """PyTorch ConvTranspose2d via sub-pixel (phase) decomposition.
    x: (N,H,W,Cin), w: (Cin,Cout,kh,kw), b: (Cout,) -> (N,Hout,Wout,Cout) f32."""
    Cin, Cout, kh, kw = w.shape
    N, H, W, _ = x.shape
    s, p = stride, padding
    Hout = (H - 1) * s - 2 * p + kh
    Wout = (W - 1) * s - 2 * p + kw
    xb = x.astype(jnp.bfloat16)
    out = jnp.zeros((N, Hout, Wout, Cout), jnp.float32)

    def phase_info(d, k, size, n_out):
        taps = [kk for kk in range(k) if (kk - d - p) % s == 0]
        nt = len(taps)
        if nt == 0:
            return taps, nt, 0, 0, 0
        q0 = (taps[0] - d - p) // s
        pad_lo = max(0, q0 + nt - 1)
        pad_hi = max(0, (n_out - 1) - q0 - (size - 1))
        off = pad_lo - (q0 + nt - 1)
        return taps, nt, pad_lo, pad_hi, off

    for dy in range(s):
        n_out_y = len(range(dy, Hout, s))
        taps_y, nty, pt, pb, offy = phase_info(dy, kh, H, n_out_y)
        for dx in range(s):
            n_out_x = len(range(dx, Wout, s))
            taps_x, ntx, pleft, pright, offx = phase_info(dx, kw, W, n_out_x)
            if nty == 0 or ntx == 0:
                ph = jnp.broadcast_to(b.astype(jnp.float32),
                                      (N, n_out_y, n_out_x, Cout))
            else:
                xp = jnp.pad(xb, ((0, 0), (pt, pb), (pleft, pright), (0, 0)))
                xn = xp[:, offy:offy + n_out_y + nty - 1,
                        offx:offx + n_out_x + ntx - 1, :]
                ky = [taps_y[nty - 1 - t] for t in range(nty)]
                kx = [taps_x[ntx - 1 - t] for t in range(ntx)]
                w_sub = w[:, :, ky, :][:, :, :, kx]           # (Cin,Cout,nty,ntx)
                w_sub = jnp.transpose(w_sub, (1, 0, 2, 3))    # (Cout,Cin,nty,ntx)
                ph = conv2d_nhwc(xn, w_sub, b, stride=1, padding=0)
            out = out.at[:, dy::s, dx::s, :].set(ph)
    return out


# ----------------------------------------------------------------------------
# Generator: parameters + forward (NCHW at the module boundary, NHWC inside)
# ----------------------------------------------------------------------------
def init_params(key, num_features, num_blocks):
    params = {}

    def conv_p(k, cout, cin, ks):
        k1, k2 = jax.random.split(k)
        w = jax.random.normal(k1, (cout, cin, ks, ks), jnp.float32) * 0.05
        b = jax.random.normal(k2, (cout,), jnp.float32) * 0.01
        return w, b

    def convT_p(k, cin, cout, ks):
        k1, k2 = jax.random.split(k)
        w = jax.random.normal(k1, (cin, cout, ks, ks), jnp.float32) * 0.05
        b = jax.random.normal(k2, (cout,), jnp.float32) * 0.01
        return w, b

    F = num_features
    keys = jax.random.split(key, 6 + 2 * num_blocks)
    params["initial"] = conv_p(keys[0], F, 3, 7)
    params["down1"] = conv_p(keys[1], 2 * F, F, 4)
    params["down2"] = conv_p(keys[2], 4 * F, 2 * F, 4)
    for i in range(num_blocks):
        params[f"res{i}_1"] = conv_p(keys[3 + 2 * i], 4 * F, 4 * F, 3)
        params[f"res{i}_2"] = conv_p(keys[4 + 2 * i], 4 * F, 4 * F, 3)
    params["up1"] = convT_p(keys[3 + 2 * num_blocks], 4 * F, 2 * F, 4)
    params["up2"] = convT_p(keys[4 + 2 * num_blocks], 2 * F, F, 4)
    params["final"] = conv_p(keys[5 + 2 * num_blocks], 3, F, 7)
    return params


def generator_forward(params, x_nchw, num_blocks):
    x = jnp.transpose(x_nchw, (0, 2, 3, 1))   # NCHW -> NHWC, once
    # initial ConvBlock: 3 -> F, k7, p3, reflect, IN, ReLU
    y = conv2d_nhwc(x, *params["initial"], stride=1, padding=3, pad_mode="reflect")
    y = instance_norm(y, act="relu")
    # down projection
    y = conv2d_nhwc(y, *params["down1"], stride=2, padding=1, pad_mode="reflect")
    y = instance_norm(y, act="relu")
    y = conv2d_nhwc(y, *params["down2"], stride=2, padding=1, pad_mode="reflect")
    y = instance_norm(y, act="relu")
    # residual blocks (second IN has the skip add fused, no activation)
    for i in range(num_blocks):
        r = conv2d_nhwc(y, *params[f"res{i}_1"], stride=1, padding=1,
                        pad_mode="reflect")
        r = instance_norm(r, act="relu")
        r = conv2d_nhwc(r, *params[f"res{i}_2"], stride=1, padding=1,
                        pad_mode="reflect")
        y = instance_norm(r, act="none", residual=y)
    # up projection (ConvTranspose2d + IN + ReLU)
    y = conv_transpose2d_nhwc(y, *params["up1"], stride=2, padding=1)
    y = instance_norm(y, act="relu")
    y = conv_transpose2d_nhwc(y, *params["up2"], stride=2, padding=1)
    y = instance_norm(y, act="relu")
    # final conv with tanh fused into the GEMM epilogue
    y = conv2d_nhwc(y, *params["final"], stride=1, padding=3, pad_mode="reflect",
                    act="tanh")
    return jnp.transpose(y, (0, 3, 1, 2))     # back to NCHW


if __name__ == "__main__":
    num_features = 8
    num_blocks = 2
    batch, spatial = 2, 16

    key = jax.random.PRNGKey(0)
    kx, kp = jax.random.split(key)
    x = jax.random.normal(kx, (batch, 3, spatial, spatial), jnp.float32)
    params = init_params(kp, num_features, num_blocks)

    fwd = jax.jit(functools.partial(generator_forward, num_blocks=num_blocks))
    out = fwd(params, x)
    out = jax.block_until_ready(out)

    assert out.shape == (batch, 3, spatial, spatial), out.shape
    assert out.dtype == jnp.float32
    assert bool(jnp.all(jnp.isfinite(out)))
    assert bool(jnp.all(jnp.abs(out) <= 1.0))  # tanh range
    print("KERNEL_OK")
</pallas_src>

<mosaic_0001>
module attributes {stable_mosaic.version = 11 : i64} {
  func.func @_in_kernel(%arg0: i32, %arg1: i32, %arg2: memref<1x16x16x8xf32, #tpu.memory_space<vmem>>, %arg3: memref<1x16x16x8xf32, #tpu.memory_space<vmem>>) attributes {dimension_semantics = [#tpu.dimension_semantics<parallel>, #tpu.dimension_semantics<parallel>], iteration_bounds = array<i64: 2, 1>, scalar_prefetch = 0 : i64, scratch_operands = 0 : i64, tpu.core_type = #tpu.core_type<tc>, window_params = [{transform_indices = @transform_0, window_bounds = array<i64: 1, 16, 16, 8>}, {transform_indices = @transform_1, window_bounds = array<i64: 1, 16, 16, 8>}]} {
    %c0 = arith.constant 0 : index
    %c0_0 = arith.constant 0 : index
    %c0_1 = arith.constant 0 : index
    %c0_2 = arith.constant 0 : index
    %0 = vector.load %arg2[%c0, %c0_0, %c0_1, %c0_2] : memref<1x16x16x8xf32, #tpu.memory_space<vmem>>, vector<1x16x16x8xf32>
    %cst = arith.constant dense<0.000000e+00> : vector<1x8xf32>
    %1 = vector.multi_reduction <add>, %0, %cst [1, 2] : vector<1x16x16x8xf32> to vector<1x8xf32>
    %2 = vector.shape_cast %1 : vector<1x8xf32> to vector<1x1x1x8xf32>
    %cst_3 = arith.constant 3.906250e-03 : f32
    %3 = vector.broadcast %cst_3 : f32 to vector<1x1x1x8xf32>
    %4 = arith.mulf %2, %3 : vector<1x1x1x8xf32>
    %5 = vector.broadcast %4 : vector<1x1x1x8xf32> to vector<1x16x16x8xf32>
    %6 = arith.subf %0, %5 : vector<1x16x16x8xf32>
    %7 = arith.mulf %6, %6 : vector<1x16x16x8xf32>
    %cst_4 = arith.constant dense<0.000000e+00> : vector<1x8xf32>
    %8 = vector.multi_reduction <add>, %7, %cst_4 [1, 2] : vector<1x16x16x8xf32> to vector<1x8xf32>
    %9 = vector.shape_cast %8 : vector<1x8xf32> to vector<1x1x1x8xf32>
    %cst_5 = arith.constant 3.906250e-03 : f32
    %10 = vector.broadcast %cst_5 : f32 to vector<1x1x1x8xf32>
    %11 = arith.mulf %9, %10 : vector<1x1x1x8xf32>
    %cst_6 = arith.constant 9.99999974E-6 : f32
    %12 = vector.broadcast %cst_6 : f32 to vector<1x1x1x8xf32>
    %13 = arith.addf %11, %12 : vector<1x1x1x8xf32>
    %14 = math.rsqrt %13 : vector<1x1x1x8xf32>
    %15 = vector.broadcast %14 : vector<1x1x1x8xf32> to vector<1x16x16x8xf32>
    %16 = arith.mulf %6, %15 : vector<1x16x16x8xf32>
    %cst_7 = arith.constant 0.000000e+00 : f32
    %17 = vector.broadcast %cst_7 : f32 to vector<1x16x16x8xf32>
    %18 = arith.maximumf %16, %17 : vector<1x16x16x8xf32>
    %c0_8 = arith.constant 0 : index
    %c0_9 = arith.constant 0 : index
    %c0_10 = arith.constant 0 : index
    %c0_11 = arith.constant 0 : index
    %19 = vector.load %arg3[%c0_8, %c0_9, %c0_10, %c0_11] : memref<1x16x16x8xf32, #tpu.memory_space<vmem>>, vector<1x16x16x8xf32>
    tpu.vector_store %arg3[%c0_8, %c0_9, %c0_10, %c0_11], %18 {strides = array<i32>} : memref<1x16x16x8xf32, #tpu.memory_space<vmem>>, vector<1x16x16x8xf32>,
    return
  }
  func.func @transform_0(%arg0: i32, %arg1: i32) -> (i32, i32, i32, i32) {
    %c0_i32 = arith.constant 0 : i32
    %c0_i32_0 = arith.constant 0 : i32
    %c0_i32_1 = arith.constant 0 : i32
    return %arg0, %c0_i32, %c0_i32_0, %arg1 : i32, i32, i32, i32
  }
  func.func @transform_1(%arg0: i32, %arg1: i32) -> (i32, i32, i32, i32) {
    %c0_i32 = arith.constant 0 : i32
    %c0_i32_0 = arith.constant 0 : i32
    %c0_i32_1 = arith.constant 0 : i32
    return %arg0, %c0_i32, %c0_i32_0, %arg1 : i32, i32, i32, i32
  }
}

module attributes {stable_mosaic.version = 11 : i64} {
  func.func @_matmul_bias_kernel(%arg0: i32, %arg1: i32, %arg2: i32, %arg3: memref<256x256xbf16, #tpu.memory_space<vmem>>, %arg4: memref<256x128xbf16, #tpu.memory_space<vmem>>, %arg5: memref<1x128xf32, #tpu.memory_space<vmem>>, %arg6: memref<256x128xf32, #tpu.memory_space<vmem>>) attributes {dimension_semantics = [#tpu.dimension_semantics<parallel>, #tpu.dimension_semantics<parallel>, #tpu.dimension_semantics<arbitrary>], iteration_bounds = array<i64: 2, 1, 1>, scalar_prefetch = 0 : i64, scratch_operands = 0 : i64, tpu.core_type = #tpu.core_type<tc>, window_params = [{transform_indices = @transform_0, window_bounds = array<i64: 256, 256>}, {transform_indices = @transform_1, window_bounds = array<i64: 256, 128>}, {transform_indices = @transform_2, window_bounds = array<i64: 1, 128>}, {transform_indices = @transform_3, window_bounds = array<i64: 256, 128>}]} {
    %c0_i32 = arith.constant 0 : i32
    %0 = arith.cmpi eq, %arg2, %c0_i32 : i32
    %1 = arith.extui %0 : i1 to i32
    %c0_i32_0 = arith.constant 0 : i32
    %2 = arith.cmpi ne, %1, %c0_i32_0 : i32
    scf.if %2 {
      %cst_10 = arith.constant 0.000000e+00 : f32
      %12 = vector.broadcast %cst_10 : f32 to vector<256x128xf32>
      %c0_11 = arith.constant 0 : index
      %c0_12 = arith.constant 0 : index
      %13 = vector.load %arg6[%c0_11, %c0_12] : memref<256x128xf32, #tpu.memory_space<vmem>>, vector<256x128xf32>
      tpu.vector_store %arg6[%c0_11, %c0_12], %12 {strides = array<i32>} : memref<256x128xf32, #tpu.memory_space<vmem>>, vector<256x128xf32>,
    } else {
    }
    %c0 = arith.constant 0 : index
    %c0_1 = arith.constant 0 : index
    %3 = vector.load %arg6[%c0, %c0_1] : memref<256x128xf32, #tpu.memory_space<vmem>>, vector<256x128xf32>
    %c0_2 = arith.constant 0 : index
    %c0_3 = arith.constant 0 : index
    %4 = vector.load %arg3[%c0_2, %c0_3] : memref<256x256xbf16, #tpu.memory_space<vmem>>, vector<256x256xbf16>
    %c0_4 = arith.constant 0 : index
    %c0_5 = arith.constant 0 : index
    %5 = vector.load %arg4[%c0_4, %c0_5] : memref<256x128xbf16, #tpu.memory_space<vmem>>, vector<256x128xbf16>
    %cst = arith.constant dense<0.000000e+00> : vector<256x128xf32>
    %6 = tpu.matmul %4, %5, %cst {dimension_numbers = #tpu.dot_dimension_numbers<[1], [0], [0], [1], [0, 0, 1, 1], [], []>} : vector<256x256xbf16>, vector<256x128xbf16>, vector<256x128xf32> -> vector<256x128xf32>
    %7 = arith.addf %3, %6 : vector<256x128xf32>
    %c0_6 = arith.constant 0 : index
    %c0_7 = arith.constant 0 : index
    %8 = vector.load %arg6[%c0_6, %c0_7] : memref<256x128xf32, #tpu.memory_space<vmem>>, vector<256x128xf32>
    tpu.vector_store %arg6[%c0_6, %c0_7], %7 {strides = array<i32>} : memref<256x128xf32, #tpu.memory_space<vmem>>, vector<256x128xf32>,
    %c0_i32_8 = arith.constant 0 : i32
    %9 = arith.cmpi eq, %arg2, %c0_i32_8 : i32
    %10 = arith.extui %9 : i1 to i32
    %c0_i32_9 = arith.constant 0 : i32
    %11 = arith.cmpi ne, %10, %c0_i32_9 : i32
    scf.if %11 {
      %c0_10 = arith.constant 0 : index
      %c0_11 = arith.constant 0 : index
      %12 = vector.load %arg6[%c0_10, %c0_11] : memref<256x128xf32, #tpu.memory_space<vmem>>, vector<256x128xf32>
      %c0_12 = arith.constant 0 : index
      %c0_13 = arith.constant 0 : index
      %13 = vector.load %arg5[%c0_12, %c0_13] : memref<1x128xf32, #tpu.memory_space<vmem>>, vector<1x128xf32>
      %14 = vector.broadcast %13 : vector<1x128xf32> to vector<256x128xf32>
      %15 = arith.addf %12, %14 : vector<256x128xf32>
      %c0_14 = arith.constant 0 : index
      %c0_15 = arith.constant 0 : index
      %16 = vector.load %arg6[%c0_14, %c0_15] : memref<256x128xf32, #tpu.memory_space<vmem>>, vector<256x128xf32>
      tpu.vector_store %arg6[%c0_14, %c0_15], %15 {strides = array<i32>} : memref<256x128xf32, #tpu.memory_space<vmem>>, vector<256x128xf32>,
    } else {
    }
    return
  }
  func.func @transform_0(%arg0: i32, %arg1: i32, %arg2: i32) -> (i32, i32) {
    %c0_i32 = arith.constant 0 : i32
    return %arg0, %arg2 : i32, i32
  }
  func.func @transform_1(%arg0: i32, %arg1: i32, %arg2: i32) -> (i32, i32) {
    %c0_i32 = arith.constant 0 : i32
    return %arg2, %arg1 : i32, i32
  }
  func.func @transform_2(%arg0: i32, %arg1: i32, %arg2: i32) -> (i32, i32) {
    %c0_i32 = arith.constant 0 : i32
    %c0_i32_0 = arith.constant 0 : i32
    return %c0_i32, %arg1 : i32, i32
  }
  func.func @transform_3(%arg0: i32, %arg1: i32, %arg2: i32) -> (i32, i32) {
    %c0_i32 = arith.constant 0 : i32
    return %arg0, %arg1 : i32, i32
  }
}

module attributes {stable_mosaic.version = 11 : i64} {
  func.func @_matmul_bias_kernel(%arg0: i32, %arg1: i32, %arg2: i32, %arg3: memref<128x128xbf16, #tpu.memory_space<vmem>>, %arg4: memref<128x128xbf16, #tpu.memory_space<vmem>>, %arg5: memref<1x128xf32, #tpu.memory_space<vmem>>, %arg6: memref<128x128xf32, #tpu.memory_space<vmem>>) attributes {dimension_semantics = [#tpu.dimension_semantics<parallel>, #tpu.dimension_semantics<parallel>, #tpu.dimension_semantics<arbitrary>], iteration_bounds = array<i64: 1, 1, 1>, scalar_prefetch = 0 : i64, scratch_operands = 0 : i64, tpu.core_type = #tpu.core_type<tc>, window_params = [{transform_indices = @transform_0, window_bounds = array<i64: 128, 128>}, {transform_indices = @transform_1, window_bounds = array<i64: 128, 128>}, {transform_indices = @transform_2, window_bounds = array<i64: 1, 128>}, {transform_indices = @transform_3, window_bounds = array<i64: 128, 128>}]} {
    %c0_i32 = arith.constant 0 : i32
    %0 = arith.cmpi eq, %arg2, %c0_i32 : i32
    %1 = arith.extui %0 : i1 to i32
    %c0_i32_0 = arith.constant 0 : i32
    %2 = arith.cmpi ne, %1, %c0_i32_0 : i32
    scf.if %2 {
      %cst_10 = arith.constant 0.000000e+00 : f32
      %12 = vector.broadcast %cst_10 : f32 to vector<128x128xf32>
      %c0_11 = arith.constant 0 : index
      %c0_12 = arith.constant 0 : index
      %13 = vector.load %arg6[%c0_11, %c0_12] : memref<128x128xf32, #tpu.memory_space<vmem>>, vector<128x128xf32>
      tpu.vector_store %arg6[%c0_11, %c0_12], %12 {strides = array<i32>} : memref<128x128xf32, #tpu.memory_space<vmem>>, vector<128x128xf32>,
    } else {
    }
    %c0 = arith.constant 0 : index
    %c0_1 = arith.constant 0 : index
    %3 = vector.load %arg6[%c0, %c0_1] : memref<128x128xf32, #tpu.memory_space<vmem>>, vector<128x128xf32>
    %c0_2 = arith.constant 0 : index
    %c0_3 = arith.constant 0 : index
    %4 = vector.load %arg3[%c0_2, %c0_3] : memref<128x128xbf16, #tpu.memory_space<vmem>>, vector<128x128xbf16>
    %c0_4 = arith.constant 0 : index
    %c0_5 = arith.constant 0 : index
    %5 = vector.load %arg4[%c0_4, %c0_5] : memref<128x128xbf16, #tpu.memory_space<vmem>>, vector<128x128xbf16>
    %cst = arith.constant dense<0.000000e+00> : vector<128x128xf32>
    %6 = tpu.matmul %4, %5, %cst {dimension_numbers = #tpu.dot_dimension_numbers<[1], [0], [0], [1], [0, 0, 1, 1], [], []>} : vector<128x128xbf16>, vector<128x128xbf16>, vector<128x128xf32> -> vector<128x128xf32>
    %7 = arith.addf %3, %6 : vector<128x128xf32>
    %c0_6 = arith.constant 0 : index
    %c0_7 = arith.constant 0 : index
    %8 = vector.load %arg6[%c0_6, %c0_7] : memref<128x128xf32, #tpu.memory_space<vmem>>, vector<128x128xf32>
    tpu.vector_store %arg6[%c0_6, %c0_7], %7 {strides = array<i32>} : memref<128x128xf32, #tpu.memory_space<vmem>>, vector<128x128xf32>,
    %c0_i32_8 = arith.constant 0 : i32
    %9 = arith.cmpi eq, %arg2, %c0_i32_8 : i32
    %10 = arith.extui %9 : i1 to i32
    %c0_i32_9 = arith.constant 0 : i32
    %11 = arith.cmpi ne, %10, %c0_i32_9 : i32
    scf.if %11 {
      %c0_10 = arith.constant 0 : index
      %c0_11 = arith.constant 0 : index
      %12 = vector.load %arg6[%c0_10, %c0_11] : memref<128x128xf32, #tpu.memory_space<vmem>>, vector<128x128xf32>
      %c0_12 = arith.constant 0 : index
      %c0_13 = arith.constant 0 : index
      %13 = vector.load %arg5[%c0_12, %c0_13] : memref<1x128xf32, #tpu.memory_space<vmem>>, vector<1x128xf32>
      %14 = vector.broadcast %13 : vector<1x128xf32> to vector<128x128xf32>
      %15 = arith.addf %12, %14 : vector<128x128xf32>
      %c0_14 = arith.constant 0 : index
      %c0_15 = arith.constant 0 : index
      %16 = vector.load %arg6[%c0_14, %c0_15] : memref<128x128xf32, #tpu.memory_space<vmem>>, vector<128x128xf32>
      tpu.vector_store %arg6[%c0_14, %c0_15], %15 {strides = array<i32>} : memref<128x128xf32, #tpu.memory_space<vmem>>, vector<128x128xf32>,
    } else {
    }
    return
  }
  func.func @transform_0(%arg0: i32, %arg1: i32, %arg2: i32) -> (i32, i32) {
    %c0_i32 = arith.constant 0 : i32
    return %arg0, %arg2 : i32, i32
  }
  func.func @transform_1(%arg0: i32, %arg1: i32, %arg2: i32) -> (i32, i32) {
    %c0_i32 = arith.constant 0 : i32
    return %arg2, %arg1 : i32, i32
  }
  func.func @transform_2(%arg0: i32, %arg1: i32, %arg2: i32) -> (i32, i32) {
    %c0_i32 = arith.constant 0 : i32
    %c0_i32_0 = arith.constant 0 : i32
    return %c0_i32, %arg1 : i32, i32
  }
  func.func @transform_3(%arg0: i32, %arg1: i32, %arg2: i32) -> (i32, i32) {
    %c0_i32 = arith.constant 0 : i32
    return %arg0, %arg1 : i32, i32
  }
}

module attributes {stable_mosaic.version = 11 : i64} {
  func.func @_in_kernel(%arg0: i32, %arg1: i32, %arg2: memref<1x8x8x16xf32, #tpu.memory_space<vmem>>, %arg3: memref<1x8x8x16xf32, #tpu.memory_space<vmem>>) attributes {dimension_semantics = [#tpu.dimension_semantics<parallel>, #tpu.dimension_semantics<parallel>], iteration_bounds = array<i64: 2, 1>, scalar_prefetch = 0 : i64, scratch_operands = 0 : i64, tpu.core_type = #tpu.core_type<tc>, window_params = [{transform_indices = @transform_0, window_bounds = array<i64: 1, 8, 8, 16>}, {transform_indices = @transform_1, window_bounds = array<i64: 1, 8, 8, 16>}]} {
    %c0 = arith.constant 0 : index
    %c0_0 = arith.constant 0 : index
    %c0_1 = arith.constant 0 : index
    %c0_2 = arith.constant 0 : index
    %0 = vector.load %arg2[%c0, %c0_0, %c0_1, %c0_2] : memref<1x8x8x16xf32, #tpu.memory_space<vmem>>, vector<1x8x8x16xf32>
    %cst = arith.constant dense<0.000000e+00> : vector<1x16xf32>
    %1 = vector.multi_reduction <add>, %0, %cst [1, 2] : vector<1x8x8x16xf32> to vector<1x16xf32>
    %2 = vector.shape_cast %1 : vector<1x16xf32> to vector<1x1x1x16xf32>
    %cst_3 = arith.constant 1.562500e-02 : f32
    %3 = vector.broadcast %cst_3 : f32 to vector<1x1x1x16xf32>
    %4 = arith.mulf %2, %3 : vector<1x1x1x16xf32>
    %5 = vector.broadcast %4 : vector<1x1x1x16xf32> to vector<1x8x8x16xf32>
    %6 = arith.subf %0, %5 : vector<1x8x8x16xf32>
    %7 = arith.mulf %6, %6 : vector<1x8x8x16xf32>
    %cst_4 = arith.constant dense<0.000000e+00> : vector<1x16xf32>
    %8 = vector.multi_reduction <add>, %7, %cst_4 [1, 2] : vector<1x8x8x16xf32> to vector<1x16xf32>
    %9 = vector.shape_cast %8 : vector<1x16xf32> to vector<1x1x1x16xf32>
    %cst_5 = arith.constant 1.562500e-02 : f32
    %10 = vector.broadcast %cst_5 : f32 to vector<1x1x1x16xf32>
    %11 = arith.mulf %9, %10 : vector<1x1x1x16xf32>
    %cst_6 = arith.constant 9.99999974E-6 : f32
    %12 = vector.broadcast %cst_6 : f32 to vector<1x1x1x16xf32>
    %13 = arith.addf %11, %12 : vector<1x1x1x16xf32>
    %14 = math.rsqrt %13 : vector<1x1x1x16xf32>
    %15 = vector.broadcast %14 : vector<1x1x1x16xf32> to vector<1x8x8x16xf32>
    %16 = arith.mulf %6, %15 : vector<1x8x8x16xf32>
    %cst_7 = arith.constant 0.000000e+00 : f32
    %17 = vector.broadcast %cst_7 : f32 to vector<1x8x8x16xf32>
    %18 = arith.maximumf %16, %17 : vector<1x8x8x16xf32>
    %c0_8 = arith.constant 0 : index
    %c0_9 = arith.constant 0 : index
    %c0_10 = arith.constant 0 : index
    %c0_11 = arith.constant 0 : index
    %19 = vector.load %arg3[%c0_8, %c0_9, %c0_10, %c0_11] : memref<1x8x8x16xf32, #tpu.memory_space<vmem>>, vector<1x8x8x16xf32>
    tpu.vector_store %arg3[%c0_8, %c0_9, %c0_10, %c0_11], %18 {strides = array<i32>} : memref<1x8x8x16xf32, #tpu.memory_space<vmem>>, vector<1x8x8x16xf32>,
    return
  }
  func.func @transform_0(%arg0: i32, %arg1: i32) -> (i32, i32, i32, i32) {
    %c0_i32 = arith.constant 0 : i32
    %c0_i32_0 = arith.constant 0 : i32
    %c0_i32_1 = arith.constant 0 : i32
    return %arg0, %c0_i32, %c0_i32_0, %arg1 : i32, i32, i32, i32
  }
  func.func @transform_1(%arg0: i32, %arg1: i32) -> (i32, i32, i32, i32) {
    %c0_i32 = arith.constant 0 : i32
    %c0_i32_0 = arith.constant 0 : i32
    %c0_i32_1 = arith.constant 0 : i32
    return %arg0, %c0_i32, %c0_i32_0, %arg1 : i32, i32, i32, i32
  }
}

module attributes {stable_mosaic.version = 11 : i64} {
  func.func @_matmul_bias_kernel(%arg0: i32, %arg1: i32, %arg2: i32, %arg3: memref<32x256xbf16, #tpu.memory_space<vmem>>, %arg4: memref<256x128xbf16, #tpu.memory_space<vmem>>, %arg5: memref<1x128xf32, #tpu.memory_space<vmem>>, %arg6: memref<32x128xf32, #tpu.memory_space<vmem>>) attributes {dimension_semantics = [#tpu.dimension_semantics<parallel>, #tpu.dimension_semantics<parallel>, #tpu.dimension_semantics<arbitrary>], iteration_bounds = array<i64: 1, 1, 1>, scalar_prefetch = 0 : i64, scratch_operands = 0 : i64, tpu.core_type = #tpu.core_type<tc>, window_params = [{transform_indices = @transform_0, window_bounds = array<i64: 32, 256>}, {transform_indices = @transform_1, window_bounds = array<i64: 256, 128>}, {transform_indices = @transform_2, window_bounds = array<i64: 1, 128>}, {transform_indices = @transform_3, window_bounds = array<i64: 32, 128>}]} {
    %c0_i32 = arith.constant 0 : i32
    %0 = arith.cmpi eq, %arg2, %c0_i32 : i32
    %1 = arith.extui %0 : i1 to i32
    %c0_i32_0 = arith.constant 0 : i32
    %2 = arith.cmpi ne, %1, %c0_i32_0 : i32
    scf.if %2 {
      %cst_10 = arith.constant 0.000000e+00 : f32
      %12 = vector.broadcast %cst_10 : f32 to vector<32x128xf32>
      %c0_11 = arith.constant 0 : index
      %c0_12 = arith.constant 0 : index
      %13 = vector.load %arg6[%c0_11, %c0_12] : memref<32x128xf32, #tpu.memory_space<vmem>>, vector<32x128xf32>
      tpu.vector_store %arg6[%c0_11, %c0_12], %12 {strides = array<i32>} : memref<32x128xf32, #tpu.memory_space<vmem>>, vector<32x128xf32>,
    } else {
    }
    %c0 = arith.constant 0 : index
    %c0_1 = arith.constant 0 : index
    %3 = vector.load %arg6[%c0, %c0_1] : memref<32x128xf32, #tpu.memory_space<vmem>>, vector<32x128xf32>
    %c0_2 = arith.constant 0 : index
    %c0_3 = arith.constant 0 : index
    %4 = vector.load %arg3[%c0_2, %c0_3] : memref<32x256xbf16, #tpu.memory_space<vmem>>, vector<32x256xbf16>
    %c0_4 = arith.constant 0 : index
    %c0_5 = arith.constant 0 : index
    %5 = vector.load %arg4[%c0_4, %c0_5] : memref<256x128xbf16, #tpu.memory_space<vmem>>, vector<256x128xbf16>
    %cst = arith.constant dense<0.000000e+00> : vector<32x128xf32>
    %6 = tpu.matmul %4, %5, %cst {dimension_numbers = #tpu.dot_dimension_numbers<[1], [0], [0], [1], [0, 0, 1, 1], [], []>} : vector<32x256xbf16>, vector<256x128xbf16>, vector<32x128xf32> -> vector<32x128xf32>
    %7 = arith.addf %3, %6 : vector<32x128xf32>
    %c0_6 = arith.constant 0 : index
    %c0_7 = arith.constant 0 : index
    %8 = vector.load %arg6[%c0_6, %c0_7] : memref<32x128xf32, #tpu.memory_space<vmem>>, vector<32x128xf32>
    tpu.vector_store %arg6[%c0_6, %c0_7], %7 {strides = array<i32>} : memref<32x128xf32, #tpu.memory_space<vmem>>, vector<32x128xf32>,
    %c0_i32_8 = arith.constant 0 : i32
    %9 = arith.cmpi eq, %arg2, %c0_i32_8 : i32
    %10 = arith.extui %9 : i1 to i32
    %c0_i32_9 = arith.constant 0 : i32
    %11 = arith.cmpi ne, %10, %c0_i32_9 : i32
    scf.if %11 {
      %c0_10 = arith.constant 0 : index
      %c0_11 = arith.constant 0 : index
      %12 = vector.load %arg6[%c0_10, %c0_11] : memref<32x128xf32, #tpu.memory_space<vmem>>, vector<32x128xf32>
      %c0_12 = arith.constant 0 : index
      %c0_13 = arith.constant 0 : index
      %13 = vector.load %arg5[%c0_12, %c0_13] : memref<1x128xf32, #tpu.memory_space<vmem>>, vector<1x128xf32>
      %14 = vector.broadcast %13 : vector<1x128xf32> to vector<32x128xf32>
      %15 = arith.addf %12, %14 : vector<32x128xf32>
      %c0_14 = arith.constant 0 : index
      %c0_15 = arith.constant 0 : index
      %16 = vector.load %arg6[%c0_14, %c0_15] : memref<32x128xf32, #tpu.memory_space<vmem>>, vector<32x128xf32>
      tpu.vector_store %arg6[%c0_14, %c0_15], %15 {strides = array<i32>} : memref<32x128xf32, #tpu.memory_space<vmem>>, vector<32x128xf32>,
    } else {
    }
    return
  }
  func.func @transform_0(%arg0: i32, %arg1: i32, %arg2: i32) -> (i32, i32) {
    %c0_i32 = arith.constant 0 : i32
    return %arg0, %arg2 : i32, i32
  }
  func.func @transform_1(%arg0: i32, %arg1: i32, %arg2: i32) -> (i32, i32) {
    %c0_i32 = arith.constant 0 : i32
    return %arg2, %arg1 : i32, i32
  }
  func.func @transform_2(%arg0: i32, %arg1: i32, %arg2: i32) -> (i32, i32) {
    %c0_i32 = arith.constant 0 : i32
    %c0_i32_0 = arith.constant 0 : i32
    return %c0_i32, %arg1 : i32, i32
  }
  func.func @transform_3(%arg0: i32, %arg1: i32, %arg2: i32) -> (i32, i32) {
    %c0_i32 = arith.constant 0 : i32
    return %arg0, %arg1 : i32, i32
  }
}

module attributes {stable_mosaic.version = 11 : i64} {
  func.func @_in_kernel(%arg0: i32, %arg1: i32, %arg2: memref<1x4x4x32xf32, #tpu.memory_space<vmem>>, %arg3: memref<1x4x4x32xf32, #tpu.memory_space<vmem>>) attributes {dimension_semantics = [#tpu.dimension_semantics<parallel>, #tpu.dimension_semantics<parallel>], iteration_bounds = array<i64: 2, 1>, scalar_prefetch = 0 : i64, scratch_operands = 0 : i64, tpu.core_type = #tpu.core_type<tc>, window_params = [{transform_indices = @transform_0, window_bounds = array<i64: 1, 4, 4, 32>}, {transform_indices = @transform_1, window_bounds = array<i64: 1, 4, 4, 32>}]} {
    %c0 = arith.constant 0 : index
    %c0_0 = arith.constant 0 : index
    %c0_1 = arith.constant 0 : index
    %c0_2 = arith.constant 0 : index
    %0 = vector.load %arg2[%c0, %c0_0, %c0_1, %c0_2] : memref<1x4x4x32xf32, #tpu.memory_space<vmem>>, vector<1x4x4x32xf32>
    %cst = arith.constant dense<0.000000e+00> : vector<1x32xf32>
    %1 = vector.multi_reduction <add>, %0, %cst [1, 2] : vector<1x4x4x32xf32> to vector<1x32xf32>
    %2 = vector.shape_cast %1 : vector<1x32xf32> to vector<1x1x1x32xf32>
    %cst_3 = arith.constant 6.250000e-02 : f32
    %3 = vector.broadcast %cst_3 : f32 to vector<1x1x1x32xf32>
    %4 = arith.mulf %2, %3 : vector<1x1x1x32xf32>
    %5 = vector.broadcast %4 : vector<1x1x1x32xf32> to vector<1x4x4x32xf32>
    %6 = arith.subf %0, %5 : vector<1x4x4x32xf32>
    %7 = arith.mulf %6, %6 : vector<1x4x4x32xf32>
    %cst_4 = arith.constant dense<0.000000e+00> : vector<1x32xf32>
    %8 = vector.multi_reduction <add>, %7, %cst_4 [1, 2] : vector<1x4x4x32xf32> to vector<1x32xf32>
    %9 = vector.shape_cast %8 : vector<1x32xf32> to vector<1x1x1x32xf32>
    %cst_5 = arith.constant 6.250000e-02 : f32
    %10 = vector.broadcast %cst_5 : f32 to vector<1x1x1x32xf32>
    %11 = arith.mulf %9, %10 : vector<1x1x1x32xf32>
    %cst_6 = arith.constant 9.99999974E-6 : f32
    %12 = vector.broadcast %cst_6 : f32 to vector<1x1x1x32xf32>
    %13 = arith.addf %11, %12 : vector<1x1x1x32xf32>
    %14 = math.rsqrt %13 : vector<1x1x1x32xf32>
    %15 = vector.broadcast %14 : vector<1x1x1x32xf32> to vector<1x4x4x32xf32>
    %16 = arith.mulf %6, %15 : vector<1x4x4x32xf32>
    %cst_7 = arith.constant 0.000000e+00 : f32
    %17 = vector.broadcast %cst_7 : f32 to vector<1x4x4x32xf32>
    %18 = arith.maximumf %16, %17 : vector<1x4x4x32xf32>
    %c0_8 = arith.constant 0 : index
    %c0_9 = arith.constant 0 : index
    %c0_10 = arith.constant 0 : index
    %c0_11 = arith.constant 0 : index
    %19 = vector.load %arg3[%c0_8, %c0_9, %c0_10, %c0_11] : memref<1x4x4x32xf32, #tpu.memory_space<vmem>>, vector<1x4x4x32xf32>
    tpu.vector_store %arg3[%c0_8, %c0_9, %c0_10, %c0_11], %18 {strides = array<i32>} : memref<1x4x4x32xf32, #tpu.memory_space<vmem>>, vector<1x4x4x32xf32>,
    return
  }
  func.func @transform_0(%arg0: i32, %arg1: i32) -> (i32, i32, i32, i32) {
    %c0_i32 = arith.constant 0 : i32
    %c0_i32_0 = arith.constant 0 : i32
    %c0_i32_1 = arith.constant 0 : i32
    return %arg0, %c0_i32, %c0_i32_0, %arg1 : i32, i32, i32, i32
  }
  func.func @transform_1(%arg0: i32, %arg1: i32) -> (i32, i32, i32, i32) {
    %c0_i32 = arith.constant 0 : i32
    %c0_i32_0 = arith.constant 0 : i32
    %c0_i32_1 = arith.constant 0 : i32
    return %arg0, %c0_i32, %c0_i32_0, %arg1 : i32, i32, i32, i32
  }
}

module attributes {stable_mosaic.version = 11 : i64} {
  func.func @_matmul_bias_kernel(%arg0: i32, %arg1: i32, %arg2: i32, %arg3: memref<32x384xbf16, #tpu.memory_space<vmem>>, %arg4: memref<384x128xbf16, #tpu.memory_space<vmem>>, %arg5: memref<1x128xf32, #tpu.memory_space<vmem>>, %arg6: memref<32x128xf32, #tpu.memory_space<vmem>>) attributes {dimension_semantics = [#tpu.dimension_semantics<parallel>, #tpu.dimension_semantics<parallel>, #tpu.dimension_semantics<arbitrary>], iteration_bounds = array<i64: 1, 1, 1>, scalar_prefetch = 0 : i64, scratch_operands = 0 : i64, tpu.core_type = #tpu.core_type<tc>, window_params = [{transform_indices = @transform_0, window_bounds = array<i64: 32, 384>}, {transform_indices = @transform_1, window_bounds = array<i64: 384, 128>}, {transform_indices = @transform_2, window_bounds = array<i64: 1, 128>}, {transform_indices = @transform_3, window_bounds = array<i64: 32, 128>}]} {
    %c0_i32 = arith.constant 0 : i32
    %0 = arith.cmpi eq, %arg2, %c0_i32 : i32
    %1 = arith.extui %0 : i1 to i32
    %c0_i32_0 = arith.constant 0 : i32
    %2 = arith.cmpi ne, %1, %c0_i32_0 : i32
    scf.if %2 {
      %cst_10 = arith.constant 0.000000e+00 : f32
      %12 = vector.broadcast %cst_10 : f32 to vector<32x128xf32>
      %c0_11 = arith.constant 0 : index
      %c0_12 = arith.constant 0 : index
      %13 = vector.load %arg6[%c0_11, %c0_12] : memref<32x128xf32, #tpu.memory_space<vmem>>, vector<32x128xf32>
      tpu.vector_store %arg6[%c0_11, %c0_12], %12 {strides = array<i32>} : memref<32x128xf32, #tpu.memory_space<vmem>>, vector<32x128xf32>,
    } else {
    }
    %c0 = arith.constant 0 : index
    %c0_1 = arith.constant 0 : index
    %3 = vector.load %arg6[%c0, %c0_1] : memref<32x128xf32, #tpu.memory_space<vmem>>, vector<32x128xf32>
    %c0_2 = arith.constant 0 : index
    %c0_3 = arith.constant 0 : index
    %4 = vector.load %arg3[%c0_2, %c0_3] : memref<32x384xbf16, #tpu.memory_space<vmem>>, vector<32x384xbf16>
    %c0_4 = arith.constant 0 : index
    %c0_5 = arith.constant 0 : index
    %5 = vector.load %arg4[%c0_4, %c0_5] : memref<384x128xbf16, #tpu.memory_space<vmem>>, vector<384x128xbf16>
    %cst = arith.constant dense<0.000000e+00> : vector<32x128xf32>
    %6 = tpu.matmul %4, %5, %cst {dimension_numbers = #tpu.dot_dimension_numbers<[1], [0], [0], [1], [0, 0, 1, 1], [], []>} : vector<32x384xbf16>, vector<384x128xbf16>, vector<32x128xf32> -> vector<32x128xf32>
    %7 = arith.addf %3, %6 : vector<32x128xf32>
    %c0_6 = arith.constant 0 : index
    %c0_7 = arith.constant 0 : index
    %8 = vector.load %arg6[%c0_6, %c0_7] : memref<32x128xf32, #tpu.memory_space<vmem>>, vector<32x128xf32>
    tpu.vector_store %arg6[%c0_6, %c0_7], %7 {strides = array<i32>} : memref<32x128xf32, #tpu.memory_space<vmem>>, vector<32x128xf32>,
    %c0_i32_8 = arith.constant 0 : i32
    %9 = arith.cmpi eq, %arg2, %c0_i32_8 : i32
    %10 = arith.extui %9 : i1 to i32
    %c0_i32_9 = arith.constant 0 : i32
    %11 = arith.cmpi ne, %10, %c0_i32_9 : i32
    scf.if %11 {
      %c0_10 = arith.constant 0 : index
      %c0_11 = arith.constant 0 : index
      %12 = vector.load %arg6[%c0_10, %c0_11] : memref<32x128xf32, #tpu.memory_space<vmem>>, vector<32x128xf32>
      %c0_12 = arith.constant 0 : index
      %c0_13 = arith.constant 0 : index
      %13 = vector.load %arg5[%c0_12, %c0_13] : memref<1x128xf32, #tpu.memory_space<vmem>>, vector<1x128xf32>
      %14 = vector.broadcast %13 : vector<1x128xf32> to vector<32x128xf32>
      %15 = arith.addf %12, %14 : vector<32x128xf32>
      %c0_14 = arith.constant 0 : index
      %c0_15 = arith.constant 0 : index
      %16 = vector.load %arg6[%c0_14, %c0_15] : memref<32x128xf32, #tpu.memory_space<vmem>>, vector<32x128xf32>
      tpu.vector_store %arg6[%c0_14, %c0_15], %15 {strides = array<i32>} : memref<32x128xf32, #tpu.memory_space<vmem>>, vector<32x128xf32>,
    } else {
    }
    return
  }
  func.func @transform_0(%arg0: i32, %arg1: i32, %arg2: i32) -> (i32, i32) {
    %c0_i32 = arith.constant 0 : i32
    return %arg0, %arg2 : i32, i32
  }
  func.func @transform_1(%arg0: i32, %arg1: i32, %arg2: i32) -> (i32, i32) {
    %c0_i32 = arith.constant 0 : i32
    return %arg2, %arg1 : i32, i32
  }
  func.func @transform_2(%arg0: i32, %arg1: i32, %arg2: i32) -> (i32, i32) {
    %c0_i32 = arith.constant 0 : i32
    %c0_i32_0 = arith.constant 0 : i32
    return %c0_i32, %arg1 : i32, i32
  }
  func.func @transform_3(%arg0: i32, %arg1: i32, %arg2: i32) -> (i32, i32) {
    %c0_i32 = arith.constant 0 : i32
    return %arg0, %arg1 : i32, i32
  }
}

module attributes {stable_mosaic.version = 11 : i64} {
  func.func @_in_res_kernel(%arg0: i32, %arg1: i32, %arg2: memref<1x4x4x32xf32, #tpu.memory_space<vmem>>, %arg3: memref<1x4x4x32xf32, #tpu.memory_space<vmem>>, %arg4: memref<1x4x4x32xf32, #tpu.memory_space<vmem>>) attributes {dimension_semantics = [#tpu.dimension_semantics<parallel>, #tpu.dimension_semantics<parallel>], iteration_bounds = array<i64: 2, 1>, scalar_prefetch = 0 : i64, scratch_operands = 0 : i64, tpu.core_type = #tpu.core_type<tc>, window_params = [{transform_indices = @transform_0, window_bounds = array<i64: 1, 4, 4, 32>}, {transform_indices = @transform_1, window_bounds = array<i64: 1, 4, 4, 32>}, {transform_indices = @transform_2, window_bounds = array<i64: 1, 4, 4, 32>}]} {
    %c0 = arith.constant 0 : index
    %c0_0 = arith.constant 0 : index
    %c0_1 = arith.constant 0 : index
    %c0_2 = arith.constant 0 : index
    %0 = vector.load %arg2[%c0, %c0_0, %c0_1, %c0_2] : memref<1x4x4x32xf32, #tpu.memory_space<vmem>>, vector<1x4x4x32xf32>
    %cst = arith.constant dense<0.000000e+00> : vector<1x32xf32>
    %1 = vector.multi_reduction <add>, %0, %cst [1, 2] : vector<1x4x4x32xf32> to vector<1x32xf32>
    %2 = vector.shape_cast %1 : vector<1x32xf32> to vector<1x1x1x32xf32>
    %cst_3 = arith.constant 6.250000e-02 : f32
    %3 = vector.broadcast %cst_3 : f32 to vector<1x1x1x32xf32>
    %4 = arith.mulf %2, %3 : vector<1x1x1x32xf32>
    %5 = vector.broadcast %4 : vector<1x1x1x32xf32> to vector<1x4x4x32xf32>
    %6 = arith.subf %0, %5 : vector<1x4x4x32xf32>
    %7 = arith.mulf %6, %6 : vector<1x4x4x32xf32>
    %cst_4 = arith.constant dense<0.000000e+00> : vector<1x32xf32>
    %8 = vector.multi_reduction <add>, %7, %cst_4 [1, 2] : vector<1x4x4x32xf32> to vector<1x32xf32>
    %9 = vector.shape_cast %8 : vector<1x32xf32> to vector<1x1x1x32xf32>
    %cst_5 = arith.constant 6.250000e-02 : f32
    %10 = vector.broadcast %cst_5 : f32 to vector<1x1x1x32xf32>
    %11 = arith.mulf %9, %10 : vector<1x1x1x32xf32>
    %cst_6 = arith.constant 9.99999974E-6 : f32
    %12 = vector.broadcast %cst_6 : f32 to vector<1x1x1x32xf32>
    %13 = arith.addf %11, %12 : vector<1x1x1x32xf32>
    %14 = math.rsqrt %13 : vector<1x1x1x32xf32>
    %15 = vector.broadcast %14 : vector<1x1x1x32xf32> to vector<1x4x4x32xf32>
    %16 = arith.mulf %6, %15 : vector<1x4x4x32xf32>
    %c0_7 = arith.constant 0 : index
    %c0_8 = arith.constant 0 : index
    %c0_9 = arith.constant 0 : index
    %c0_10 = arith.constant 0 : index
    %17 = vector.load %arg3[%c0_7, %c0_8, %c0_9, %c0_10] : memref<1x4x4x32xf32, #tpu.memory_space<vmem>>, vector<1x4x4x32xf32>
    %18 = arith.addf %16, %17 : vector<1x4x4x32xf32>
    %c0_11 = arith.constant 0 : index
    %c0_12 = arith.constant 0 : index
    %c0_13 = arith.constant 0 : index
    %c0_14 = arith.constant 0 : index
    %19 = vector.load %arg4[%c0_11, %c0_12, %c0_13, %c0_14] : memref<1x4x4x32xf32, #tpu.memory_space<vmem>>, vector<1x4x4x32xf32>
    tpu.vector_store %arg4[%c0_11, %c0_12, %c0_13, %c0_14], %18 {strides = array<i32>} : memref<1x4x4x32xf32, #tpu.memory_space<vmem>>, vector<1x4x4x32xf32>,
    return
  }
  func.func @transform_0(%arg0: i32, %arg1: i32) -> (i32, i32, i32, i32) {
    %c0_i32 = arith.constant 0 : i32
    %c0_i32_0 = arith.constant 0 : i32
    %c0_i32_1 = arith.constant 0 : i32
    return %arg0, %c0_i32, %c0_i32_0, %arg1 : i32, i32, i32, i32
  }
  func.func @transform_1(%arg0: i32, %arg1: i32) -> (i32, i32, i32, i32) {
    %c0_i32 = arith.constant 0 : i32
    %c0_i32_0 = arith.constant 0 : i32
    %c0_i32_1 = arith.constant 0 : i32
    return %arg0, %c0_i32, %c0_i32_0, %arg1 : i32, i32, i32, i32
  }
  func.func @transform_2(%arg0: i32, %arg1: i32) -> (i32, i32, i32, i32) {
    %c0_i32 = arith.constant 0 : i32
    %c0_i32_0 = arith.constant 0 : i32
    %c0_i32_1 = arith.constant 0 : i32
    return %arg0, %c0_i32, %c0_i32_0, %arg1 : i32, i32, i32, i32
  }
}

module attributes {stable_mosaic.version = 11 : i64} {
  func.func @_matmul_bias_kernel(%arg0: i32, %arg1: i32, %arg2: i32, %arg3: memref<32x128xbf16, #tpu.memory_space<vmem>>, %arg4: memref<128x128xbf16, #tpu.memory_space<vmem>>, %arg5: memref<1x128xf32, #tpu.memory_space<vmem>>, %arg6: memref<32x128xf32, #tpu.memory_space<vmem>>) attributes {dimension_semantics = [#tpu.dimension_semantics<parallel>, #tpu.dimension_semantics<parallel>, #tpu.dimension_semantics<arbitrary>], iteration_bounds = array<i64: 1, 1, 1>, scalar_prefetch = 0 : i64, scratch_operands = 0 : i64, tpu.core_type = #tpu.core_type<tc>, window_params = [{transform_indices = @transform_0, window_bounds = array<i64: 32, 128>}, {transform_indices = @transform_1, window_bounds = array<i64: 128, 128>}, {transform_indices = @transform_2, window_bounds = array<i64: 1, 128>}, {transform_indices = @transform_3, window_bounds = array<i64: 32, 128>}]} {
    %c0_i32 = arith.constant 0 : i32
    %0 = arith.cmpi eq, %arg2, %c0_i32 : i32
    %1 = arith.extui %0 : i1 to i32
    %c0_i32_0 = arith.constant 0 : i32
    %2 = arith.cmpi ne, %1, %c0_i32_0 : i32
    scf.if %2 {
      %cst_10 = arith.constant 0.000000e+00 : f32
      %12 = vector.broadcast %cst_10 : f32 to vector<32x128xf32>
      %c0_11 = arith.constant 0 : index
      %c0_12 = arith.constant 0 : index
      %13 = vector.load %arg6[%c0_11, %c0_12] : memref<32x128xf32, #tpu.memory_space<vmem>>, vector<32x128xf32>
      tpu.vector_store %arg6[%c0_11, %c0_12], %12 {strides = array<i32>} : memref<32x128xf32, #tpu.memory_space<vmem>>, vector<32x128xf32>,
    } else {
    }
    %c0 = arith.constant 0 : index
    %c0_1 = arith.constant 0 : index
    %3 = vector.load %arg6[%c0, %c0_1] : memref<32x128xf32, #tpu.memory_space<vmem>>, vector<32x128xf32>
    %c0_2 = arith.constant 0 : index
    %c0_3 = arith.constant 0 : index
    %4 = vector.load %arg3[%c0_2, %c0_3] : memref<32x128xbf16, #tpu.memory_space<vmem>>, vector<32x128xbf16>
    %c0_4 = arith.constant 0 : index
    %c0_5 = arith.constant 0 : index
    %5 = vector.load %arg4[%c0_4, %c0_5] : memref<128x128xbf16, #tpu.memory_space<vmem>>, vector<128x128xbf16>
    %cst = arith.constant dense<0.000000e+00> : vector<32x128xf32>
    %6 = tpu.matmul %4, %5, %cst {dimension_numbers = #tpu.dot_dimension_numbers<[1], [0], [0], [1], [0, 0, 1, 1], [], []>} : vector<32x128xbf16>, vector<128x128xbf16>, vector<32x128xf32> -> vector<32x128xf32>
    %7 = arith.addf %3, %6 : vector<32x128xf32>
    %c0_6 = arith.constant 0 : index
    %c0_7 = arith.constant 0 : index
    %8 = vector.load %arg6[%c0_6, %c0_7] : memref<32x128xf32, #tpu.memory_space<vmem>>, vector<32x128xf32>
    tpu.vector_store %arg6[%c0_6, %c0_7], %7 {strides = array<i32>} : memref<32x128xf32, #tpu.memory_space<vmem>>, vector<32x128xf32>,
    %c0_i32_8 = arith.constant 0 : i32
    %9 = arith.cmpi eq, %arg2, %c0_i32_8 : i32
    %10 = arith.extui %9 : i1 to i32
    %c0_i32_9 = arith.constant 0 : i32
    %11 = arith.cmpi ne, %10, %c0_i32_9 : i32
    scf.if %11 {
      %c0_10 = arith.constant 0 : index
      %c0_11 = arith.constant 0 : index
      %12 = vector.load %arg6[%c0_10, %c0_11] : memref<32x128xf32, #tpu.memory_space<vmem>>, vector<32x128xf32>
      %c0_12 = arith.constant 0 : index
      %c0_13 = arith.constant 0 : index
      %13 = vector.load %arg5[%c0_12, %c0_13] : memref<1x128xf32, #tpu.memory_space<vmem>>, vector<1x128xf32>
      %14 = vector.broadcast %13 : vector<1x128xf32> to vector<32x128xf32>
      %15 = arith.addf %12, %14 : vector<32x128xf32>
      %c0_14 = arith.constant 0 : index
      %c0_15 = arith.constant 0 : index
      %16 = vector.load %arg6[%c0_14, %c0_15] : memref<32x128xf32, #tpu.memory_space<vmem>>, vector<32x128xf32>
      tpu.vector_store %arg6[%c0_14, %c0_15], %15 {strides = array<i32>} : memref<32x128xf32, #tpu.memory_space<vmem>>, vector<32x128xf32>,
    } else {
    }
    return
  }
  func.func @transform_0(%arg0: i32, %arg1: i32, %arg2: i32) -> (i32, i32) {
    %c0_i32 = arith.constant 0 : i32
    return %arg0, %arg2 : i32, i32
  }
  func.func @transform_1(%arg0: i32, %arg1: i32, %arg2: i32) -> (i32, i32) {
    %c0_i32 = arith.constant 0 : i32
    return %arg2, %arg1 : i32, i32
  }
  func.func @transform_2(%arg0: i32, %arg1: i32, %arg2: i32) -> (i32, i32) {
    %c0_i32 = arith.constant 0 : i32
    %c0_i32_0 = arith.constant 0 : i32
    return %c0_i32, %arg1 : i32, i32
  }
  func.func @transform_3(%arg0: i32, %arg1: i32, %arg2: i32) -> (i32, i32) {
    %c0_i32 = arith.constant 0 : i32
    return %arg0, %arg1 : i32, i32
  }
}

module attributes {stable_mosaic.version = 11 : i64} {
  func.func @_matmul_bias_kernel(%arg0: i32, %arg1: i32, %arg2: i32, %arg3: memref<256x512xbf16, #tpu.memory_space<vmem>>, %arg4: memref<512x128xbf16, #tpu.memory_space<vmem>>, %arg5: memref<1x128xf32, #tpu.memory_space<vmem>>, %arg6: memref<256x128xf32, #tpu.memory_space<vmem>>) attributes {dimension_semantics = [#tpu.dimension_semantics<parallel>, #tpu.dimension_semantics<parallel>, #tpu.dimension_semantics<arbitrary>], iteration_bounds = array<i64: 2, 1, 1>, scalar_prefetch = 0 : i64, scratch_operands = 0 : i64, tpu.core_type = #tpu.core_type<tc>, window_params = [{transform_indices = @transform_0, window_bounds = array<i64: 256, 512>}, {transform_indices = @transform_1, window_bounds = array<i64: 512, 128>}, {transform_indices = @transform_2, window_bounds = array<i64: 1, 128>}, {transform_indices = @transform_3, window_bounds = array<i64: 256, 128>}]} {
    %c0_i32 = arith.constant 0 : i32
    %0 = arith.cmpi eq, %arg2, %c0_i32 : i32
    %1 = arith.extui %0 : i1 to i32
    %c0_i32_0 = arith.constant 0 : i32
    %2 = arith.cmpi ne, %1, %c0_i32_0 : i32
    scf.if %2 {
      %cst_10 = arith.constant 0.000000e+00 : f32
      %12 = vector.broadcast %cst_10 : f32 to vector<256x128xf32>
      %c0_11 = arith.constant 0 : index
      %c0_12 = arith.constant 0 : index
      %13 = vector.load %arg6[%c0_11, %c0_12] : memref<256x128xf32, #tpu.memory_space<vmem>>, vector<256x128xf32>
      tpu.vector_store %arg6[%c0_11, %c0_12], %12 {strides = array<i32>} : memref<256x128xf32, #tpu.memory_space<vmem>>, vector<256x128xf32>,
    } else {
    }
    %c0 = arith.constant 0 : index
    %c0_1 = arith.constant 0 : index
    %3 = vector.load %arg6[%c0, %c0_1] : memref<256x128xf32, #tpu.memory_space<vmem>>, vector<256x128xf32>
    %c0_2 = arith.constant 0 : index
    %c0_3 = arith.constant 0 : index
    %4 = vector.load %arg3[%c0_2, %c0_3] : memref<256x512xbf16, #tpu.memory_space<vmem>>, vector<256x512xbf16>
    %c0_4 = arith.constant 0 : index
    %c0_5 = arith.constant 0 : index
    %5 = vector.load %arg4[%c0_4, %c0_5] : memref<512x128xbf16, #tpu.memory_space<vmem>>, vector<512x128xbf16>
    %cst = arith.constant dense<0.000000e+00> : vector<256x128xf32>
    %6 = tpu.matmul %4, %5, %cst {dimension_numbers = #tpu.dot_dimension_numbers<[1], [0], [0], [1], [0, 0, 1, 1], [], []>} : vector<256x512xbf16>, vector<512x128xbf16>, vector<256x128xf32> -> vector<256x128xf32>
    %7 = arith.addf %3, %6 : vector<256x128xf32>
    %c0_6 = arith.constant 0 : index
    %c0_7 = arith.constant 0 : index
    %8 = vector.load %arg6[%c0_6, %c0_7] : memref<256x128xf32, #tpu.memory_space<vmem>>, vector<256x128xf32>
    tpu.vector_store %arg6[%c0_6, %c0_7], %7 {strides = array<i32>} : memref<256x128xf32, #tpu.memory_space<vmem>>, vector<256x128xf32>,
    %c0_i32_8 = arith.constant 0 : i32
    %9 = arith.cmpi eq, %arg2, %c0_i32_8 : i32
    %10 = arith.extui %9 : i1 to i32
    %c0_i32_9 = arith.constant 0 : i32
    %11 = arith.cmpi ne, %10, %c0_i32_9 : i32
    scf.if %11 {
      %c0_10 = arith.constant 0 : index
      %c0_11 = arith.constant 0 : index
      %12 = vector.load %arg6[%c0_10, %c0_11] : memref<256x128xf32, #tpu.memory_space<vmem>>, vector<256x128xf32>
      %c0_12 = arith.constant 0 : index
      %c0_13 = arith.constant 0 : index
      %13 = vector.load %arg5[%c0_12, %c0_13] : memref<1x128xf32, #tpu.memory_space<vmem>>, vector<1x128xf32>
      %14 = vector.broadcast %13 : vector<1x128xf32> to vector<256x128xf32>
      %15 = arith.addf %12, %14 : vector<256x128xf32>
      %16 = math.tanh %15 : vector<256x128xf32>
      %c0_14 = arith.constant 0 : index
      %c0_15 = arith.constant 0 : index
      %17 = vector.load %arg6[%c0_14, %c0_15] : memref<256x128xf32, #tpu.memory_space<vmem>>, vector<256x128xf32>
      tpu.vector_store %arg6[%c0_14, %c0_15], %16 {strides = array<i32>} : memref<256x128xf32, #tpu.memory_space<vmem>>, vector<256x128xf32>,
    } else {
    }
    return
  }
  func.func @transform_0(%arg0: i32, %arg1: i32, %arg2: i32) -> (i32, i32) {
    %c0_i32 = arith.constant 0 : i32
    return %arg0, %arg2 : i32, i32
  }
  func.func @transform_1(%arg0: i32, %arg1: i32, %arg2: i32) -> (i32, i32) {
    %c0_i32 = arith.constant 0 : i32
    return %arg2, %arg1 : i32, i32
  }
  func.func @transform_2(%arg0: i32, %arg1: i32, %arg2: i32) -> (i32, i32) {
    %c0_i32 = arith.constant 0 : i32
    %c0_i32_0 = arith.constant 0 : i32
    return %c0_i32, %arg1 : i32, i32
  }
  func.func @transform_3(%arg0: i32, %arg1: i32, %arg2: i32) -> (i32, i32) {
    %c0_i32 = arith.constant 0 : i32
    return %arg0, %arg1 : i32, i32
  }
}

</mosaic_0001>

<bundles_post_ra>
// kernel: generator_forward.26
= control target key start
LH: loop header
LB: loop body
LE: loop exit
PB: predicated region body
PF: predicated region fallthrough
CT: control target
= control target key end

     0   :  { %s639_s6 = smov 0   ;;  %s641_s7 = smov 0   ;;  %s1199_s0 = inlined_call_operand.vmem [shape: f32[2,16,16,8], index: 0, kind: input, shape index: {}]   ;;  %s1200_s1 = inlined_call_operand.vmem [shape: f32[2,16,16,8], index: 1, kind: output, shape index: {}]  }
   0x1   :  { %s643_s8 = smov 0  }
   0x2 LB: > { %s23_s9 = sadd.s32 1, %s623_s7  ;;  %p570_p0 = scmp.ge.s32.totalorder %s627_s8, 1  ;;  %s627_s8 = sphi %s643_s8, %s11_s8   ;;  %s623_s7 = sphi %s641_s7, %s1202_s7   ;;  %s619_s6 = sphi %s639_s6, %s1201_s6  }
   0x3   : > { %p25_p1 = scmp.ge.s32.totalorder %s23_s9, 2  ;;  %p106_p2 = scmp.lt.s32.totalorder %s627_s8, 3 }
   0x5   : > { %s1204_s9 = smov (%p25_p1, %s23_s9), 0  ;;  %p107_p3 = pnand %p570_p0, %p106_p2 }
   0x6   : > { %p132_p4 = scmp.lt.s32.totalorder (!%p107_p3), %s619_s6, 1  ;;  %vm180_vm0 = vcmask (!%p107_p3), 64512  }
   0x7   : > { %110 = sbr.rel (%p107_p3) target bundleno = 210 (0xd2), region = 24 }
   0xe   : > { %s1206_s6 = smov (!%p132_p4, %s619_s6), 1 }
   0xf   : > { %s577_s10 = sshll.u32 %s1206_s6, 8 }
  0x10   : > { %s665_s13 = scalar_lea.vmem %s1199_s0, %s577_s10  ;;  %s1068_s16 = scalar_lea.vmem %s1200_s1, %s577_s10 }
  0x11   : > { %v668_v0 = vld [vmem:[%s665_s13] sm:$0xff]  ;;  %v671_v1 = vld [vmem:[%s665_s13 + $0x8] sm:$0xff]  ;;  %v674_v2 = vld [vmem:[%s665_s13 + $0x10] sm:$0xff] }
  0x12   : > { %v677_v3 = vld [vmem:[%s665_s13 + $0x18] sm:$0xff]  ;;  %v181_v4 = vsel %vm180_vm0, %v668_v0, 0.0  ;;  %v182_v5 = vsel %vm180_vm0, %v671_v1, 0.0  ;;  %v184_v6 = vsel %vm180_vm0, %v674_v2, 0.0  ;;  %v686_v7 = vld [vmem:[%s665_s13 + $0x20] sm:$0xff]  ;;  %v691_v10 = vld [vmem:[%s665_s13 + $0x28] sm:$0xff] }
  0x13   : > { %v183_v8 = vadd.f32 %v182_v5, %v181_v4  ;;  %v186_v9 = vsel %vm180_vm0, %v677_v3, 0.0  ;;  %v188_v12 = vsel %vm180_vm0, %v686_v7, 0.0  ;;  %v696_v13 = vld [vmem:[%s665_s13 + $0x30] sm:$0xff]  ;;  %v190_v15 = vsel %vm180_vm0, %v691_v10, 0.0  ;;  %v701_v16 = vld [vmem:[%s665_s13 + $0x38] sm:$0xff]  ;;  %v706_v19 = vld [vmem:[%s665_s13 + $0x40] sm:$0xff] }
  0x14   : > { %v192_v18 = vsel %vm180_vm0, %v696_v13, 0.0  ;;  %v194_v21 = vsel %vm180_vm0, %v701_v16, 0.0  ;;  %v711_v22 = vld [vmem:[%s665_s13 + $0x48] sm:$0xff]  ;;  %v196_v24 = vsel %vm180_vm0, %v706_v19, 0.0  ;;  %v716_v25 = vld [vmem:[%s665_s13 + $0x50] sm:$0xff]  ;;  %v721_v28 = vld [vmem:[%s665_s13 + $0x58] sm:$0xff] }
  0x15   : > { %v185_v11 = vadd.f32 %v184_v6, %v183_v8  ;;  %v198_v27 = vsel %vm180_vm0, %v711_v22, 0.0  ;;  %v200_v30 = vsel %vm180_vm0, %v716_v25, 0.0  ;;  %v726_v31 = vld [vmem:[%s665_s13 + $0x60] sm:$0xff]  ;;  %v202_v33 = vsel %vm180_vm0, %v721_v28, 0.0  ;;  %v731_v34 = vld [vmem:[%s665_s13 + $0x68] sm:$0xff]  ;;  %v736_v37 = vld [vmem:[%s665_s13 + $0x70] sm:$0xff] }
  0x16   : > { %v204_v36 = vsel %vm180_vm0, %v726_v31, 0.0  ;;  %v206_v39 = vsel %vm180_vm0, %v731_v34, 0.0  ;;  %v741_v40 = vld [vmem:[%s665_s13 + $0x78] sm:$0xff]  ;;  %v208_v42 = vsel %vm180_vm0, %v736_v37, 0.0  ;;  %v746_v43 = vld [vmem:[%s665_s13 + $0x80] sm:$0xff]  ;;  %v751_v46 = vld [vmem:[%s665_s13 + $0x88] sm:$0xff] }
  0x17   : > { %v187_v14 = vadd.f32 %v186_v9, %v185_v11  ;;  %v210_v45 = vsel %vm180_vm0, %v741_v40, 0.0  ;;  %v212_v48 = vsel %vm180_vm0, %v746_v43, 0.0  ;;  %v756_v49 = vld [vmem:[%s665_s13 + $0x90] sm:$0xff]  ;;  %v214_v51 = vsel %vm180_vm0, %v751_v46, 0.0  ;;  %v761_v52 = vld [vmem:[%s665_s13 + $0x98] sm:$0xff]  ;;  %v766_v55 = vld [vmem:[%s665_s13 + $0xa0] sm:$0xff] }
  0x18   : > { %v216_v54 = vsel %vm180_vm0, %v756_v49, 0.0  ;;  %v218_v57 = vsel %vm180_vm0, %v761_v52, 0.0  ;;  %v771_v58 = vld [vmem:[%s665_s13 + $0xa8] sm:$0xff]  ;;  %v220_v60 = vsel %vm180_vm0, %v766_v55, 0.0  ;;  %v776_v61 = vld [vmem:[%s665_s13 + $0xb0] sm:$0xff]  ;;  %v781_v4 = vld [vmem:[%s665_s13 + $0xb8] sm:$0xff] }
  0x19   : > { %v189_v17 = vadd.f32 %v188_v12, %v187_v14  ;;  %v222_v63 = vsel %vm180_vm0, %v771_v58, 0.0  ;;  %v224_v6 = vsel %vm180_vm0, %v776_v61, 0.0  ;;  %v786_v8 = vld [vmem:[%s665_s13 + $0xc0] sm:$0xff]  ;;  %v226_v11 = vsel %vm180_vm0, %v781_v4, 0.0  ;;  %v791_v12 = vld [vmem:[%s665_s13 + $0xc8] sm:$0xff] }
  0x1b   : > { %v191_v20 = vadd.f32 %v190_v15, %v189_v17  ;;  %v228_v15 = vsel %vm180_vm0, %v786_v8, 0.0  ;;  %v796_v17 = vld [vmem:[%s665_s13 + $0xd0] sm:$0xff] }
  0x1d   : > { %v193_v23 = vadd.f32 %v192_v18, %v191_v20  ;;  %v230_v20 = vsel %vm180_vm0, %v791_v12, 0.0 }
  0x1f   : > { %v195_v26 = vadd.f32 %v194_v21, %v193_v23  ;;  %v801_v21 = vld [vmem:[%s665_s13 + $0xd8] sm:$0xff] }
  0x21   : > { %v197_v29 = vadd.f32 %v196_v24, %v195_v26  ;;  %v232_v24 = vsel %vm180_vm0, %v796_v17, 0.0  ;;  %v806_v26 = vld [vmem:[%s665_s13 + $0xe0] sm:$0xff] }
  0x23   : > { %v199_v32 = vadd.f32 %v198_v27, %v197_v29  ;;  %v234_v29 = vsel %vm180_vm0, %v801_v21, 0.0 }
  0x25   : > { %v201_v35 = vadd.f32 %v200_v30, %v199_v32  ;;  %v811_v30 = vld [vmem:[%s665_s13 + $0xe8] sm:$0xff] }
  0x27   : > { %v203_v38 = vadd.f32 %v202_v33, %v201_v35  ;;  %v236_v33 = vsel %vm180_vm0, %v806_v26, 0.0  ;;  %v816_v35 = vld [vmem:[%s665_s13 + $0xf0] sm:$0xff] }
  0x29   : > { %v205_v41 = vadd.f32 %v204_v36, %v203_v38  ;;  %v238_v38 = vsel %vm180_vm0, %v811_v30, 0.0 }
  0x2b   : > { %v207_v44 = vadd.f32 %v206_v39, %v205_v41  ;;  %v821_v39 = vld [vmem:[%s665_s13 + $0xf8] sm:$0xff] }
  0x2d   : > { %v209_v47 = vadd.f32 %v208_v42, %v207_v44  ;;  %v240_v42 = vsel %vm180_vm0, %v816_v35, 0.0 }
  0x2f   : > { %v211_v50 = vadd.f32 %v210_v45, %v209_v47  ;;  %v242_v45 = vsel %vm180_vm0, %v821_v39, 0.0 }
  0x31   : > { %v213_v53 = vadd.f32 %v212_v48, %v211_v50 }
  0x33   : > { %v215_v56 = vadd.f32 %v214_v51, %v213_v53 }
  0x35   : > { %v217_v59 = vadd.f32 %v216_v54, %v215_v56 }
  0x37   : > { %v219_v62 = vadd.f32 %v218_v57, %v217_v59 }
  0x39   : > { %v221_v5 = vadd.f32 %v220_v60, %v219_v62 }
  0x3b   : > { %v223_v9 = vadd.f32 %v222_v63, %v221_v5 }
  0x3d   : > { %v225_v14 = vadd.f32 %v224_v6, %v223_v9 }
  0x3f   : > { %v227_v18 = vadd.f32 %v226_v11, %v225_v14 }
  0x41   : > { %v229_v23 = vadd.f32 %v228_v15, %v227_v18 }
  0x43   : > { %v231_v27 = vadd.f32 %v230_v20, %v229_v23 }
  0x45   : > { %v233_v32 = vadd.f32 %v232_v24, %v231_v27 }
  0x47   : > { %v235_v36 = vadd.f32 %v234_v29, %v233_v32 }
  0x49   : > { %v237_v41 = vadd.f32 %v236_v33, %v235_v36 }
  0x4b   : > { %v239_v44 = vadd.f32 %v238_v38, %v237_v41 }
  0x4d   : > { %v241_v47 = vadd.f32 %v240_v42, %v239_v44 }
  0x4f   : > { %v243_v48 = vadd.f32 %v242_v45, %v241_v47 }
  0x51   : > { %v244_v50 = vrot.slane %v243_v48, 4 }
  0x53   : > { %v245_v51 = vadd.f32 %v244_v50, %v243_v48 }
  0x55   : > { %v246_v53 = vrot.slane %v245_v51, 2 }
  0x57   : > { %v247_v54 = vadd.f32 %v246_v53, %v245_v51 }
  0x59   : > { %v248_v56 = vrot.slane %v247_v54, 1 }
  0x5b   : > { %v249_v57 = vadd.f32 %v248_v56, %v247_v54 }
  0x5d   : > { %v827_v59 = vmul.f32 0.00390625, %v249_v57 }
  0x5f   : > { %v831_v60 = vsub.f32 %v668_v0, %v827_v59  ;;  %v835_v62 = vsub.f32 %v671_v1, %v827_v59  ;;  %v839_v63 = vsub.f32 %v674_v2, %v827_v59  ;;  %v843_v5 = vsub.f32 %v677_v3, %v827_v59 }
  0x60   : > { %v847_v6 = vsub.f32 %v686_v7, %v827_v59  ;;  %v857_v2 = vsub.f32 %v691_v10, %v827_v59  ;;  %v863_v7 = vsub.f32 %v696_v13, %v827_v59  ;;  %v872_v10 = vsub.f32 %v701_v16, %v827_v59 }
  0x61   : > { %v283_v0 = vmul.f32 %v831_v60, %v831_v60  ;;  %v284_v9 = vmul.f32 %v835_v62, %v835_v62  ;;  %v285_v1 = vmul.f32 %v839_v63, %v839_v63  ;;  %v286_v3 = vmul.f32 %v843_v5, %v843_v5 }
  0x62   : > { %v287_v11 = vmul.f32 %v847_v6, %v847_v6  ;;  %v288_v23 = vmul.f32 %v857_v2, %v857_v2  ;;  %v879_v27 = vsub.f32 %v706_v19, %v827_v59  ;;  %v289_v29 = vmul.f32 %v863_v7, %v863_v7 }
  0x63   : > { %v315_v14 = vsel %vm180_vm0, %v283_v0, 0.0  ;;  %v316_v15 = vsel %vm180_vm0, %v284_v9, 0.0  ;;  %v318_v18 = vsel %vm180_vm0, %v285_v1, 0.0  ;;  %v320_v13 = vsel %vm180_vm0, %v286_v3, 0.0 }
  0x64   : > { %v317_v20 = vadd.f32 %v316_v15, %v315_v14  ;;  %v322_v32 = vsel %vm180_vm0, %v287_v11, 0.0  ;;  %v886_v16 = vsub.f32 %v711_v22, %v827_v59  ;;  %v290_v36 = vmul.f32 %v872_v10, %v872_v10 }
  0x65   : > { %v324_v38 = vsel %vm180_vm0, %v288_v23, 0.0  ;;  %v893_v19 = vsub.f32 %v716_v25, %v827_v59  ;;  %v291_v42 = vmul.f32 %v879_v27, %v879_v27  ;;  %v326_v44 = vsel %vm180_vm0, %v289_v29, 0.0 }
  0x66   : > { %v319_v24 = vadd.f32 %v318_v18, %v317_v20  ;;  %v900_v22 = vsub.f32 %v721_v28, %v827_v59  ;;  %v292_v47 = vmul.f32 %v886_v16, %v886_v16  ;;  %v328_v48 = vsel %vm180_vm0, %v290_v36, 0.0 }
  0x67   : > { %v907_v25 = vsub.f32 %v726_v31, %v827_v59  ;;  %v293_v51 = vmul.f32 %v893_v19, %v893_v19  ;;  %v330_v53 = vsel %vm180_vm0, %v291_v42, 0.0  ;;  %v914_v28 = vsub.f32 %v731_v34, %v827_v59 }
  0x68   : > { %v321_v33 = vadd.f32 %v320_v13, %v319_v24  ;;  %v294_v56 = vmul.f32 %v900_v22, %v900_v22  ;;  %v332_v57 = vsel %vm180_vm0, %v292_v47, 0.0  ;;  %v921_v31 = vsub.f32 %v736_v37, %v827_v59 }
  0x69   : > { %v295_v9 = vmul.f32 %v907_v25, %v907_v25  ;;  %v334_v1 = vsel %vm180_vm0, %v293_v51, 0.0  ;;  %v928_v34 = vsub.f32 %v741_v40, %v827_v59  ;;  %v296_v11 = vmul.f32 %v914_v28, %v914_v28 }
  0x6a   : > { %v323_v41 = vadd.f32 %v322_v32, %v321_v33  ;;  %v336_v14 = vsel %vm180_vm0, %v294_v56, 0.0  ;;  %v935_v37 = vsub.f32 %v746_v43, %v827_v59  ;;  %v297_v18 = vmul.f32 %v921_v31, %v921_v31 }
  0x6b   : > { %v338_v20 = vsel %vm180_vm0, %v295_v9, 0.0  ;;  %v942_v40 = vsub.f32 %v751_v46, %v827_v59  ;;  %v298_v13 = vmul.f32 %v928_v34, %v928_v34  ;;  %v340_v24 = vsel %vm180_vm0, %v296_v11, 0.0 }
  0x6c   : > { %v325_v45 = vadd.f32 %v324_v38, %v323_v41  ;;  %v949_v43 = vsub.f32 %v756_v49, %v827_v59  ;;  %v299_v32 = vmul.f32 %v935_v37, %v935_v37  ;;  %v342_v33 = vsel %vm180_vm0, %v297_v18, 0.0 }
  0x6d   : > { %v956_v46 = vsub.f32 %v761_v52, %v827_v59  ;;  %v300_v38 = vmul.f32 %v942_v40, %v942_v40  ;;  %v344_v41 = vsel %vm180_vm0, %v298_v13, 0.0  ;;  %v963_v49 = vsub.f32 %v766_v55, %v827_v59 }
  0x6e   : > { %v327_v50 = vadd.f32 %v326_v44, %v325_v45  ;;  %v301_v44 = vmul.f32 %v949_v43, %v949_v43  ;;  %v346_v45 = vsel %vm180_vm0, %v299_v32, 0.0  ;;  %v970_v52 = vsub.f32 %v771_v58, %v827_v59 }
  0x6f   : > { %v977_v55 = vsub.f32 %v776_v61, %v827_v59  ;;  %v984_v58 = vsub.f32 %v781_v4, %v827_v59  ;;  %v991_v61 = vsub.f32 %v786_v8, %v827_v59  ;;  %v998_v4 = vsub.f32 %v791_v12, %v827_v59 }
  0x70   : > { %v329_v54 = vadd.f32 %v328_v48, %v327_v50  ;;  %v302_v48 = vmul.f32 %v956_v46, %v956_v46  ;;  %v348_v50 = vsel %vm180_vm0, %v300_v38, 0.0  ;;  %v1005_v8 = vsub.f32 %v796_v17, %v827_v59 }
  0x71   : > { %v1012_v12 = vsub.f32 %v801_v21, %v827_v59  ;;  %v1019_v17 = vsub.f32 %v806_v26, %v827_v59  ;;  %v1026_v21 = vsub.f32 %v811_v30, %v827_v59  ;;  %v1033_v26 = vsub.f32 %v816_v35, %v827_v59 }
  0x72   : > { %v331_v0 = vadd.f32 %v330_v53, %v329_v54  ;;  %v303_v53 = vmul.f32 %v963_v49, %v963_v49  ;;  %v350_v54 = vsel %vm180_vm0, %v301_v44, 0.0  ;;  %v1040_v30 = vsub.f32 %v821_v39, %v827_v59 }
  0x73   : > { %v313_v35 = vmul.f32 %v1033_v26, %v1033_v26 }
  0x74   : > { %v333_v3 = vadd.f32 %v332_v57, %v331_v0  ;;  %v304_v57 = vmul.f32 %v970_v52, %v970_v52  ;;  %v352_v0 = vsel %vm180_vm0, %v302_v48, 0.0 }
  0x75   : > { %v374_v39 = vsel %vm180_vm0, %v313_v35, 0.0 }
  0x76   : > { %v335_v15 = vadd.f32 %v334_v1, %v333_v3  ;;  %v305_v1 = vmul.f32 %v977_v55, %v977_v55  ;;  %v354_v3 = vsel %vm180_vm0, %v303_v53, 0.0 }
  0x78   : > { %v337_v23 = vadd.f32 %v336_v14, %v335_v15  ;;  %v306_v14 = vmul.f32 %v984_v58, %v984_v58  ;;  %v356_v15 = vsel %vm180_vm0, %v304_v57, 0.0  ;;  %v314_v57 = vmul.f32 %v1040_v30, %v1040_v30 }
  0x7a   : > { %v339_v29 = vadd.f32 %v338_v20, %v337_v23  ;;  %v307_v20 = vmul.f32 %v991_v61, %v991_v61  ;;  %v358_v23 = vsel %vm180_vm0, %v305_v1, 0.0  ;;  %v376_v1 = vsel %vm180_vm0, %v314_v57, 0.0 }
  0x7c   : > { %v341_v36 = vadd.f32 %v340_v24, %v339_v29  ;;  %v308_v24 = vmul.f32 %v998_v4, %v998_v4  ;;  %v360_v29 = vsel %vm180_vm0, %v306_v14, 0.0 }
  0x7e   : > { %v343_v42 = vadd.f32 %v342_v33, %v341_v36  ;;  %v309_v33 = vmul.f32 %v1005_v8, %v1005_v8  ;;  %v362_v36 = vsel %vm180_vm0, %v307_v20, 0.0 }
  0x80   : > { %v345_v47 = vadd.f32 %v344_v41, %v343_v42  ;;  %v310_v41 = vmul.f32 %v1012_v12, %v1012_v12  ;;  %v364_v42 = vsel %vm180_vm0, %v308_v24, 0.0 }
  0x82   : > { %v347_v51 = vadd.f32 %v346_v45, %v345_v47  ;;  %v311_v45 = vmul.f32 %v1019_v17, %v1019_v17  ;;  %v366_v47 = vsel %vm180_vm0, %v309_v33, 0.0 }
  0x84   : > { %v349_v56 = vadd.f32 %v348_v50, %v347_v51  ;;  %v312_v50 = vmul.f32 %v1026_v21, %v1026_v21  ;;  %v368_v51 = vsel %vm180_vm0, %v310_v41, 0.0 }
  0x86   : > { %v351_v9 = vadd.f32 %v350_v54, %v349_v56  ;;  %v370_v54 = vsel %vm180_vm0, %v311_v45, 0.0 }
  0x88   : > { %v353_v11 = vadd.f32 %v352_v0, %v351_v9  ;;  %v372_v0 = vsel %vm180_vm0, %v312_v50, 0.0 }
  0x8a   : > { %v355_v18 = vadd.f32 %v354_v3, %v353_v11 }
  0x8c   : > { %v357_v13 = vadd.f32 %v356_v15, %v355_v18 }
  0x8e   : > { %v359_v32 = vadd.f32 %v358_v23, %v357_v13 }
  0x90   : > { %v361_v38 = vadd.f32 %v360_v29, %v359_v32 }
  0x92   : > { %v363_v44 = vadd.f32 %v362_v36, %v361_v38 }
  0x94   : > { %v365_v48 = vadd.f32 %v364_v42, %v363_v44 }
  0x96   : > { %v367_v53 = vadd.f32 %v366_v47, %v365_v48 }
  0x98   : > { %v369_v56 = vadd.f32 %v368_v51, %v367_v53 }
  0x9a   : > { %v371_v9 = vadd.f32 %v370_v54, %v369_v56 }
  0x9c   : > { %v373_v59 = vadd.f32 %v372_v0, %v371_v9 }
  0x9e   : > { %v375_v3 = vadd.f32 %v374_v39, %v373_v59 }
  0xa0   : > { %v377_v11 = vadd.f32 %v376_v1, %v375_v3 }
  0xa2   : > { %v378_v14 = vrot.slane %v377_v11, 4 }
  0xa4   : > { %v379_v15 = vadd.f32 %v378_v14, %v377_v11 }
  0xa6   : > { %v380_v18 = vrot.slane %v379_v15, 2 }
  0xa8   : > { %v381_v20 = vadd.f32 %v380_v18, %v379_v15 }
  0xaa   : > { %v382_v23 = vrot.slane %v381_v20, 1 }
  0xac   : > { %v383_v13 = vadd.f32 %v382_v23, %v381_v20 }
  0xae   : > { %v384_v24 = vmul.f32 0.00390625, %v383_v13 }
  0xb0   : > { %v385_v29 = vadd.f32 1e-05, %v384_v24 }
  0xb2   : > { %603 = vrsqrt.f32 %v385_v29 }
  0xbc   : > { %v1053_v32 = vpop.eup %603 }
  0xbd   : > { %v387_v33 = vmul.f32 %v1053_v32, %v831_v60  ;;  %v388_v36 = vmul.f32 %v1053_v32, %v835_v62  ;;  %v389_v38 = vmul.f32 %v1053_v32, %v839_v63  ;;  %v390_v41 = vmul.f32 %v1053_v32, %v843_v5 }
  0xbe   : > { %v391_v60 = vmul.f32 %v1053_v32, %v847_v6  ;;  %v392_v62 = vmul.f32 %v1053_v32, %v857_v2  ;;  %v393_v63 = vmul.f32 %v1053_v32, %v863_v7  ;;  %v394_v5 = vmul.f32 %v1053_v32, %v872_v10 }
  0xbf   : > { %v419_v42 = vmax.f32 %v387_v33, 0.0  ;;  %v420_v44 = vmax.f32 %v388_v36, 0.0  ;;  %v421_v45 = vmax.f32 %v389_v38, 0.0  ;;  %v422_v47 = vmax.f32 %v390_v41, 0.0 }
  0xc0   : > { %v423_v48 = vmax.f32 %v391_v60, 0.0  ;;  %v424_v50 = vmax.f32 %v392_v62, 0.0  ;;  %v425_v6 = vmax.f32 %v393_v63, 0.0  ;;  %v426_v51 = vmax.f32 %v394_v5, 0.0 }
  0xc1   : > { %451 = vst.msk [vmem:[%s1068_s16] sm:$0xff] %vm180_vm0, %v419_v42  ;;  %452 = vst.msk [vmem:[%s1068_s16 + $0x8] sm:$0xff] %vm180_vm0, %v420_v44  ;;  %v395_v2 = vmul.f32 %v1053_v32, %v879_v27  ;;  %v396_v7 = vmul.f32 %v1053_v32, %v886_v16  ;;  %v397_v10 = vmul.f32 %v1053_v32, %v893_v19 }
  0xc2   : > { %453 = vst.msk [vmem:[%s1068_s16 + $0x10] sm:$0xff] %vm180_vm0, %v421_v45  ;;  %454 = vst.msk [vmem:[%s1068_s16 + $0x18] sm:$0xff] %vm180_vm0, %v422_v47  ;;  %v398_v53 = vmul.f32 %v1053_v32, %v900_v22  ;;  %v399_v27 = vmul.f32 %v1053_v32, %v907_v25  ;;  %v400_v16 = vmul.f32 %v1053_v32, %v914_v28 }
  0xc3   : > { %455 = vst.msk [vmem:[%s1068_s16 + $0x20] sm:$0xff] %vm180_vm0, %v423_v48  ;;  %456 = vst.msk [vmem:[%s1068_s16 + $0x28] sm:$0xff] %vm180_vm0, %v424_v50  ;;  %v401_v19 = vmul.f32 %v1053_v32, %v921_v31  ;;  %v402_v22 = vmul.f32 %v1053_v32, %v928_v34  ;;  %v427_v35 = vmax.f32 %v395_v2, 0.0  ;;  %v428_v54 = vmax.f32 %v396_v7, 0.0 }
  0xc4   : > { %457 = vst.msk [vmem:[%s1068_s16 + $0x30] sm:$0xff] %vm180_vm0, %v425_v6  ;;  %458 = vst.msk [vmem:[%s1068_s16 + $0x38] sm:$0xff] %vm180_vm0, %v426_v51  ;;  %v429_v56 = vmax.f32 %v397_v10, 0.0  ;;  %v430_v57 = vmax.f32 %v398_v53, 0.0  ;;  %v431_v0 = vmax.f32 %v399_v27, 0.0  ;;  %v432_v9 = vmax.f32 %v400_v16, 0.0 }
  0xc5   : > { %v433_v25 = vmax.f32 %v401_v19, 0.0  ;;  %v434_v39 = vmax.f32 %v402_v22, 0.0  ;;  %459 = vst.msk [vmem:[%s1068_s16 + $0x40] sm:$0xff] %vm180_vm0, %v427_v35  ;;  %460 = vst.msk [vmem:[%s1068_s16 + $0x48] sm:$0xff] %vm180_vm0, %v428_v54  ;;  %v403_v28 = vmul.f32 %v1053_v32, %v935_v37  ;;  %v404_v31 = vmul.f32 %v1053_v32, %v942_v40 }
  0xc6   : > { %461 = vst.msk [vmem:[%s1068_s16 + $0x50] sm:$0xff] %vm180_vm0, %v429_v56  ;;  %462 = vst.msk [vmem:[%s1068_s16 + $0x58] sm:$0xff] %vm180_vm0, %v430_v57  ;;  %v405_v34 = vmul.f32 %v1053_v32, %v949_v43  ;;  %v406_v59 = vmul.f32 %v1053_v32, %v956_v46  ;;  %v407_v37 = vmul.f32 %v1053_v32, %v963_v49 }
  0xc7   : > { %463 = vst.msk [vmem:[%s1068_s16 + $0x60] sm:$0xff] %vm180_vm0, %v431_v0  ;;  %464 = vst.msk [vmem:[%s1068_s16 + $0x68] sm:$0xff] %vm180_vm0, %v432_v9  ;;  %v408_v40 = vmul.f32 %v1053_v32, %v970_v52  ;;  %v409_v43 = vmul.f32 %v1053_v32, %v977_v55  ;;  %v410_v46 = vmul.f32 %v1053_v32, %v984_v58  ;;  %v435_v1 = vmax.f32 %v403_v28, 0.0 }
  0xc8   : > { %465 = vst.msk [vmem:[%s1068_s16 + $0x70] sm:$0xff] %vm180_vm0, %v433_v25  ;;  %466 = vst.msk [vmem:[%s1068_s16 + $0x78] sm:$0xff] %vm180_vm0, %v434_v39  ;;  %v436_v3 = vmax.f32 %v404_v31, 0.0  ;;  %v437_v11 = vmax.f32 %v405_v34, 0.0  ;;  %v438_v14 = vmax.f32 %v406_v59, 0.0  ;;  %v439_v15 = vmax.f32 %v407_v37, 0.0 }
  0xc9   : > { %v440_v18 = vmax.f32 %v408_v40, 0.0  ;;  %v441_v49 = vmax.f32 %v409_v43, 0.0  ;;  %v442_v20 = vmax.f32 %v410_v46, 0.0  ;;  %467 = vst.msk [vmem:[%s1068_s16 + $0x80] sm:$0xff] %vm180_vm0, %v435_v1  ;;  %v411_v52 = vmul.f32 %v1053_v32, %v991_v61 }
  0xca   : > { %468 = vst.msk [vmem:[%s1068_s16 + $0x88] sm:$0xff] %vm180_vm0, %v436_v3  ;;  %469 = vst.msk [vmem:[%s1068_s16 + $0x90] sm:$0xff] %vm180_vm0, %v437_v11  ;;  %v412_v55 = vmul.f32 %v1053_v32, %v998_v4  ;;  %v413_v58 = vmul.f32 %v1053_v32, %v1005_v8  ;;  %v414_v23 = vmul.f32 %v1053_v32, %v1012_v12 }
  0xcb   : > { %470 = vst.msk [vmem:[%s1068_s16 + $0x98] sm:$0xff] %vm180_vm0, %v438_v14  ;;  %471 = vst.msk [vmem:[%s1068_s16 + $0xa0] sm:$0xff] %vm180_vm0, %v439_v15  ;;  %v415_v61 = vmul.f32 %v1053_v32, %v1019_v17  ;;  %v416_v4 = vmul.f32 %v1053_v32, %v1026_v21  ;;  %v417_v8 = vmul.f32 %v1053_v32, %v1033_v26  ;;  %v443_v13 = vmax.f32 %v411_v52, 0.0 }
  0xcc   : > { %472 = vst.msk [vmem:[%s1068_s16 + $0xa8] sm:$0xff] %vm180_vm0, %v440_v18  ;;  %473 = vst.msk [vmem:[%s1068_s16 + $0xb0] sm:$0xff] %vm180_vm0, %v441_v49  ;;  %v418_v12 = vmul.f32 %v1053_v32, %v1040_v30  ;;  %v444_v24 = vmax.f32 %v412_v55, 0.0  ;;  %v445_v29 = vmax.f32 %v413_v58, 0.0  ;;  %v446_v33 = vmax.f32 %v414_v23, 0.0 }
  0xcd   : > { %474 = vst.msk [vmem:[%s1068_s16 + $0xb8] sm:$0xff] %vm180_vm0, %v442_v20  ;;  %v447_v36 = vmax.f32 %v415_v61, 0.0  ;;  %v448_v38 = vmax.f32 %v416_v4, 0.0  ;;  %v449_v17 = vmax.f32 %v417_v8, 0.0  ;;  %475 = vst.msk [vmem:[%s1068_s16 + $0xc0] sm:$0xff] %vm180_vm0, %v443_v13 }
  0xce   : > { %v450_v41 = vmax.f32 %v418_v12, 0.0  ;;  %476 = vst.msk [vmem:[%s1068_s16 + $0xc8] sm:$0xff] %vm180_vm0, %v444_v24  ;;  %477 = vst.msk [vmem:[%s1068_s16 + $0xd0] sm:$0xff] %vm180_vm0, %v445_v29 }
  0xcf   : > { %478 = vst.msk [vmem:[%s1068_s16 + $0xd8] sm:$0xff] %vm180_vm0, %v446_v33  ;;  %479 = vst.msk [vmem:[%s1068_s16 + $0xe0] sm:$0xff] %vm180_vm0, %v447_v36 }
  0xd0   : > { %480 = vst.msk [vmem:[%s1068_s16 + $0xe8] sm:$0xff] %vm180_vm0, %v448_v38  ;;  %481 = vst.msk [vmem:[%s1068_s16 + $0xf0] sm:$0xff] %vm180_vm0, %v449_v17 }
  0xd1   : > { %482 = vst.msk [vmem:[%s1068_s16 + $0xf8] sm:$0xff] %vm180_vm0, %v450_v41 }
  0xd2 PF: > { %s11_s8 = sadd.s32 1, %s627_s8   ;;  %s1201_s6 = smov %s623_s7 }
  0xd3   : > { %p8_p5 = scmp.ge.s32.totalorder %s11_s8, 4   ;;  %s1202_s7 = smov %s1204_s9 }
  0xd5   :  { %10 = sbr.rel (!%p8_p5) target bundleno = 2 (0x2), region = 54 }

// kernel: generator_forward.25
= control target key start
LH: loop header
LB: loop body
LE: loop exit
PB: predicated region body
PF: predicated region fallthrough
CT: control target
= control target key end

     0   :  { %s1426_s12 = smov 0   ;;  %s1428_s13 = smov 0   ;;  %s1619_s0 = inlined_call_operand.vmem [shape: bf16[512,256], index: 0, kind: input, shape index: {}]   ;;  %s1620_s1 = inlined_call_operand.vmem [shape: bf16[256,128], index: 1, kind: input, shape index: {}]   ;;  %s1621_s2 = inlined_call_operand.vmem [shape: f32[1,128], index: 2, kind: input, shape index: {}]   ;;  %s1622_s3 = inlined_call_operand.vmem [shape: f32[512,128], index: 3, kind: output, shape index: {}]  }
   0x1   :  { %s1430_s14 = smov 0  }
   0x2 LB: > { %s32_s15 = sadd.s32 1, %s1400_s13  ;;  %p1107_p0 = scmp.ge.s32.totalorder %s1404_s14, 1  ;;  %s1404_s14 = sphi %s1430_s14, %s13_s14   ;;  %s1400_s13 = sphi %s1428_s13, %s1624_s13   ;;  %s1396_s12 = sphi %s1426_s12, %s1623_s12  }
   0x3   : > { %p34_p1 = scmp.ge.s32.totalorder %s32_s15, 2  ;;  %p191_p2 = scmp.lt.s32.totalorder %s1404_s14, 3 }
   0x5   : > { %s1626_s15 = smov (%p34_p1, %s32_s15), 0  ;;  %p192_p3 = pnand %p1107_p0, %p191_p2 }
   0x6   : > { %v1318_v0 = vld [vmem:[%s1620_s1 + $0x40] sm:$0xff] (!%p192_p3)   ;;  %s1108_s18 = sshll.u32 (!%p192_p3), %s1396_s12, 5  ;;  %v1320_v2 = vld [vmem:[%s1620_s1 + $0x48] sm:$0xff] (!%p192_p3)   ;;  %v1322_v4 = vld [vmem:[%s1620_s1 + $0x50] sm:$0xff] (!%p192_p3)  }
   0x7   : > { %195 = sbr.rel (%p192_p3) target bundleno = 315 (0x13b), region = 32  ;;  %v1319_v1 = vld [vmem:[%s1620_s1] sm:$0xff] (!%p192_p3)   ;;  %1165 = vmatprep.subr.bf16.mxu0 (!%p192_p3), %v1318_v0  ;;  %1277 = vmatprep.subr.bf16.mxu1 (!%p192_p3), %v1318_v0  ;;  %v1321_v3 = vld [vmem:[%s1620_s1 + $0x8] sm:$0xff] (!%p192_p3)   ;;  %p236_p4 = scmp.lt.s32.totalorder (!%p192_p3), %s1108_s18, 63  ;;  %v1323_v5 = vld [vmem:[%s1620_s1 + $0x10] sm:$0xff] (!%p192_p3)  }
   0x8   : > { %1166 = vmatpush3.bf16.msra.mxu0 (!%p192_p3), %v1319_v1  ;;  %1285 = vmatpush3.bf16.msra.mxu1 (!%p192_p3), %v1319_v1  ;;  %v1324_v6 = vld [vmem:[%s1620_s1 + $0x58] sm:$0xff] (!%p192_p3)   ;;  %v1326_v8 = vld [vmem:[%s1620_s1 + $0x60] sm:$0xff] (!%p192_p3)   ;;  %v1328_v10 = vld [vmem:[%s1620_s1 + $0x68] sm:$0xff] (!%p192_p3)  }
   0x9   : > { %1167 = vmatprep.subr.bf16.mxu0 (!%p192_p3), %v1320_v2  ;;  %1278 = vmatprep.subr.bf16.mxu1 (!%p192_p3), %v1320_v2  ;;  %v1325_v7 = vld [vmem:[%s1620_s1 + $0x18] sm:$0xff] (!%p192_p3)   ;;  %v1327_v9 = vld [vmem:[%s1620_s1 + $0x20] sm:$0xff] (!%p192_p3)   ;;  %v1329_v13 = vld [vmem:[%s1620_s1 + $0x28] sm:$0xff] (!%p192_p3)  }
   0xa   : > { %v1330_v14 = vld [vmem:[%s1620_s1 + $0x70] sm:$0xff] (!%p192_p3)   ;;  %v1332_v16 = vld [vmem:[%s1620_s1 + $0x78] sm:$0xff] (!%p192_p3)   ;;  %v1537_v56 = vld [vmem:[%s1621_s2] ss:$0 sm:$0xff] (!%p192_p3) }
   0xb   : > { %v1331_v15 = vld [vmem:[%s1620_s1 + $0x30] sm:$0xff] (!%p192_p3)   ;;  %v1333_v17 = vld [vmem:[%s1620_s1 + $0x38] sm:$0xff] (!%p192_p3)  }
   0xc   : > { %1168 = vmatpush3.bf16.msra.mxu0 (!%p192_p3), %v1321_v3  ;;  %1286 = vmatpush3.bf16.msra.mxu1 (!%p192_p3), %v1321_v3 }
   0xd   : > { %1169 = vmatprep.subr.bf16.mxu0 (!%p192_p3), %v1322_v4  ;;  %1279 = vmatprep.subr.bf16.mxu1 (!%p192_p3), %v1322_v4 }
   0xe   : > { %s1628_s18 = smov (!%p236_p4, %s1108_s18), 63 }
   0xf   : > { %s1164_s6 = sshll.u32 %s1628_s18, 3 }
  0x10   : > { %1170 = vmatpush3.bf16.msra.mxu0 %v1323_v5  ;;  %1287 = vmatpush3.bf16.msra.mxu1 %v1323_v5  ;;  %s1479_s11 = scalar_lea.vmem %s1619_s0, %s1164_s6  ;;  %s1544_s8 = scalar_lea.vmem %s1622_s3, %s1164_s6 }
  0x11   : > { %1171 = vmatprep.subr.bf16.mxu0 %v1324_v6  ;;  %1280 = vmatprep.subr.bf16.mxu1 %v1324_v6  ;;  %v1336_v11 = vld [vmem:[%s1479_s11 + $0x4] ss:$8 sps:$4 sm:$0xff]   ;;  %v1334_v18 = vld [vmem:[%s1479_s11] ss:$8 sps:$4 sm:$0xff]   ;;  %v1340_v20 = vld [vmem:[%s1479_s11 + $0x14] ss:$8 sps:$4 sm:$0xff]  }
  0x12   : > { %v1339_v12 = vld [vmem:[%s1479_s11 + $0x84] ss:$8 sps:$4 sm:$0xff]   ;;  %688 = vmatprep.mubr.bf16.mxu0 %v1336_v11  ;;  %v1337_v19 = vld [vmem:[%s1479_s11 + $0x80] ss:$8 sps:$4 sm:$0xff]   ;;  %v1342_v21 = vld [vmem:[%s1479_s11 + $0x94] ss:$8 sps:$4 sm:$0xff]  }
  0x13   : > { %752 = vmatprep.mubr.bf16.mxu1 %v1339_v12  ;;  %v1344_v22 = vld [vmem:[%s1479_s11 + $0x10] ss:$8 sps:$4 sm:$0xff]   ;;  %v1346_v24 = vld [vmem:[%s1479_s11 + $0x24] ss:$8 sps:$4 sm:$0xff]   ;;  %v1350_v26 = vld [vmem:[%s1479_s11 + $0x20] ss:$8 sps:$4 sm:$0xff]  }
  0x14   : > { %1172 = vmatpush3.bf16.msra.mxu0 %v1325_v7  ;;  %1288 = vmatpush3.bf16.msra.mxu1 %v1325_v7  ;;  %v1345_v23 = vld [vmem:[%s1479_s11 + $0x90] ss:$8 sps:$4 sm:$0xff]   ;;  %v1348_v25 = vld [vmem:[%s1479_s11 + $0xa4] ss:$8 sps:$4 sm:$0xff]   ;;  %v1351_v27 = vld [vmem:[%s1479_s11 + $0xa0] ss:$8 sps:$4 sm:$0xff]  }
  0x15   : > { %1173 = vmatprep.subr.bf16.mxu0 %v1326_v8  ;;  %1281 = vmatprep.subr.bf16.mxu1 %v1326_v8  ;;  %v1352_v28 = vld [vmem:[%s1479_s11 + $0x34] ss:$8 sps:$4 sm:$0xff]   ;;  %v1356_v30 = vld [vmem:[%s1479_s11 + $0x30] ss:$8 sps:$4 sm:$0xff]   ;;  %v1358_v32 = vld [vmem:[%s1479_s11 + $0x44] ss:$8 sps:$4 sm:$0xff]  }
  0x16   : > { %v1354_v29 = vld [vmem:[%s1479_s11 + $0xb4] ss:$8 sps:$4 sm:$0xff]   ;;  %v1357_v31 = vld [vmem:[%s1479_s11 + $0xb0] ss:$8 sps:$4 sm:$0xff]   ;;  %v1360_v33 = vld [vmem:[%s1479_s11 + $0xc4] ss:$8 sps:$4 sm:$0xff]  }
  0x17   : > { %v1362_v34 = vld [vmem:[%s1479_s11 + $0x40] ss:$8 sps:$4 sm:$0xff]   ;;  %v1364_v36 = vld [vmem:[%s1479_s11 + $0x54] ss:$8 sps:$4 sm:$0xff]   ;;  %v1368_v38 = vld [vmem:[%s1479_s11 + $0x50] ss:$8 sps:$4 sm:$0xff]  }
  0x18   : > { %1174 = vmatpush3.bf16.msra.mxu0 %v1327_v9  ;;  %1289 = vmatpush3.bf16.msra.mxu1 %v1327_v9  ;;  %v1363_v35 = vld [vmem:[%s1479_s11 + $0xc0] ss:$8 sps:$4 sm:$0xff]   ;;  %v1366_v37 = vld [vmem:[%s1479_s11 + $0xd4] ss:$8 sps:$4 sm:$0xff]   ;;  %v1369_v39 = vld [vmem:[%s1479_s11 + $0xd0] ss:$8 sps:$4 sm:$0xff]  }
  0x19   : > { %1175 = vmatprep.subr.bf16.mxu0 %v1328_v10  ;;  %1282 = vmatprep.subr.bf16.mxu1 %v1328_v10  ;;  %v1370_v40 = vld [vmem:[%s1479_s11 + $0x64] ss:$8 sps:$4 sm:$0xff]   ;;  %v1374_v42 = vld [vmem:[%s1479_s11 + $0x60] ss:$8 sps:$4 sm:$0xff]   ;;  %v1376_v44 = vld [vmem:[%s1479_s11 + $0x74] ss:$8 sps:$4 sm:$0xff]  }
  0x1a   : > { %v1372_v41 = vld [vmem:[%s1479_s11 + $0xe4] ss:$8 sps:$4 sm:$0xff]   ;;  %v1375_v43 = vld [vmem:[%s1479_s11 + $0xe0] ss:$8 sps:$4 sm:$0xff]   ;;  %v1378_v45 = vld [vmem:[%s1479_s11 + $0xf4] ss:$8 sps:$4 sm:$0xff]  }
  0x1b   : > { %v1380_v46 = vld [vmem:[%s1479_s11 + $0x70] ss:$8 sps:$4 sm:$0xff]  }
  0x1c   : > { %1176 = vmatpush3.bf16.msra.mxu0 %v1329_v13  ;;  %1290 = vmatpush3.bf16.msra.mxu1 %v1329_v13  ;;  %v1381_v47 = vld [vmem:[%s1479_s11 + $0xf0] ss:$8 sps:$4 sm:$0xff]  }
  0x1d   : > { %1177 = vmatprep.subr.bf16.mxu0 %v1330_v14  ;;  %1283 = vmatprep.subr.bf16.mxu1 %v1330_v14 }
  0x20   : > { %1178 = vmatpush3.bf16.msra.mxu0 %v1331_v15  ;;  %1291 = vmatpush3.bf16.msra.mxu1 %v1331_v15 }
  0x21   : > { %1179 = vmatprep.subr.bf16.mxu0 %v1332_v16  ;;  %1284 = vmatprep.subr.bf16.mxu1 %v1332_v16 }
  0x24   : > { %1180 = vmatpush3.bf16.msra.mxu0 %v1333_v17  ;;  %1292 = vmatpush3.bf16.msra.mxu1 %v1333_v17 }
  0x27   : > { %689 = vmatmul.mubr.bf16.vlgmr.msra.gmra.mrb[0].mxu0 %v1334_v18  ;;  %753 = vmatmul.mubr.bf16.vlgmr.msra.gmra.mrb[0].mxu1 %v1337_v19 }
  0x28   : > { %696 = vmatprep.mubr.bf16.mxu0 %v1340_v20  ;;  %760 = vmatprep.mubr.bf16.mxu1 %v1342_v21 }
  0x2f   : > { %697 = vmatmul.mubr.bf16.gmra.mrb[4].mxu0 %v1344_v22  ;;  %761 = vmatmul.mubr.bf16.gmra.mrb[4].mxu1 %v1345_v23 }
  0x30   : > { %704 = vmatprep.mubr.bf16.mxu0 %v1346_v24  ;;  %768 = vmatprep.mubr.bf16.mxu1 %v1348_v25 }
  0x37   : > { %705 = vmatmul.mubr.bf16.gmra.mrb[8].mxu0 %v1350_v26  ;;  %769 = vmatmul.mubr.bf16.gmra.mrb[8].mxu1 %v1351_v27 }
  0x38   : > { %712 = vmatprep.mubr.bf16.mxu0 %v1352_v28  ;;  %776 = vmatprep.mubr.bf16.mxu1 %v1354_v29 }
  0x3f   : > { %713 = vmatmul.mubr.bf16.gmra.mrb[12].mxu0 %v1356_v30  ;;  %777 = vmatmul.mubr.bf16.gmra.mrb[12].mxu1 %v1357_v31 }
  0x40   : > { %720 = vmatprep.mubr.bf16.mxu0 %v1358_v32  ;;  %784 = vmatprep.mubr.bf16.mxu1 %v1360_v33 }
  0x47   : > { %721 = vmatmul.mubr.bf16.gmra.mrb[16].mxu0 %v1362_v34  ;;  %785 = vmatmul.mubr.bf16.gmra.mrb[16].mxu1 %v1363_v35 }
  0x48   : > { %728 = vmatprep.mubr.bf16.mxu0 %v1364_v36  ;;  %792 = vmatprep.mubr.bf16.mxu1 %v1366_v37 }
  0x4f   : > { %729 = vmatmul.mubr.bf16.gmra.mrb[20].mxu0 %v1368_v38  ;;  %793 = vmatmul.mubr.bf16.gmra.mrb[20].mxu1 %v1369_v39 }
  0x50   : > { %736 = vmatprep.mubr.bf16.mxu0 %v1370_v40  ;;  %800 = vmatprep.mubr.bf16.mxu1 %v1372_v41 }
  0x57   : > { %737 = vmatmul.mubr.bf16.gmra.mrb[24].mxu0 %v1374_v42  ;;  %801 = vmatmul.mubr.bf16.gmra.mrb[24].mxu1 %v1375_v43 }
  0x58   : > { %744 = vmatprep.mubr.bf16.mxu0 %v1376_v44  ;;  %808 = vmatprep.mubr.bf16.mxu1 %v1378_v45 }
  0x5f   : > { %745 = vmatmul.mubr.bf16.gmra.mrb[28].mxu0 %v1380_v46  ;;  %809 = vmatmul.mubr.bf16.gmra.mrb[28].mxu1 %v1381_v47 }
  0xfa   : > { %v1181_v48 = vpop.f32.mrb[0].mxu0  ;;  %v1229_v49 = vpop.f32.mrb[0].mxu1 }
  0xfb   : > { %v1182_v50 = vpop.f32.mrb[1].mxu0  ;;  %v1230_v51 = vpop.f32.mrb[1].mxu1 }
  0xfc   : > { %v1183_v52 = vadd.f32 %v1182_v50, %v1181_v48  ;;  %v1231_v53 = vadd.f32 %v1230_v51, %v1229_v49  ;;  %v1184_v54 = vpop.f32.mrb[2].mxu0  ;;  %v1232_v55 = vpop.f32.mrb[2].mxu1 }
  0xfd   : > { %v1185_v57 = vpop.f32.mrb[3].mxu0  ;;  %v1233_v58 = vpop.f32.mrb[3].mxu1 }
  0xfe   : > { %v1186_v59 = vadd.f32 %v1185_v57, %v1184_v54  ;;  %v1234_v60 = vadd.f32 %v1233_v58, %v1232_v55  ;;  %v923_v61 = vadd.f32 %v1183_v52, %v1537_v56  ;;  %v939_v62 = vadd.f32 %v1231_v53, %v1537_v56 }
 0x100   : > { %955 = vst [vmem:[%s1544_s8] sm:$0xff] %v923_v61  ;;  %971 = vst [vmem:[%s1544_s8 + $0x80] sm:$0xff] %v939_v62  ;;  %v924_v63 = vadd.f32 %v1186_v59, %v1537_v56  ;;  %v940_v0 = vadd.f32 %v1234_v60, %v1537_v56 }
 0x102   : > { %v1187_v1 = vpop.f32.mrb[4].mxu0  ;;  %v1235_v2 = vpop.f32.mrb[4].mxu1  ;;  %956 = vst [vmem:[%s1544_s8 + $0x8] sm:$0xff] %v924_v63  ;;  %972 = vst [vmem:[%s1544_s8 + $0x88] sm:$0xff] %v940_v0 }
 0x103   : > { %v1188_v3 = vpop.f32.mrb[5].mxu0  ;;  %v1236_v4 = vpop.f32.mrb[5].mxu1 }
 0x104   : > { %v1189_v5 = vadd.f32 %v1188_v3, %v1187_v1  ;;  %v1237_v6 = vadd.f32 %v1236_v4, %v1235_v2  ;;  %v1190_v7 = vpop.f32.mrb[6].mxu0  ;;  %v1238_v8 = vpop.f32.mrb[6].mxu1 }
 0x105   : > { %v1191_v9 = vpop.f32.mrb[7].mxu0  ;;  %v1239_v10 = vpop.f32.mrb[7].mxu1 }
 0x106   : > { %v1192_v11 = vadd.f32 %v1191_v9, %v1190_v7  ;;  %v1240_v12 = vadd.f32 %v1239_v10, %v1238_v8  ;;  %v925_v13 = vadd.f32 %v1189_v5, %v1537_v56  ;;  %v941_v14 = vadd.f32 %v1237_v6, %v1537_v56 }
 0x108   : > { %957 = vst [vmem:[%s1544_s8 + $0x10] sm:$0xff] %v925_v13  ;;  %973 = vst [vmem:[%s1544_s8 + $0x90] sm:$0xff] %v941_v14  ;;  %v926_v15 = vadd.f32 %v1192_v11, %v1537_v56  ;;  %v942_v16 = vadd.f32 %v1240_v12, %v1537_v56 }
 0x10a   : > { %v1193_v17 = vpop.f32.mrb[8].mxu0  ;;  %v1241_v18 = vpop.f32.mrb[8].mxu1  ;;  %958 = vst [vmem:[%s1544_s8 + $0x18] sm:$0xff] %v926_v15  ;;  %974 = vst [vmem:[%s1544_s8 + $0x98] sm:$0xff] %v942_v16 }
 0x10b   : > { %v1194_v19 = vpop.f32.mrb[9].mxu0  ;;  %v1242_v20 = vpop.f32.mrb[9].mxu1 }
 0x10c   : > { %v1195_v21 = vadd.f32 %v1194_v19, %v1193_v17  ;;  %v1243_v22 = vadd.f32 %v1242_v20, %v1241_v18  ;;  %v1196_v23 = vpop.f32.mrb[10].mxu0  ;;  %v1244_v24 = vpop.f32.mrb[10].mxu1 }
 0x10d   : > { %v1197_v25 = vpop.f32.mrb[11].mxu0  ;;  %v1245_v26 = vpop.f32.mrb[11].mxu1 }
 0x10e   : > { %v1198_v27 = vadd.f32 %v1197_v25, %v1196_v23  ;;  %v1246_v28 = vadd.f32 %v1245_v26, %v1244_v24  ;;  %v927_v29 = vadd.f32 %v1195_v21, %v1537_v56  ;;  %v943_v30 = vadd.f32 %v1243_v22, %v1537_v56 }
 0x110   : > { %959 = vst [vmem:[%s1544_s8 + $0x20] sm:$0xff] %v927_v29  ;;  %975 = vst [vmem:[%s1544_s8 + $0xa0] sm:$0xff] %v943_v30  ;;  %v928_v31 = vadd.f32 %v1198_v27, %v1537_v56  ;;  %v944_v32 = vadd.f32 %v1246_v28, %v1537_v56 }
 0x112   : > { %v1199_v33 = vpop.f32.mrb[12].mxu0  ;;  %v1247_v34 = vpop.f32.mrb[12].mxu1  ;;  %960 = vst [vmem:[%s1544_s8 + $0x28] sm:$0xff] %v928_v31  ;;  %976 = vst [vmem:[%s1544_s8 + $0xa8] sm:$0xff] %v944_v32 }
 0x113   : > { %v1200_v35 = vpop.f32.mrb[13].mxu0  ;;  %v1248_v36 = vpop.f32.mrb[13].mxu1 }
 0x114   : > { %v1201_v37 = vadd.f32 %v1200_v35, %v1199_v33  ;;  %v1249_v38 = vadd.f32 %v1248_v36, %v1247_v34  ;;  %v1202_v39 = vpop.f32.mrb[14].mxu0  ;;  %v1250_v40 = vpop.f32.mrb[14].mxu1 }
 0x115   : > { %v1203_v41 = vpop.f32.mrb[15].mxu0  ;;  %v1251_v42 = vpop.f32.mrb[15].mxu1 }
 0x116   : > { %v1204_v43 = vadd.f32 %v1203_v41, %v1202_v39  ;;  %v1252_v44 = vadd.f32 %v1251_v42, %v1250_v40  ;;  %v929_v45 = vadd.f32 %v1201_v37, %v1537_v56  ;;  %v945_v46 = vadd.f32 %v1249_v38, %v1537_v56 }
 0x118   : > { %961 = vst [vmem:[%s1544_s8 + $0x30] sm:$0xff] %v929_v45  ;;  %977 = vst [vmem:[%s1544_s8 + $0xb0] sm:$0xff] %v945_v46  ;;  %v930_v47 = vadd.f32 %v1204_v43, %v1537_v56  ;;  %v946_v48 = vadd.f32 %v1252_v44, %v1537_v56 }
 0x11a   : > { %v1205_v49 = vpop.f32.mrb[16].mxu0  ;;  %v1253_v50 = vpop.f32.mrb[16].mxu1  ;;  %962 = vst [vmem:[%s1544_s8 + $0x38] sm:$0xff] %v930_v47  ;;  %978 = vst [vmem:[%s1544_s8 + $0xb8] sm:$0xff] %v946_v48 }
 0x11b   : > { %v1206_v51 = vpop.f32.mrb[17].mxu0  ;;  %v1254_v52 = vpop.f32.mrb[17].mxu1 }
 0x11c   : > { %v1207_v53 = vadd.f32 %v1206_v51, %v1205_v49  ;;  %v1255_v54 = vadd.f32 %v1254_v52, %v1253_v50  ;;  %v1208_v55 = vpop.f32.mrb[18].mxu0  ;;  %v1256_v57 = vpop.f32.mrb[18].mxu1 }
 0x11d   : > { %v1209_v58 = vpop.f32.mrb[19].mxu0  ;;  %v1257_v59 = vpop.f32.mrb[19].mxu1 }
 0x11e   : > { %v1210_v60 = vadd.f32 %v1209_v58, %v1208_v55  ;;  %v1258_v61 = vadd.f32 %v1257_v59, %v1256_v57  ;;  %v931_v62 = vadd.f32 %v1207_v53, %v1537_v56  ;;  %v947_v63 = vadd.f32 %v1255_v54, %v1537_v56 }
 0x120   : > { %963 = vst [vmem:[%s1544_s8 + $0x40] sm:$0xff] %v931_v62  ;;  %979 = vst [vmem:[%s1544_s8 + $0xc0] sm:$0xff] %v947_v63  ;;  %v932_v0 = vadd.f32 %v1210_v60, %v1537_v56  ;;  %v948_v1 = vadd.f32 %v1258_v61, %v1537_v56 }
 0x122   : > { %v1211_v2 = vpop.f32.mrb[20].mxu0  ;;  %v1259_v3 = vpop.f32.mrb[20].mxu1  ;;  %964 = vst [vmem:[%s1544_s8 + $0x48] sm:$0xff] %v932_v0  ;;  %980 = vst [vmem:[%s1544_s8 + $0xc8] sm:$0xff] %v948_v1 }
 0x123   : > { %v1212_v4 = vpop.f32.mrb[21].mxu0  ;;  %v1260_v5 = vpop.f32.mrb[21].mxu1 }
 0x124   : > { %v1213_v6 = vadd.f32 %v1212_v4, %v1211_v2  ;;  %v1261_v7 = vadd.f32 %v1260_v5, %v1259_v3  ;;  %v1214_v8 = vpop.f32.mrb[22].mxu0  ;;  %v1262_v9 = vpop.f32.mrb[22].mxu1 }
 0x125   : > { %v1215_v10 = vpop.f32.mrb[23].mxu0  ;;  %v1263_v11 = vpop.f32.mrb[23].mxu1 }
 0x126   : > { %v1216_v12 = vadd.f32 %v1215_v10, %v1214_v8  ;;  %v1264_v13 = vadd.f32 %v1263_v11, %v1262_v9  ;;  %v933_v14 = vadd.f32 %v1213_v6, %v1537_v56  ;;  %v949_v15 = vadd.f32 %v1261_v7, %v1537_v56 }
 0x128   : > { %965 = vst [vmem:[%s1544_s8 + $0x50] sm:$0xff] %v933_v14  ;;  %981 = vst [vmem:[%s1544_s8 + $0xd0] sm:$0xff] %v949_v15  ;;  %v934_v16 = vadd.f32 %v1216_v12, %v1537_v56  ;;  %v950_v17 = vadd.f32 %v1264_v13, %v1537_v56 }
 0x12a   : > { %v1217_v18 = vpop.f32.mrb[24].mxu0  ;;  %v1265_v19 = vpop.f32.mrb[24].mxu1  ;;  %966 = vst [vmem:[%s1544_s8 + $0x58] sm:$0xff] %v934_v16  ;;  %982 = vst [vmem:[%s1544_s8 + $0xd8] sm:$0xff] %v950_v17 }
 0x12b   : > { %v1218_v20 = vpop.f32.mrb[25].mxu0  ;;  %v1266_v21 = vpop.f32.mrb[25].mxu1 }
 0x12c   : > { %v1219_v22 = vadd.f32 %v1218_v20, %v1217_v18  ;;  %v1267_v23 = vadd.f32 %v1266_v21, %v1265_v19  ;;  %v1220_v24 = vpop.f32.mrb[26].mxu0  ;;  %v1268_v25 = vpop.f32.mrb[26].mxu1 }
 0x12d   : > { %v1221_v26 = vpop.f32.mrb[27].mxu0  ;;  %v1269_v27 = vpop.f32.mrb[27].mxu1 }
 0x12e   : > { %v1222_v28 = vadd.f32 %v1221_v26, %v1220_v24  ;;  %v1270_v29 = vadd.f32 %v1269_v27, %v1268_v25  ;;  %v935_v30 = vadd.f32 %v1219_v22, %v1537_v56  ;;  %v951_v31 = vadd.f32 %v1267_v23, %v1537_v56 }
 0x130   : > { %967 = vst [vmem:[%s1544_s8 + $0x60] sm:$0xff] %v935_v30  ;;  %983 = vst [vmem:[%s1544_s8 + $0xe0] sm:$0xff] %v951_v31  ;;  %v936_v32 = vadd.f32 %v1222_v28, %v1537_v56  ;;  %v952_v33 = vadd.f32 %v1270_v29, %v1537_v56 }
 0x132   : > { %v1223_v34 = vpop.f32.mrb[28].mxu0  ;;  %v1271_v35 = vpop.f32.mrb[28].mxu1  ;;  %968 = vst [vmem:[%s1544_s8 + $0x68] sm:$0xff] %v936_v32  ;;  %984 = vst [vmem:[%s1544_s8 + $0xe8] sm:$0xff] %v952_v33 }
 0x133   : > { %v1224_v36 = vpop.f32.mrb[29].mxu0  ;;  %v1272_v37 = vpop.f32.mrb[29].mxu1 }
 0x134   : > { %v1225_v38 = vadd.f32 %v1224_v36, %v1223_v34  ;;  %v1273_v39 = vadd.f32 %v1272_v37, %v1271_v35  ;;  %v1226_v40 = vpop.f32.mrb[30].mxu0  ;;  %v1274_v41 = vpop.f32.mrb[30].mxu1 }
 0x135   : > { %v1227_v42 = vpop.f32.mrb[31].mxu0  ;;  %v1275_v43 = vpop.f32.mrb[31].mxu1 }
 0x136   : > { %v1228_v44 = vadd.f32 %v1227_v42, %v1226_v40  ;;  %v1276_v45 = vadd.f32 %v1275_v43, %v1274_v41  ;;  %v937_v46 = vadd.f32 %v1225_v38, %v1537_v56  ;;  %v953_v47 = vadd.f32 %v1273_v39, %v1537_v56 }
 0x138   : > { %969 = vst [vmem:[%s1544_s8 + $0x70] sm:$0xff] %v937_v46  ;;  %985 = vst [vmem:[%s1544_s8 + $0xf0] sm:$0xff] %v953_v47  ;;  %v938_v48 = vadd.f32 %v1228_v44, %v1537_v56  ;;  %v954_v49 = vadd.f32 %v1276_v45, %v1537_v56 }
 0x13a   : > { %970 = vst [vmem:[%s1544_s8 + $0x78] sm:$0xff] %v938_v48  ;;  %986 = vst [vmem:[%s1544_s8 + $0xf8] sm:$0xff] %v954_v49 }
 0x13b PF: > { %s13_s14 = sadd.s32 1, %s1404_s14   ;;  %s1623_s12 = smov %s1400_s13 }
 0x13c   : > { %p10_p5 = scmp.ge.s32.totalorder %s13_s14, 4   ;;  %s1624_s13 = smov %s1626_s15 }
 0x13e   :  { %12 = sbr.rel (!%p10_p5) target bundleno = 2 (0x2), region = 76 }

// kernel: generator_forward.27
= control target key start
LH: loop header
LB: loop body
LE: loop exit
PB: predicated region body
PF: predicated region fallthrough
CT: control target
= control target key end

     0   :  { %s587_s1 = inlined_call_operand.vmem [shape: bf16[128,128], index: 1, kind: input, shape index: {}]   ;;  %s588_s0 = inlined_call_operand.vmem [shape: bf16[128,128], index: 0, kind: input, shape index: {}]   ;;  %s589_s2 = inlined_call_operand.vmem [shape: f32[1,128], index: 2, kind: input, shape index: {}]   ;;  %s590_s3 = inlined_call_operand.vmem [shape: f32[128,128], index: 3, kind: output, shape index: {}]  }
   0x1   :  { %v452_v0 = vld [vmem:[%s587_s1] sm:$0xff]   ;;  %v453_v1 = vld [vmem:[%s587_s1 + $0x8] sm:$0xff]   ;;  %v454_v2 = vld [vmem:[%s587_s1 + $0x10] sm:$0xff]  }
   0x2   :  { %403 = vmatprep.subr.bf16.mxu0 %v452_v0  ;;  %435 = vmatprep.subr.bf16.mxu1 %v452_v0  ;;  %v455_v3 = vld [vmem:[%s587_s1 + $0x18] sm:$0xff]   ;;  %v460_v4 = vld [vmem:[%s588_s0] sm:$0xff]   ;;  %v457_v7 = vld [vmem:[%s587_s1 + $0x28] sm:$0xff]  }
   0x3   :  { %404 = vmatpush3.bf16.msra.mxu0 %v452_v0  ;;  %443 = vmatpush3.bf16.msra.mxu1 %v452_v0  ;;  %v461_v5 = vld [vmem:[%s588_s0 + $0x20] sm:$0xff]   ;;  %v458_v8 = vld [vmem:[%s587_s1 + $0x30] sm:$0xff]   ;;  %v459_v9 = vld [vmem:[%s587_s1 + $0x38] sm:$0xff]  }
   0x4   :  { %405 = vmatprep.subr.bf16.mxu0 %v453_v1  ;;  %436 = vmatprep.subr.bf16.mxu1 %v453_v1  ;;  %v456_v6 = vld [vmem:[%s587_s1 + $0x20] sm:$0xff]   ;;  %v462_v10 = vld [vmem:[%s588_s0 + $0x8] sm:$0xff]   ;;  %v464_v12 = vld [vmem:[%s588_s0 + $0x10] sm:$0xff]  }
   0x5   :  { %419 = vmatprep.mubr.bf16.mxu0 %v460_v4  ;;  %427 = vmatprep.mubr.bf16.mxu1 %v461_v5  ;;  %v463_v11 = vld [vmem:[%s588_s0 + $0x28] sm:$0xff]   ;;  %v465_v13 = vld [vmem:[%s588_s0 + $0x30] sm:$0xff]   ;;  %v466_v14 = vld [vmem:[%s588_s0 + $0x18] sm:$0xff]  }
   0x6   :  { %v467_v15 = vld [vmem:[%s588_s0 + $0x38] sm:$0xff]   ;;  %v386_v17 = vld [vmem:[%s589_s2] ss:$0 sm:$0xff] }
   0x7   :  { %406 = vmatpush3.bf16.msra.mxu0 %v453_v1  ;;  %444 = vmatpush3.bf16.msra.mxu1 %v453_v1 }
   0x8   :  { %407 = vmatprep.subr.bf16.mxu0 %v454_v2  ;;  %437 = vmatprep.subr.bf16.mxu1 %v454_v2 }
   0xb   :  { %408 = vmatpush3.bf16.msra.mxu0 %v454_v2  ;;  %445 = vmatpush3.bf16.msra.mxu1 %v454_v2 }
   0xc   :  { %409 = vmatprep.subr.bf16.mxu0 %v455_v3  ;;  %438 = vmatprep.subr.bf16.mxu1 %v455_v3 }
   0xf   :  { %410 = vmatpush3.bf16.msra.mxu0 %v455_v3  ;;  %446 = vmatpush3.bf16.msra.mxu1 %v455_v3 }
  0x10   :  { %411 = vmatprep.subr.bf16.mxu0 %v456_v6  ;;  %439 = vmatprep.subr.bf16.mxu1 %v456_v6 }
  0x13   :  { %412 = vmatpush3.bf16.msra.mxu0 %v456_v6  ;;  %447 = vmatpush3.bf16.msra.mxu1 %v456_v6 }
  0x14   :  { %413 = vmatprep.subr.bf16.mxu0 %v457_v7  ;;  %440 = vmatprep.subr.bf16.mxu1 %v457_v7 }
  0x17   :  { %414 = vmatpush3.bf16.msra.mxu0 %v457_v7  ;;  %448 = vmatpush3.bf16.msra.mxu1 %v457_v7 }
  0x18   :  { %415 = vmatprep.subr.bf16.mxu0 %v458_v8  ;;  %441 = vmatprep.subr.bf16.mxu1 %v458_v8 }
  0x1b   :  { %416 = vmatpush3.bf16.msra.mxu0 %v458_v8  ;;  %449 = vmatpush3.bf16.msra.mxu1 %v458_v8 }
  0x1c   :  { %417 = vmatprep.subr.bf16.mxu0 %v459_v9  ;;  %442 = vmatprep.subr.bf16.mxu1 %v459_v9 }
  0x1f   :  { %418 = vmatpush3.bf16.msra.mxu0 %v459_v9  ;;  %450 = vmatpush3.bf16.msra.mxu1 %v459_v9 }
  0x22   :  { %420 = vmatmul.mubr.bf16.vlgmr.msra.gmra.mrb[0].mxu0 %v462_v10  ;;  %428 = vmatmul.mubr.bf16.vlgmr.msra.gmra.mrb[0].mxu1 %v463_v11 }
  0x23   :  { %423 = vmatprep.mubr.bf16.mxu0 %v464_v12  ;;  %431 = vmatprep.mubr.bf16.mxu1 %v465_v13 }
  0x2a   :  { %424 = vmatmul.mubr.bf16.gmra.mrb[4].mxu0 %v466_v14  ;;  %432 = vmatmul.mubr.bf16.gmra.mrb[4].mxu1 %v467_v15 }
  0xf5   :  { %v421_v16 = vpop.f32.mrb[0].mxu0  ;;  %v429_v18 = vpop.f32.mrb[0].mxu1 }
  0xf6   :  { %v213_v19 = vpop.f32.mrb[1].mxu0  ;;  %v245_v20 = vpop.f32.mrb[1].mxu1  ;;  %v336_v23 = vadd.f32 %v421_v16, %v386_v17  ;;  %v344_v24 = vadd.f32 %v429_v18, %v386_v17 }
  0xf7   :  { %v422_v21 = vpop.f32.mrb[2].mxu0  ;;  %v430_v22 = vpop.f32.mrb[2].mxu1  ;;  %v334_v27 = vadd.f32 %v386_v17, %v213_v19  ;;  %v342_v28 = vadd.f32 %v386_v17, %v245_v20 }
  0xf8   :  { %v216_v25 = vpop.f32.mrb[3].mxu0  ;;  %v248_v26 = vpop.f32.mrb[3].mxu1  ;;  %352 = vst [vmem:[%s590_s3 + $0x10] sm:$0xff] %v336_v23  ;;  %360 = vst [vmem:[%s590_s3 + $0x50] sm:$0xff] %v344_v24  ;;  %v337_v29 = vadd.f32 %v422_v21, %v386_v17  ;;  %v345_v30 = vadd.f32 %v430_v22, %v386_v17 }
  0xf9   :  { %350 = vst [vmem:[%s590_s3] sm:$0xff] %v334_v27  ;;  %358 = vst [vmem:[%s590_s3 + $0x40] sm:$0xff] %v342_v28  ;;  %v335_v31 = vadd.f32 %v386_v17, %v216_v25  ;;  %v343_v32 = vadd.f32 %v386_v17, %v248_v26 }
  0xfa   :  { %353 = vst [vmem:[%s590_s3 + $0x18] sm:$0xff] %v337_v29  ;;  %361 = vst [vmem:[%s590_s3 + $0x58] sm:$0xff] %v345_v30 }
  0xfb   :  { %351 = vst [vmem:[%s590_s3 + $0x8] sm:$0xff] %v335_v31  ;;  %359 = vst [vmem:[%s590_s3 + $0x48] sm:$0xff] %v343_v32 }
  0xfd   :  { %v425_v33 = vpop.f32.mrb[4].mxu0  ;;  %v433_v34 = vpop.f32.mrb[4].mxu1 }
  0xfe   :  { %v229_v35 = vpop.f32.mrb[5].mxu0  ;;  %v261_v36 = vpop.f32.mrb[5].mxu1  ;;  %v340_v39 = vadd.f32 %v425_v33, %v386_v17  ;;  %v348_v40 = vadd.f32 %v433_v34, %v386_v17 }
  0xff   :  { %v426_v37 = vpop.f32.mrb[6].mxu0  ;;  %v434_v38 = vpop.f32.mrb[6].mxu1  ;;  %v338_v43 = vadd.f32 %v386_v17, %v229_v35  ;;  %v346_v44 = vadd.f32 %v386_v17, %v261_v36 }
 0x100   :  { %v232_v41 = vpop.f32.mrb[7].mxu0  ;;  %v264_v42 = vpop.f32.mrb[7].mxu1  ;;  %356 = vst [vmem:[%s590_s3 + $0x30] sm:$0xff] %v340_v39  ;;  %364 = vst [vmem:[%s590_s3 + $0x70] sm:$0xff] %v348_v40  ;;  %v341_v45 = vadd.f32 %v426_v37, %v386_v17  ;;  %v349_v46 = vadd.f32 %v434_v38, %v386_v17 }
 0x101   :  { %354 = vst [vmem:[%s590_s3 + $0x20] sm:$0xff] %v338_v43  ;;  %362 = vst [vmem:[%s590_s3 + $0x60] sm:$0xff] %v346_v44  ;;  %v339_v47 = vadd.f32 %v386_v17, %v232_v41  ;;  %v347_v48 = vadd.f32 %v386_v17, %v264_v42 }
 0x102   :  { %357 = vst [vmem:[%s590_s3 + $0x38] sm:$0xff] %v341_v45  ;;  %365 = vst [vmem:[%s590_s3 + $0x78] sm:$0xff] %v349_v46 }
 0x103   :  { %355 = vst [vmem:[%s590_s3 + $0x28] sm:$0xff] %v339_v47  ;;  %363 = vst [vmem:[%s590_s3 + $0x68] sm:$0xff] %v347_v48 }

// kernel: generator_forward.28
= control target key start
LH: loop header
LB: loop body
LE: loop exit
PB: predicated region body
PF: predicated region fallthrough
CT: control target
= control target key end

     0   :  { %s399_s6 = smov 0   ;;  %s401_s7 = smov 0   ;;  %s463_s0 = inlined_call_operand.vmem [shape: f32[2,8,8,16], index: 0, kind: input, shape index: {}]   ;;  %s464_s1 = inlined_call_operand.vmem [shape: f32[2,8,8,16], index: 1, kind: output, shape index: {}]  }
   0x1   :  { %s403_s8 = smov 0  }
   0x2 LB: > { %s23_s9 = sadd.s32 1, %s383_s7  ;;  %p330_p0 = scmp.ge.s32.totalorder %s387_s8, 1  ;;  %s387_s8 = sphi %s403_s8, %s11_s8   ;;  %s383_s7 = sphi %s401_s7, %s466_s7   ;;  %s379_s6 = sphi %s399_s6, %s465_s6  }
   0x3   : > { %p25_p1 = scmp.ge.s32.totalorder %s23_s9, 2  ;;  %p106_p2 = scmp.lt.s32.totalorder %s387_s8, 3 }
   0x5   : > { %s468_s9 = smov (%p25_p1, %s23_s9), 0  ;;  %p107_p3 = pnand %p330_p0, %p106_p2 }
   0x6   : > { %p132_p4 = scmp.lt.s32.totalorder (!%p107_p3), %s379_s6, 1  ;;  %vm156_vm0 = vcmask (!%p107_p3), 130048  }
   0x7   : > { %110 = sbr.rel (%p107_p3) target bundleno = 101 (0x65), region = 24 }
   0xe   : > { %s470_s6 = smov (!%p132_p4, %s379_s6), 1 }
   0xf   : > { %s337_s10 = sshll.u32 %s470_s6, 6 }
  0x10   : > { %s139_s13 = scalar_lea.vmem %s463_s0, %s337_s10  ;;  %s147_s16 = scalar_lea.vmem %s464_s1, %s337_s10 }
  0x11   : > { %v148_v0 = vld [vmem:[%s139_s13] sm:$0xff]  ;;  %v149_v1 = vld [vmem:[%s139_s13 + $0x8] sm:$0xff]  ;;  %v150_v2 = vld [vmem:[%s139_s13 + $0x10] sm:$0xff] }
  0x12   : > { %v151_v3 = vld [vmem:[%s139_s13 + $0x18] sm:$0xff]  ;;  %v157_v4 = vsel %vm156_vm0, %v148_v0, 0.0  ;;  %v158_v5 = vsel %vm156_vm0, %v149_v1, 0.0  ;;  %v160_v6 = vsel %vm156_vm0, %v150_v2, 0.0  ;;  %v152_v7 = vld [vmem:[%s139_s13 + $0x20] sm:$0xff]  ;;  %v153_v10 = vld [vmem:[%s139_s13 + $0x28] sm:$0xff] }
  0x13   : > { %v159_v8 = vadd.f32 %v158_v5, %v157_v4  ;;  %v162_v9 = vsel %vm156_vm0, %v151_v3, 0.0  ;;  %v164_v12 = vsel %vm156_vm0, %v152_v7, 0.0  ;;  %v154_v13 = vld [vmem:[%s139_s13 + $0x30] sm:$0xff]  ;;  %v166_v15 = vsel %vm156_vm0, %v153_v10, 0.0  ;;  %v155_v16 = vld [vmem:[%s139_s13 + $0x38] sm:$0xff] }
  0x14   : > { %v168_v18 = vsel %vm156_vm0, %v154_v13, 0.0  ;;  %v170_v20 = vsel %vm156_vm0, %v155_v16, 0.0 }
  0x15   : > { %v161_v11 = vadd.f32 %v160_v6, %v159_v8 }
  0x17   : > { %v163_v14 = vadd.f32 %v162_v9, %v161_v11 }
  0x19   : > { %v165_v17 = vadd.f32 %v164_v12, %v163_v14 }
  0x1b   : > { %v167_v19 = vadd.f32 %v166_v15, %v165_v17 }
  0x1d   : > { %v169_v21 = vadd.f32 %v168_v18, %v167_v19 }
  0x1f   : > { %v171_v22 = vadd.f32 %v170_v20, %v169_v21 }
  0x21   : > { %v172_v23 = vrot.slane %v171_v22, 4 }
  0x23   : > { %v173_v24 = vadd.f32 %v172_v23, %v171_v22 }
  0x25   : > { %v174_v25 = vrot.slane %v173_v24, 2 }
  0x27   : > { %v175_v26 = vadd.f32 %v174_v25, %v173_v24 }
  0x29   : > { %v176_v27 = vrot.slane %v175_v26, 1 }
  0x2b   : > { %v177_v28 = vadd.f32 %v176_v27, %v175_v26 }
  0x2d   : > { %v178_v29 = vmul.f32 0.015625, %v177_v28 }
  0x2f   : > { %v179_v30 = vsub.f32 %v148_v0, %v178_v29  ;;  %v180_v31 = vsub.f32 %v149_v1, %v178_v29  ;;  %v181_v32 = vsub.f32 %v150_v2, %v178_v29  ;;  %v182_v33 = vsub.f32 %v151_v3, %v178_v29 }
  0x30   : > { %v183_v34 = vsub.f32 %v152_v7, %v178_v29  ;;  %v184_v35 = vsub.f32 %v153_v10, %v178_v29  ;;  %v185_v40 = vsub.f32 %v154_v13, %v178_v29  ;;  %v186_v46 = vsub.f32 %v155_v16, %v178_v29 }
  0x31   : > { %v187_v36 = vmul.f32 %v179_v30, %v179_v30  ;;  %v188_v37 = vmul.f32 %v180_v31, %v180_v31  ;;  %v189_v38 = vmul.f32 %v181_v32, %v181_v32  ;;  %v190_v39 = vmul.f32 %v182_v33, %v182_v33 }
  0x32   : > { %v191_v41 = vmul.f32 %v183_v34, %v183_v34  ;;  %v192_v47 = vmul.f32 %v184_v35, %v184_v35  ;;  %v193_v50 = vmul.f32 %v185_v40, %v185_v40  ;;  %v194_v53 = vmul.f32 %v186_v46, %v186_v46 }
  0x33   : > { %v195_v42 = vsel %vm156_vm0, %v187_v36, 0.0  ;;  %v196_v43 = vsel %vm156_vm0, %v188_v37, 0.0  ;;  %v198_v44 = vsel %vm156_vm0, %v189_v38, 0.0  ;;  %v200_v48 = vsel %vm156_vm0, %v190_v39, 0.0 }
  0x34   : > { %v197_v45 = vadd.f32 %v196_v43, %v195_v42  ;;  %v202_v51 = vsel %vm156_vm0, %v191_v41, 0.0  ;;  %v204_v54 = vsel %vm156_vm0, %v192_v47, 0.0  ;;  %v206_v56 = vsel %vm156_vm0, %v193_v50, 0.0 }
  0x35   : > { %v208_v58 = vsel %vm156_vm0, %v194_v53, 0.0 }
  0x36   : > { %v199_v49 = vadd.f32 %v198_v44, %v197_v45 }
  0x38   : > { %v201_v52 = vadd.f32 %v200_v48, %v199_v49 }
  0x3a   : > { %v203_v55 = vadd.f32 %v202_v51, %v201_v52 }
  0x3c   : > { %v205_v57 = vadd.f32 %v204_v54, %v203_v55 }
  0x3e   : > { %v207_v59 = vadd.f32 %v206_v56, %v205_v57 }
  0x40   : > { %v209_v60 = vadd.f32 %v208_v58, %v207_v59 }
  0x42   : > { %v210_v61 = vrot.slane %v209_v60, 4 }
  0x44   : > { %v211_v62 = vadd.f32 %v210_v61, %v209_v60 }
  0x46   : > { %v212_v63 = vrot.slane %v211_v62, 2 }
  0x48   : > { %v213_v0 = vadd.f32 %v212_v63, %v211_v62 }
  0x4a   : > { %v214_v1 = vrot.slane %v213_v0, 1 }
  0x4c   : > { %v215_v2 = vadd.f32 %v214_v1, %v213_v0 }
  0x4e   : > { %v216_v3 = vmul.f32 0.015625, %v215_v2 }
  0x50   : > { %v217_v4 = vadd.f32 1e-05, %v216_v3 }
  0x52   : > { %363 = vrsqrt.f32 %v217_v4 }
  0x5c   : > { %v364_v5 = vpop.eup %363 }
  0x5d   : > { %v219_v6 = vmul.f32 %v364_v5, %v179_v30  ;;  %v220_v7 = vmul.f32 %v364_v5, %v180_v31  ;;  %v221_v8 = vmul.f32 %v364_v5, %v181_v32  ;;  %v222_v9 = vmul.f32 %v364_v5, %v182_v33 }
  0x5e   : > { %v223_v10 = vmul.f32 %v364_v5, %v183_v34  ;;  %v224_v11 = vmul.f32 %v364_v5, %v184_v35  ;;  %v225_v12 = vmul.f32 %v364_v5, %v185_v40  ;;  %v226_v13 = vmul.f32 %v364_v5, %v186_v46 }
  0x5f   : > { %v227_v14 = vmax.f32 %v219_v6, 0.0  ;;  %v228_v15 = vmax.f32 %v220_v7, 0.0  ;;  %v229_v16 = vmax.f32 %v221_v8, 0.0  ;;  %v230_v17 = vmax.f32 %v222_v9, 0.0 }
  0x60   : > { %v231_v18 = vmax.f32 %v223_v10, 0.0  ;;  %v232_v19 = vmax.f32 %v224_v11, 0.0  ;;  %v233_v20 = vmax.f32 %v225_v12, 0.0  ;;  %v234_v21 = vmax.f32 %v226_v13, 0.0 }
  0x61   : > { %235 = vst.msk [vmem:[%s147_s16] sm:$0xff] %vm156_vm0, %v227_v14  ;;  %236 = vst.msk [vmem:[%s147_s16 + $0x8] sm:$0xff] %vm156_vm0, %v228_v15 }
  0x62   : > { %237 = vst.msk [vmem:[%s147_s16 + $0x10] sm:$0xff] %vm156_vm0, %v229_v16  ;;  %238 = vst.msk [vmem:[%s147_s16 + $0x18] sm:$0xff] %vm156_vm0, %v230_v17 }
  0x63   : > { %239 = vst.msk [vmem:[%s147_s16 + $0x20] sm:$0xff] %vm156_vm0, %v231_v18  ;;  %240 = vst.msk [vmem:[%s147_s16 + $0x28] sm:$0xff] %vm156_vm0, %v232_v19 }
  0x64   : > { %241 = vst.msk [vmem:[%s147_s16 + $0x30] sm:$0xff] %vm156_vm0, %v233_v20  ;;  %242 = vst.msk [vmem:[%s147_s16 + $0x38] sm:$0xff] %vm156_vm0, %v234_v21 }
  0x65 PF: > { %s11_s8 = sadd.s32 1, %s387_s8   ;;  %s465_s6 = smov %s383_s7 }
  0x66   : > { %p8_p5 = scmp.ge.s32.totalorder %s11_s8, 4   ;;  %s466_s7 = smov %s468_s9 }
  0x68   :  { %10 = sbr.rel (!%p8_p5) target bundleno = 2 (0x2), region = 54 }

// kernel: generator_forward.30
= control target key start
LH: loop header
LB: loop body
LE: loop exit
PB: predicated region body
PF: predicated region fallthrough
CT: control target
= control target key end

     0   :  { %s359_s6 = smov 0   ;;  %s361_s7 = smov 0   ;;  %s411_s0 = inlined_call_operand.vmem [shape: f32[2,4,4,32], index: 0, kind: input, shape index: {}]   ;;  %s412_s1 = inlined_call_operand.vmem [shape: f32[2,4,4,32], index: 1, kind: output, shape index: {}]  }
   0x1   :  { %s363_s8 = smov 0  }
   0x2 LB: > { %s23_s9 = sadd.s32 1, %s343_s7  ;;  %p290_p0 = scmp.ge.s32.totalorder %s347_s8, 1  ;;  %s347_s8 = sphi %s363_s8, %s11_s8   ;;  %s343_s7 = sphi %s361_s7, %s414_s7   ;;  %s339_s6 = sphi %s359_s6, %s413_s6  }
   0x3   : > { %p25_p1 = scmp.ge.s32.totalorder %s23_s9, 2  ;;  %p106_p2 = scmp.lt.s32.totalorder %s347_s8, 3 }
   0x5   : > { %s416_s9 = smov (%p25_p1, %s23_s9), 0  ;;  %p107_p3 = pnand %p290_p0, %p106_p2 }
   0x6   : > { %p132_p4 = scmp.lt.s32.totalorder (!%p107_p3), %s339_s6, 1  ;;  %vm152_vm0 = vcmask (!%p107_p3), 257024  }
   0x7   : > { %110 = sbr.rel (%p107_p3) target bundleno = 83 (0x53), region = 24 }
   0xe   : > { %s418_s6 = smov (!%p132_p4, %s339_s6), 1 }
   0xf   : > { %s297_s10 = sshll.u32 %s418_s6, 4 }
  0x10   : > { %s139_s13 = scalar_lea.vmem %s411_s0, %s297_s10  ;;  %s147_s16 = scalar_lea.vmem %s412_s1, %s297_s10 }
  0x11   : > { %v148_v0 = vld [vmem:[%s139_s13] sm:$0xf]  ;;  %v149_v1 = vld [vmem:[%s139_s13 + $0x4] sm:$0xf]  ;;  %v150_v2 = vld [vmem:[%s139_s13 + $0x8] sm:$0xf] }
  0x12   : > { %v151_v3 = vld [vmem:[%s139_s13 + $0xc] sm:$0xf]  ;;  %v153_v4 = vsel %vm152_vm0, %v148_v0, 0.0  ;;  %v154_v5 = vsel %vm152_vm0, %v149_v1, 0.0  ;;  %v156_v6 = vsel %vm152_vm0, %v150_v2, 0.0 }
  0x13   : > { %v155_v7 = vadd.f32 %v154_v5, %v153_v4  ;;  %v158_v8 = vsel %vm152_vm0, %v151_v3, 0.0 }
  0x15   : > { %v157_v9 = vadd.f32 %v156_v6, %v155_v7 }
  0x17   : > { %v159_v10 = vadd.f32 %v158_v8, %v157_v9 }
  0x19   : > { %v160_v11 = vrot.slane %v159_v10, 4 }
  0x1b   : > { %v161_v12 = vadd.f32 %v160_v11, %v159_v10 }
  0x1d   : > { %v162_v13 = vrot.slane %v161_v12, 2 }
  0x1f   : > { %v163_v14 = vadd.f32 %v162_v13, %v161_v12 }
  0x21   : > { %v164_v15 = vrot.slane %v163_v14, 1 }
  0x23   : > { %v165_v16 = vadd.f32 %v164_v15, %v163_v14 }
  0x25   : > { %v166_v17 = vmul.f32 0.0625, %v165_v16 }
  0x27   : > { %v167_v18 = vsub.f32 %v148_v0, %v166_v17  ;;  %v168_v19 = vsub.f32 %v149_v1, %v166_v17  ;;  %v169_v20 = vsub.f32 %v150_v2, %v166_v17  ;;  %v170_v21 = vsub.f32 %v151_v3, %v166_v17 }
  0x29   : > { %v171_v22 = vmul.f32 %v167_v18, %v167_v18  ;;  %v172_v23 = vmul.f32 %v168_v19, %v168_v19  ;;  %v173_v24 = vmul.f32 %v169_v20, %v169_v20  ;;  %v174_v25 = vmul.f32 %v170_v21, %v170_v21 }
  0x2b   : > { %v175_v26 = vsel %vm152_vm0, %v171_v22, 0.0  ;;  %v176_v27 = vsel %vm152_vm0, %v172_v23, 0.0  ;;  %v178_v28 = vsel %vm152_vm0, %v173_v24, 0.0  ;;  %v180_v30 = vsel %vm152_vm0, %v174_v25, 0.0 }
  0x2c   : > { %v177_v29 = vadd.f32 %v176_v27, %v175_v26 }
  0x2e   : > { %v179_v31 = vadd.f32 %v178_v28, %v177_v29 }
  0x30   : > { %v181_v32 = vadd.f32 %v180_v30, %v179_v31 }
  0x32   : > { %v182_v33 = vrot.slane %v181_v32, 4 }
  0x34   : > { %v183_v34 = vadd.f32 %v182_v33, %v181_v32 }
  0x36   : > { %v184_v35 = vrot.slane %v183_v34, 2 }
  0x38   : > { %v185_v36 = vadd.f32 %v184_v35, %v183_v34 }
  0x3a   : > { %v186_v37 = vrot.slane %v185_v36, 1 }
  0x3c   : > { %v187_v38 = vadd.f32 %v186_v37, %v185_v36 }
  0x3e   : > { %v188_v39 = vmul.f32 0.0625, %v187_v38 }
  0x40   : > { %v189_v40 = vadd.f32 1e-05, %v188_v39 }
  0x42   : > { %323 = vrsqrt.f32 %v189_v40 }
  0x4c   : > { %v324_v41 = vpop.eup %323 }
  0x4d   : > { %v191_v42 = vmul.f32 %v324_v41, %v167_v18  ;;  %v192_v43 = vmul.f32 %v324_v41, %v168_v19  ;;  %v193_v44 = vmul.f32 %v324_v41, %v169_v20  ;;  %v194_v45 = vmul.f32 %v324_v41, %v170_v21 }
  0x4f   : > { %v195_v46 = vmax.f32 %v191_v42, 0.0  ;;  %v196_v47 = vmax.f32 %v192_v43, 0.0  ;;  %v197_v48 = vmax.f32 %v193_v44, 0.0  ;;  %v198_v49 = vmax.f32 %v194_v45, 0.0 }
  0x51   : > { %199 = vst.msk [vmem:[%s147_s16] sm:$0xf] %vm152_vm0, %v195_v46  ;;  %200 = vst.msk [vmem:[%s147_s16 + $0x4] sm:$0xf] %vm152_vm0, %v196_v47 }
  0x52   : > { %201 = vst.msk [vmem:[%s147_s16 + $0x8] sm:$0xf] %vm152_vm0, %v197_v48  ;;  %202 = vst.msk [vmem:[%s147_s16 + $0xc] sm:$0xf] %vm152_vm0, %v198_v49 }
  0x53 PF: > { %s11_s8 = sadd.s32 1, %s347_s8   ;;  %s413_s6 = smov %s343_s7 }
  0x54   : > { %p8_p5 = scmp.ge.s32.totalorder %s11_s8, 4   ;;  %s414_s7 = smov %s416_s9 }
  0x56   :  { %10 = sbr.rel (!%p8_p5) target bundleno = 2 (0x2), region = 54 }

// kernel: generator_forward.29
= control target key start
LH: loop header
LB: loop body
LE: loop exit
PB: predicated region body
PF: predicated region fallthrough
CT: control target
= control target key end

     0   :  { %s445_s1 = inlined_call_operand.vmem [shape: bf16[256,128], index: 1, kind: input, shape index: {}]   ;;  %s446_s0 = inlined_call_operand.vmem [shape: bf16[32,256], index: 0, kind: input, shape index: {}]   ;;  %s447_s2 = inlined_call_operand.vmem [shape: f32[1,128], index: 2, kind: input, shape index: {}]   ;;  %s448_s3 = inlined_call_operand.vmem [shape: f32[32,128], index: 3, kind: output, shape index: {}]  }
   0x1   :  { %v328_v0 = vld [vmem:[%s445_s1 + $0x40] sm:$0xff]   ;;  %v330_v2 = vld [vmem:[%s445_s1 + $0x48] sm:$0xff]   ;;  %v332_v4 = vld [vmem:[%s445_s1 + $0x50] sm:$0xff]  }
   0x2   :  { %v329_v1 = vld [vmem:[%s445_s1] sm:$0xff]   ;;  %283 = vmatprep.subr.bf16.mxu0 %v328_v0  ;;  %311 = vmatprep.subr.bf16.mxu1 %v328_v0  ;;  %v331_v3 = vld [vmem:[%s445_s1 + $0x8] sm:$0xff]   ;;  %v333_v5 = vld [vmem:[%s445_s1 + $0x10] sm:$0xff]  }
   0x3   :  { %284 = vmatpush3.bf16.msra.mxu0 %v329_v1  ;;  %319 = vmatpush3.bf16.msra.mxu1 %v329_v1  ;;  %v334_v6 = vld [vmem:[%s445_s1 + $0x58] sm:$0xff]   ;;  %v336_v8 = vld [vmem:[%s445_s1 + $0x60] sm:$0xff]   ;;  %v338_v10 = vld [vmem:[%s445_s1 + $0x68] sm:$0xff]  }
   0x4   :  { %285 = vmatprep.subr.bf16.mxu0 %v330_v2  ;;  %312 = vmatprep.subr.bf16.mxu1 %v330_v2  ;;  %v335_v7 = vld [vmem:[%s445_s1 + $0x18] sm:$0xff]   ;;  %v337_v9 = vld [vmem:[%s445_s1 + $0x20] sm:$0xff]   ;;  %v339_v13 = vld [vmem:[%s445_s1 + $0x28] sm:$0xff]  }
   0x5   :  { %v346_v11 = vld [vmem:[%s446_s0 + $0x4] ss:$8 sps:$4 sm:$0xff]   ;;  %v349_v12 = vld [vmem:[%s446_s0 + $0x14] ss:$8 sps:$4 sm:$0xff]   ;;  %v344_v18 = vld [vmem:[%s446_s0] ss:$8 sps:$4 sm:$0xff]  }
   0x6   :  { %v340_v14 = vld [vmem:[%s445_s1 + $0x70] sm:$0xff]   ;;  %211 = vmatprep.mubr.bf16.mxu0 %v346_v11  ;;  %219 = vmatprep.mubr.bf16.mxu1 %v349_v12  ;;  %v342_v16 = vld [vmem:[%s445_s1 + $0x78] sm:$0xff]   ;;  %v282_v28 = vld [vmem:[%s447_s2] ss:$0 sm:$0xff] }
   0x7   :  { %286 = vmatpush3.bf16.msra.mxu0 %v331_v3  ;;  %320 = vmatpush3.bf16.msra.mxu1 %v331_v3  ;;  %v341_v15 = vld [vmem:[%s445_s1 + $0x30] sm:$0xff]   ;;  %v343_v17 = vld [vmem:[%s445_s1 + $0x38] sm:$0xff]  }
   0x8   :  { %287 = vmatprep.subr.bf16.mxu0 %v332_v4  ;;  %313 = vmatprep.subr.bf16.mxu1 %v332_v4  ;;  %v347_v19 = vld [vmem:[%s446_s0 + $0x10] ss:$8 sps:$4 sm:$0xff]  }
   0xb   :  { %288 = vmatpush3.bf16.msra.mxu0 %v333_v5  ;;  %321 = vmatpush3.bf16.msra.mxu1 %v333_v5 }
   0xc   :  { %289 = vmatprep.subr.bf16.mxu0 %v334_v6  ;;  %314 = vmatprep.subr.bf16.mxu1 %v334_v6 }
   0xf   :  { %290 = vmatpush3.bf16.msra.mxu0 %v335_v7  ;;  %322 = vmatpush3.bf16.msra.mxu1 %v335_v7 }
  0x10   :  { %291 = vmatprep.subr.bf16.mxu0 %v336_v8  ;;  %315 = vmatprep.subr.bf16.mxu1 %v336_v8 }
  0x13   :  { %292 = vmatpush3.bf16.msra.mxu0 %v337_v9  ;;  %323 = vmatpush3.bf16.msra.mxu1 %v337_v9 }
  0x14   :  { %293 = vmatprep.subr.bf16.mxu0 %v338_v10  ;;  %316 = vmatprep.subr.bf16.mxu1 %v338_v10 }
  0x17   :  { %294 = vmatpush3.bf16.msra.mxu0 %v339_v13  ;;  %324 = vmatpush3.bf16.msra.mxu1 %v339_v13 }
  0x18   :  { %295 = vmatprep.subr.bf16.mxu0 %v340_v14  ;;  %317 = vmatprep.subr.bf16.mxu1 %v340_v14 }
  0x1b   :  { %296 = vmatpush3.bf16.msra.mxu0 %v341_v15  ;;  %325 = vmatpush3.bf16.msra.mxu1 %v341_v15 }
  0x1c   :  { %297 = vmatprep.subr.bf16.mxu0 %v342_v16  ;;  %318 = vmatprep.subr.bf16.mxu1 %v342_v16 }
  0x1f   :  { %298 = vmatpush3.bf16.msra.mxu0 %v343_v17  ;;  %326 = vmatpush3.bf16.msra.mxu1 %v343_v17 }
  0x22   :  { %212 = vmatmul.mubr.bf16.vlgmr.msra.gmra.mrb[0].mxu0 %v344_v18  ;;  %220 = vmatmul.mubr.bf16.vlgmr.msra.gmra.mrb[0].mxu1 %v347_v19 }
  0xf5   :  { %v299_v20 = vpop.f32.mrb[0].mxu0  ;;  %v305_v21 = vpop.f32.mrb[0].mxu1 }
  0xf6   :  { %v300_v22 = vpop.f32.mrb[1].mxu0  ;;  %v306_v23 = vpop.f32.mrb[1].mxu1 }
  0xf7   :  { %v301_v24 = vadd.f32 %v300_v22, %v299_v20  ;;  %v307_v25 = vadd.f32 %v306_v23, %v305_v21  ;;  %v302_v26 = vpop.f32.mrb[2].mxu0  ;;  %v308_v27 = vpop.f32.mrb[2].mxu1 }
  0xf8   :  { %v303_v29 = vpop.f32.mrb[3].mxu0  ;;  %v309_v30 = vpop.f32.mrb[3].mxu1 }
  0xf9   :  { %v304_v31 = vadd.f32 %v303_v29, %v302_v26  ;;  %v310_v32 = vadd.f32 %v309_v30, %v308_v27  ;;  %v250_v33 = vadd.f32 %v301_v24, %v282_v28  ;;  %v252_v34 = vadd.f32 %v307_v25, %v282_v28 }
  0xfb   :  { %254 = vst [vmem:[%s448_s3] sm:$0xff] %v250_v33  ;;  %256 = vst [vmem:[%s448_s3 + $0x10] sm:$0xff] %v252_v34  ;;  %v251_v35 = vadd.f32 %v304_v31, %v282_v28  ;;  %v253_v36 = vadd.f32 %v310_v32, %v282_v28 }
  0xfd   :  { %255 = vst [vmem:[%s448_s3 + $0x8] sm:$0xff] %v251_v35  ;;  %257 = vst [vmem:[%s448_s3 + $0x18] sm:$0xff] %v253_v36 }

// kernel: generator_forward.31
= control target key start
LH: loop header
LB: loop body
LE: loop exit
PB: predicated region body
PF: predicated region fallthrough
CT: control target
= control target key end

     0   :  { %s638_s1 = inlined_call_operand.vmem [shape: bf16[384,128], index: 1, kind: input, shape index: {}]   ;;  %s639_s0 = inlined_call_operand.vmem [shape: bf16[32,384], index: 0, kind: input, shape index: {}]   ;;  %s640_s2 = inlined_call_operand.vmem [shape: f32[1,128], index: 2, kind: input, shape index: {}]   ;;  %s641_s3 = inlined_call_operand.vmem [shape: f32[32,128], index: 3, kind: output, shape index: {}]  }
   0x1   :  { %v481_v0 = vld [vmem:[%s638_s1 + $0x40] sm:$0xff]   ;;  %v484_v3 = vld [vmem:[%s638_s1 + $0x48] sm:$0xff]   ;;  %v487_v6 = vld [vmem:[%s638_s1 + $0x50] sm:$0xff]  }
   0x2   :  { %v482_v1 = vld [vmem:[%s638_s1] sm:$0xff]   ;;  %422 = vmatprep.subr.bf16.mxu0 %v481_v0  ;;  %v485_v4 = vld [vmem:[%s638_s1 + $0x8] sm:$0xff]   ;;  %v488_v7 = vld [vmem:[%s638_s1 + $0x10] sm:$0xff]  }
   0x3   :  { %v483_v2 = vld [vmem:[%s638_s1 + $0x80] sm:$0xff]   ;;  %423 = vmatpush3.bf16.msra.mxu0 %v482_v1  ;;  %v486_v5 = vld [vmem:[%s638_s1 + $0x88] sm:$0xff]   ;;  %v489_v8 = vld [vmem:[%s638_s1 + $0x90] sm:$0xff]  }
   0x4   :  { %460 = vmatprep.subr.bf16.mxu1 %v483_v2  ;;  %424 = vmatprep.subr.bf16.mxu0 %v484_v3  ;;  %v490_v9 = vld [vmem:[%s638_s1 + $0x58] sm:$0xff]   ;;  %v493_v12 = vld [vmem:[%s638_s1 + $0x60] sm:$0xff]   ;;  %v496_v15 = vld [vmem:[%s638_s1 + $0x68] sm:$0xff]  }
   0x5   :  { %461 = vmatpush3.bf16.msra.mxu1 %v483_v2  ;;  %v491_v10 = vld [vmem:[%s638_s1 + $0x18] sm:$0xff]   ;;  %v495_v13 = vld [vmem:[%s638_s1 + $0xa0] sm:$0xff]   ;;  %v498_v16 = vld [vmem:[%s638_s1 + $0xa8] sm:$0xff]  }
   0x6   :  { %462 = vmatprep.subr.bf16.mxu1 %v486_v5  ;;  %v492_v11 = vld [vmem:[%s638_s1 + $0x98] sm:$0xff]   ;;  %v494_v14 = vld [vmem:[%s638_s1 + $0x20] sm:$0xff]   ;;  %v497_v17 = vld [vmem:[%s638_s1 + $0x28] sm:$0xff]  }
   0x7   :  { %425 = vmatpush3.bf16.msra.mxu0 %v485_v4  ;;  %v499_v18 = vld [vmem:[%s638_s1 + $0x70] sm:$0xff]   ;;  %v502_v21 = vld [vmem:[%s638_s1 + $0x78] sm:$0xff]   ;;  %v505_v26 = vld [vmem:[%s639_s0] ss:$12 sps:$4 sm:$0xff]  }
   0x8   :  { %426 = vmatprep.subr.bf16.mxu0 %v487_v6  ;;  %v500_v19 = vld [vmem:[%s638_s1 + $0x30] sm:$0xff]   ;;  %v504_v22 = vld [vmem:[%s638_s1 + $0xb8] sm:$0xff]   ;;  %v509_v28 = vld [vmem:[%s639_s0 + $0x20] ss:$12 sps:$4 sm:$0xff]  }
   0x9   :  { %463 = vmatpush3.bf16.msra.mxu1 %v486_v5  ;;  %v501_v20 = vld [vmem:[%s638_s1 + $0xb0] sm:$0xff]   ;;  %v503_v25 = vld [vmem:[%s638_s1 + $0x38] sm:$0xff]   ;;  %v421_v40 = vld [vmem:[%s640_s2] ss:$0 sm:$0xff] }
   0xa   :  { %464 = vmatprep.subr.bf16.mxu1 %v489_v8  ;;  %v507_v23 = vld [vmem:[%s639_s0 + $0x4] ss:$12 sps:$4 sm:$0xff]   ;;  %v508_v24 = vld [vmem:[%s639_s0 + $0x8] ss:$12 sps:$4 sm:$0xff]  }
   0xb   :  { %427 = vmatpush3.bf16.msra.mxu0 %v488_v7  ;;  %291 = vmatprep.mubr.bf16.mxu0 %v507_v23  ;;  %v510_v27 = vld [vmem:[%s639_s0 + $0x1c] ss:$12 sps:$4 sm:$0xff]   ;;  %v512_v29 = vld [vmem:[%s639_s0 + $0x18] ss:$12 sps:$4 sm:$0xff]  }
   0xc   :  { %428 = vmatprep.subr.bf16.mxu0 %v490_v9  ;;  %476 = vmatprep.mubr.bf16.mxu1 %v508_v24 }
   0xd   :  { %465 = vmatpush3.bf16.msra.mxu1 %v489_v8 }
   0xe   :  { %466 = vmatprep.subr.bf16.mxu1 %v492_v11 }
   0xf   :  { %429 = vmatpush3.bf16.msra.mxu0 %v491_v10 }
  0x10   :  { %430 = vmatprep.subr.bf16.mxu0 %v493_v12 }
  0x11   :  { %467 = vmatpush3.bf16.msra.mxu1 %v492_v11 }
  0x12   :  { %468 = vmatprep.subr.bf16.mxu1 %v495_v13 }
  0x13   :  { %431 = vmatpush3.bf16.msra.mxu0 %v494_v14 }
  0x14   :  { %432 = vmatprep.subr.bf16.mxu0 %v496_v15 }
  0x15   :  { %469 = vmatpush3.bf16.msra.mxu1 %v495_v13 }
  0x16   :  { %470 = vmatprep.subr.bf16.mxu1 %v498_v16 }
  0x17   :  { %433 = vmatpush3.bf16.msra.mxu0 %v497_v17 }
  0x18   :  { %434 = vmatprep.subr.bf16.mxu0 %v499_v18 }
  0x19   :  { %471 = vmatpush3.bf16.msra.mxu1 %v498_v16 }
  0x1a   :  { %472 = vmatprep.subr.bf16.mxu1 %v501_v20 }
  0x1b   :  { %435 = vmatpush3.bf16.msra.mxu0 %v500_v19 }
  0x1c   :  { %436 = vmatprep.subr.bf16.mxu0 %v502_v21 }
  0x1d   :  { %473 = vmatpush3.bf16.msra.mxu1 %v501_v20 }
  0x1e   :  { %474 = vmatprep.subr.bf16.mxu1 %v504_v22 }
  0x1f   :  { %437 = vmatpush3.bf16.msra.mxu0 %v503_v25 }
  0x21   :  { %475 = vmatpush3.bf16.msra.mxu1 %v504_v22 }
  0x22   :  { %292 = vmatmul.mubr.bf16.vlgmr.msra.gmra.mrb[0].mxu0 %v505_v26 }
  0x23   :  { %299 = vmatprep.mubr.bf16.mxu0 %v510_v27 }
  0x24   :  { %477 = vmatmul.mubr.bf16.vlgmr.msra.gmra.mrb[0].mxu1 %v509_v28 }
  0x2a   :  { %300 = vmatmul.mubr.bf16.gmra.mrb[4].mxu0 %v512_v29 }
  0xf5   :  { %v438_v30 = vpop.f32.mrb[0].mxu0 }
  0xf6   :  { %v439_v31 = vpop.f32.mrb[1].mxu0 }
  0xf7   :  { %v440_v32 = vadd.f32 %v439_v31, %v438_v30  ;;  %v441_v33 = vpop.f32.mrb[2].mxu0  ;;  %v478_v34 = vpop.f32.mrb[0].mxu1 }
  0xf8   :  { %v442_v35 = vpop.f32.mrb[3].mxu0  ;;  %v342_v36 = vpop.f32.mrb[1].mxu1 }
  0xf9   :  { %v443_v37 = vadd.f32 %v442_v35, %v441_v33  ;;  %v343_v38 = vadd.f32 %v440_v32, %v342_v36  ;;  %v479_v39 = vpop.f32.mrb[2].mxu1 }
  0xfa   :  { %v345_v41 = vpop.f32.mrb[3].mxu1 }
  0xfb   :  { %v346_v42 = vadd.f32 %v443_v37, %v345_v41  ;;  %v379_v43 = vadd.f32 %v421_v40, %v343_v38 }
  0xfd   :  { %v444_v44 = vpop.f32.mrb[4].mxu0  ;;  %383 = vst [vmem:[%s641_s3] sm:$0xff] %v379_v43  ;;  %v380_v46 = vadd.f32 %v421_v40, %v346_v42 }
  0xfe   :  { %v445_v45 = vpop.f32.mrb[5].mxu0 }
  0xff   :  { %v446_v47 = vadd.f32 %v445_v45, %v444_v44  ;;  %v447_v48 = vpop.f32.mrb[6].mxu0  ;;  %384 = vst [vmem:[%s641_s3 + $0x8] sm:$0xff] %v380_v46 }
 0x100   :  { %v448_v49 = vpop.f32.mrb[7].mxu0 }
 0x101   :  { %v351_v50 = vadd.f32 %v478_v34, %v446_v47  ;;  %v449_v51 = vadd.f32 %v448_v49, %v447_v48 }
 0x103   :  { %v354_v52 = vadd.f32 %v479_v39, %v449_v51  ;;  %v381_v53 = vadd.f32 %v421_v40, %v351_v50 }
 0x105   :  { %385 = vst [vmem:[%s641_s3 + $0x10] sm:$0xff] %v381_v53  ;;  %v382_v54 = vadd.f32 %v421_v40, %v354_v52 }
 0x107   :  { %386 = vst [vmem:[%s641_s3 + $0x18] sm:$0xff] %v382_v54 }

// kernel: generator_forward.34
= control target key start
LH: loop header
LB: loop body
LE: loop exit
PB: predicated region body
PF: predicated region fallthrough
CT: control target
= control target key end

     0   :  { %s447_s9 = smov 0   ;;  %s449_s10 = smov 0   ;;  %s500_s0 = inlined_call_operand.vmem [shape: f32[2,4,4,32], index: 0, kind: input, shape index: {}]   ;;  %s501_s1 = inlined_call_operand.vmem [shape: f32[2,4,4,32], index: 1, kind: input, shape index: {}]   ;;  %s502_s2 = inlined_call_operand.vmem [shape: f32[2,4,4,32], index: 2, kind: output, shape index: {}]  }
   0x1   :  { %s451_s11 = smov 0  }
   0x2 LB: > { %s24_s12 = sadd.s32 1, %s426_s10  ;;  %p370_p0 = scmp.ge.s32.totalorder %s430_s11, 1  ;;  %s430_s11 = sphi %s451_s11, %s12_s11   ;;  %s426_s10 = sphi %s449_s10, %s504_s10   ;;  %s422_s9 = sphi %s447_s9, %s503_s9  }
   0x3   : > { %p26_p1 = scmp.ge.s32.totalorder %s24_s12, 2  ;;  %p146_p2 = scmp.lt.s32.totalorder %s430_s11, 3 }
   0x5   : > { %s506_s12 = smov (%p26_p1, %s24_s12), 0  ;;  %p147_p3 = pnand %p370_p0, %p146_p2 }
   0x6   : > { %p182_p4 = scmp.lt.s32.totalorder (!%p147_p3), %s422_s9, 1  ;;  %vm210_vm0 = vcmask (!%p147_p3), 257024  }
   0x7   : > { %150 = sbr.rel (%p147_p3) target bundleno = 83 (0x53), region = 28 }
   0xe   : > { %s508_s9 = smov (!%p182_p4, %s422_s9), 1 }
   0xf   : > { %s465_s13 = sshll.u32 %s508_s9, 4 }
  0x10   : > { %s189_s16 = scalar_lea.vmem %s500_s0, %s465_s13  ;;  %s197_s19 = scalar_lea.vmem %s501_s1, %s465_s13 }
  0x11   : > { %v206_v0 = vld [vmem:[%s189_s16] sm:$0xf]  ;;  %v207_v1 = vld [vmem:[%s189_s16 + $0x4] sm:$0xf]  ;;  %v208_v2 = vld [vmem:[%s189_s16 + $0x8] sm:$0xf]  ;;  %s205_s22 = scalar_lea.vmem %s502_s2, %s465_s13 }
  0x12   : > { %v209_v3 = vld [vmem:[%s189_s16 + $0xc] sm:$0xf]  ;;  %v211_v4 = vsel %vm210_vm0, %v206_v0, 0.0  ;;  %v212_v5 = vsel %vm210_vm0, %v207_v1, 0.0  ;;  %v214_v6 = vsel %vm210_vm0, %v208_v2, 0.0 }
  0x13   : > { %v213_v7 = vadd.f32 %v212_v5, %v211_v4  ;;  %v216_v8 = vsel %vm210_vm0, %v209_v3, 0.0  ;;  %v253_v41 = vld [vmem:[%s197_s19] sm:$0xf]  ;;  %v254_v43 = vld [vmem:[%s197_s19 + $0x4] sm:$0xf] }
  0x14   : > { %v255_v44 = vld [vmem:[%s197_s19 + $0x8] sm:$0xf]  ;;  %v256_v45 = vld [vmem:[%s197_s19 + $0xc] sm:$0xf] }
  0x15   : > { %v215_v9 = vadd.f32 %v214_v6, %v213_v7 }
  0x17   : > { %v217_v10 = vadd.f32 %v216_v8, %v215_v9 }
  0x19   : > { %v218_v11 = vrot.slane %v217_v10, 4 }
  0x1b   : > { %v219_v12 = vadd.f32 %v218_v11, %v217_v10 }
  0x1d   : > { %v220_v13 = vrot.slane %v219_v12, 2 }
  0x1f   : > { %v221_v14 = vadd.f32 %v220_v13, %v219_v12 }
  0x21   : > { %v222_v15 = vrot.slane %v221_v14, 1 }
  0x23   : > { %v223_v16 = vadd.f32 %v222_v15, %v221_v14 }
  0x25   : > { %v224_v17 = vmul.f32 0.0625, %v223_v16 }
  0x27   : > { %v225_v18 = vsub.f32 %v206_v0, %v224_v17  ;;  %v226_v19 = vsub.f32 %v207_v1, %v224_v17  ;;  %v227_v20 = vsub.f32 %v208_v2, %v224_v17  ;;  %v228_v21 = vsub.f32 %v209_v3, %v224_v17 }
  0x29   : > { %v229_v22 = vmul.f32 %v225_v18, %v225_v18  ;;  %v230_v23 = vmul.f32 %v226_v19, %v226_v19  ;;  %v231_v24 = vmul.f32 %v227_v20, %v227_v20  ;;  %v232_v25 = vmul.f32 %v228_v21, %v228_v21 }
  0x2b   : > { %v233_v26 = vsel %vm210_vm0, %v229_v22, 0.0  ;;  %v234_v27 = vsel %vm210_vm0, %v230_v23, 0.0  ;;  %v236_v28 = vsel %vm210_vm0, %v231_v24, 0.0  ;;  %v238_v30 = vsel %vm210_vm0, %v232_v25, 0.0 }
  0x2c   : > { %v235_v29 = vadd.f32 %v234_v27, %v233_v26 }
  0x2e   : > { %v237_v31 = vadd.f32 %v236_v28, %v235_v29 }
  0x30   : > { %v239_v32 = vadd.f32 %v238_v30, %v237_v31 }
  0x32   : > { %v240_v33 = vrot.slane %v239_v32, 4 }
  0x34   : > { %v241_v34 = vadd.f32 %v240_v33, %v239_v32 }
  0x36   : > { %v242_v35 = vrot.slane %v241_v34, 2 }
  0x38   : > { %v243_v36 = vadd.f32 %v242_v35, %v241_v34 }
  0x3a   : > { %v244_v37 = vrot.slane %v243_v36, 1 }
  0x3c   : > { %v245_v38 = vadd.f32 %v244_v37, %v243_v36 }
  0x3e   : > { %v246_v39 = vmul.f32 0.0625, %v245_v38 }
  0x40   : > { %v247_v40 = vadd.f32 1e-05, %v246_v39 }
  0x42   : > { %406 = vrsqrt.f32 %v247_v40 }
  0x4c   : > { %v407_v42 = vpop.eup %406 }
  0x4d   : > { %v249_v46 = vmul.f32 %v407_v42, %v225_v18  ;;  %v250_v47 = vmul.f32 %v407_v42, %v226_v19  ;;  %v251_v48 = vmul.f32 %v407_v42, %v227_v20  ;;  %v252_v49 = vmul.f32 %v407_v42, %v228_v21 }
  0x4f   : > { %v257_v50 = vadd.f32 %v253_v41, %v249_v46  ;;  %v258_v51 = vadd.f32 %v254_v43, %v250_v47  ;;  %v259_v52 = vadd.f32 %v255_v44, %v251_v48  ;;  %v260_v53 = vadd.f32 %v256_v45, %v252_v49 }
  0x51   : > { %261 = vst.msk [vmem:[%s205_s22] sm:$0xf] %vm210_vm0, %v257_v50  ;;  %262 = vst.msk [vmem:[%s205_s22 + $0x4] sm:$0xf] %vm210_vm0, %v258_v51 }
  0x52   : > { %263 = vst.msk [vmem:[%s205_s22 + $0x8] sm:$0xf] %vm210_vm0, %v259_v52  ;;  %264 = vst.msk [vmem:[%s205_s22 + $0xc] sm:$0xf] %vm210_vm0, %v260_v53 }
  0x53 PF: > { %s12_s11 = sadd.s32 1, %s430_s11   ;;  %s503_s9 = smov %s426_s10 }
  0x54   : > { %p9_p5 = scmp.ge.s32.totalorder %s12_s11, 4   ;;  %s504_s10 = smov %s506_s12 }
  0x56   :  { %11 = sbr.rel (!%p9_p5) target bundleno = 2 (0x2), region = 61 }

// kernel: generator_forward.39
= control target key start
LH: loop header
LB: loop body
LE: loop exit
PB: predicated region body
PF: predicated region fallthrough
CT: control target
= control target key end

     0   :  { %s307_s1 = inlined_call_operand.vmem [shape: bf16[128,128], index: 1, kind: input, shape index: {}]   ;;  %s308_s0 = inlined_call_operand.vmem [shape: bf16[32,128], index: 0, kind: input, shape index: {}]   ;;  %s309_s2 = inlined_call_operand.vmem [shape: f32[1,128], index: 2, kind: input, shape index: {}]   ;;  %s310_s3 = inlined_call_operand.vmem [shape: f32[32,128], index: 3, kind: output, shape index: {}]  }
   0x1   :  { %v232_v0 = vld [vmem:[%s307_s1] sm:$0xff]   ;;  %v233_v1 = vld [vmem:[%s307_s1 + $0x8] sm:$0xff]   ;;  %v234_v2 = vld [vmem:[%s307_s1 + $0x10] sm:$0xff]  }
   0x2   :  { %211 = vmatprep.subr.bf16.mxu0 %v232_v0  ;;  %v235_v3 = vld [vmem:[%s307_s1 + $0x18] sm:$0xff]   ;;  %v240_v4 = vld [vmem:[%s308_s0] sm:$0xff]   ;;  %v237_v6 = vld [vmem:[%s307_s1 + $0x28] sm:$0xff]  }
   0x3   :  { %212 = vmatpush3.bf16.msra.mxu0 %v232_v0  ;;  %227 = vmatprep.mubr.bf16.mxu0 %v240_v4  ;;  %v236_v5 = vld [vmem:[%s307_s1 + $0x20] sm:$0xff]   ;;  %v238_v7 = vld [vmem:[%s307_s1 + $0x30] sm:$0xff]   ;;  %v239_v8 = vld [vmem:[%s307_s1 + $0x38] sm:$0xff]  }
   0x4   :  { %213 = vmatprep.subr.bf16.mxu0 %v233_v1  ;;  %v241_v9 = vld [vmem:[%s308_s0 + $0x8] sm:$0xff]   ;;  %v200_v11 = vld [vmem:[%s309_s2] ss:$0 sm:$0xff] }
   0x7   :  { %214 = vmatpush3.bf16.msra.mxu0 %v233_v1 }
   0x8   :  { %215 = vmatprep.subr.bf16.mxu0 %v234_v2 }
   0xb   :  { %216 = vmatpush3.bf16.msra.mxu0 %v234_v2 }
   0xc   :  { %217 = vmatprep.subr.bf16.mxu0 %v235_v3 }
   0xf   :  { %218 = vmatpush3.bf16.msra.mxu0 %v235_v3 }
  0x10   :  { %219 = vmatprep.subr.bf16.mxu0 %v236_v5 }
  0x13   :  { %220 = vmatpush3.bf16.msra.mxu0 %v236_v5 }
  0x14   :  { %221 = vmatprep.subr.bf16.mxu0 %v237_v6 }
  0x17   :  { %222 = vmatpush3.bf16.msra.mxu0 %v237_v6 }
  0x18   :  { %223 = vmatprep.subr.bf16.mxu0 %v238_v7 }
  0x1b   :  { %224 = vmatpush3.bf16.msra.mxu0 %v238_v7 }
  0x1c   :  { %225 = vmatprep.subr.bf16.mxu0 %v239_v8 }
  0x1f   :  { %226 = vmatpush3.bf16.msra.mxu0 %v239_v8 }
  0x22   :  { %228 = vmatmul.mubr.bf16.vlgmr.msra.gmra.mrb[0].mxu0 %v241_v9 }
  0xf5   :  { %v229_v10 = vpop.f32.mrb[0].mxu0 }
  0xf6   :  { %v141_v12 = vpop.f32.mrb[1].mxu0  ;;  %v180_v14 = vadd.f32 %v229_v10, %v200_v11 }
  0xf7   :  { %v230_v13 = vpop.f32.mrb[2].mxu0  ;;  %v178_v16 = vadd.f32 %v200_v11, %v141_v12 }
  0xf8   :  { %v144_v15 = vpop.f32.mrb[3].mxu0  ;;  %184 = vst [vmem:[%s310_s3 + $0x10] sm:$0xff] %v180_v14  ;;  %v181_v17 = vadd.f32 %v230_v13, %v200_v11 }
  0xf9   :  { %182 = vst [vmem:[%s310_s3] sm:$0xff] %v178_v16  ;;  %v179_v18 = vadd.f32 %v200_v11, %v144_v15 }
  0xfa   :  { %185 = vst [vmem:[%s310_s3 + $0x18] sm:$0xff] %v181_v17 }
  0xfb   :  { %183 = vst [vmem:[%s310_s3 + $0x8] sm:$0xff] %v179_v18 }

// kernel: generator_forward.49
= control target key start
LH: loop header
LB: loop body
LE: loop exit
PB: predicated region body
PF: predicated region fallthrough
CT: control target
= control target key end

     0   :  { %s2211_s12 = smov 0   ;;  %s2213_s13 = smov 0   ;;  %s2484_s0 = inlined_call_operand.vmem [shape: bf16[512,512], index: 0, kind: input, shape index: {}]   ;;  %s2485_s1 = inlined_call_operand.vmem [shape: bf16[512,128], index: 1, kind: input, shape index: {}]   ;;  %s2486_s2 = inlined_call_operand.vmem [shape: f32[1,128], index: 2, kind: input, shape index: {}]   ;;  %s2487_s3 = inlined_call_operand.vmem [shape: f32[512,128], index: 3, kind: output, shape index: {}]  }
   0x1   :  { %s2215_s14 = smov 0  }
   0x2 LB: > { %s32_s15 = sadd.s32 1, %s2185_s13  ;;  %p1620_p0 = scmp.ge.s32.totalorder %s2189_s14, 1  ;;  %s2189_s14 = sphi %s2215_s14, %s13_s14   ;;  %s2185_s13 = sphi %s2213_s13, %s2489_s13   ;;  %s2181_s12 = sphi %s2211_s12, %s2488_s12  }
   0x3   : > { %p34_p1 = scmp.ge.s32.totalorder %s32_s15, 2  ;;  %p191_p2 = scmp.lt.s32.totalorder %s2189_s14, 3 }
   0x5   : > { %s2491_s15 = smov (%p34_p1, %s32_s15), 0  ;;  %p192_p3 = pnand %p1620_p0, %p191_p2 }
   0x6   : > { %v1975_v0 = vld [vmem:[%s2485_s1 + $0x40] sm:$0xff] (!%p192_p3)   ;;  %v1979_v4 = vld [vmem:[%s2485_s1 + $0x48] sm:$0xff] (!%p192_p3)   ;;  %v1983_v8 = vld [vmem:[%s2485_s1 + $0x50] sm:$0xff] (!%p192_p3)   ;;  %s1621_s25 = sshll.u32 (!%p192_p3), %s2181_s12, 5 }
   0x7   : > { %195 = sbr.rel (%p192_p3) target bundleno = 394 (0x18a), region = 32  ;;  %v1976_v1 = vld [vmem:[%s2485_s1 + $0xc0] sm:$0xff] (!%p192_p3)   ;;  %1726 = vmatprep.subr.bf16.mxu0 (!%p192_p3), %v1975_v0  ;;  %v1980_v5 = vld [vmem:[%s2485_s1 + $0xc8] sm:$0xff] (!%p192_p3)   ;;  %v1984_v9 = vld [vmem:[%s2485_s1 + $0xd0] sm:$0xff] (!%p192_p3)   ;;  %p236_p4 = scmp.lt.s32.totalorder (!%p192_p3), %s1621_s25, 63 }
   0x8   : > { %v1977_v2 = vld [vmem:[%s2485_s1] sm:$0xff] (!%p192_p3)   ;;  %1838 = vmatprep.subr.bf16.mxu1 (!%p192_p3), %v1976_v1  ;;  %v1981_v6 = vld [vmem:[%s2485_s1 + $0x8] sm:$0xff] (!%p192_p3)   ;;  %v1985_v10 = vld [vmem:[%s2485_s1 + $0x10] sm:$0xff] (!%p192_p3)  }
   0x9   : > { %v1978_v3 = vld [vmem:[%s2485_s1 + $0x80] sm:$0xff] (!%p192_p3)   ;;  %1727 = vmatpush3.bf16.msra.mxu0 (!%p192_p3), %v1977_v2  ;;  %v1982_v7 = vld [vmem:[%s2485_s1 + $0x88] sm:$0xff] (!%p192_p3)   ;;  %v1986_v11 = vld [vmem:[%s2485_s1 + $0x90] sm:$0xff] (!%p192_p3)  }
   0xa   : > { %1839 = vmatpush3.bf16.msra.mxu1 (!%p192_p3), %v1978_v3  ;;  %1728 = vmatprep.subr.bf16.mxu0 (!%p192_p3), %v1979_v4  ;;  %v1987_v12 = vld [vmem:[%s2485_s1 + $0x58] sm:$0xff] (!%p192_p3)   ;;  %v1991_v16 = vld [vmem:[%s2485_s1 + $0x60] sm:$0xff] (!%p192_p3)   ;;  %v1995_v20 = vld [vmem:[%s2485_s1 + $0x68] sm:$0xff] (!%p192_p3)  }
   0xb   : > { %1840 = vmatprep.subr.bf16.mxu1 (!%p192_p3), %v1980_v5  ;;  %v1988_v13 = vld [vmem:[%s2485_s1 + $0xd8] sm:$0xff] (!%p192_p3)   ;;  %v1992_v17 = vld [vmem:[%s2485_s1 + $0xe0] sm:$0xff] (!%p192_p3)   ;;  %v1996_v21 = vld [vmem:[%s2485_s1 + $0xe8] sm:$0xff] (!%p192_p3)  }
   0xc   : > { %v1989_v14 = vld [vmem:[%s2485_s1 + $0x18] sm:$0xff] (!%p192_p3)   ;;  %v1993_v18 = vld [vmem:[%s2485_s1 + $0x20] sm:$0xff] (!%p192_p3)   ;;  %v1997_v22 = vld [vmem:[%s2485_s1 + $0x28] sm:$0xff] (!%p192_p3)  }
   0xd   : > { %1729 = vmatpush3.bf16.msra.mxu0 (!%p192_p3), %v1981_v6  ;;  %v1990_v15 = vld [vmem:[%s2485_s1 + $0x98] sm:$0xff] (!%p192_p3)   ;;  %v1994_v19 = vld [vmem:[%s2485_s1 + $0xa0] sm:$0xff] (!%p192_p3)   ;;  %v1998_v23 = vld [vmem:[%s2485_s1 + $0xa8] sm:$0xff] (!%p192_p3)  }
   0xe   : > { %1841 = vmatpush3.bf16.msra.mxu1 %v1982_v7  ;;  %1730 = vmatprep.subr.bf16.mxu0 %v1983_v8  ;;  %s2493_s25 = smov (!%p236_p4, %s1621_s25), 63  ;;  %v1999_v24 = vld [vmem:[%s2485_s1 + $0x70] sm:$0xff]   ;;  %v2003_v28 = vld [vmem:[%s2485_s1 + $0x78] sm:$0xff]  }
   0xf   : > { %1842 = vmatprep.subr.bf16.mxu1 %v1984_v9  ;;  %v2000_v25 = vld [vmem:[%s2485_s1 + $0xf0] sm:$0xff]   ;;  %s1725_s24 = sshll.u32 %s2493_s25, 4  ;;  %v2004_v29 = vld [vmem:[%s2485_s1 + $0xf8] sm:$0xff]   ;;  %s1625_s17 = sshll.u32 %s2493_s25, 3 }
  0x10   : > { %v2001_v26 = vld [vmem:[%s2485_s1 + $0x30] sm:$0xff]   ;;  %s2328_s12 = scalar_lea.vmem %s2484_s0, %s1725_s24  ;;  %v2005_v30 = vld [vmem:[%s2485_s1 + $0x38] sm:$0xff]   ;;  %s2412_s20 = scalar_lea.vmem %s2487_s3, %s1625_s17 }
  0x11   : > { %1731 = vmatpush3.bf16.msra.mxu0 %v1985_v10  ;;  %v2002_v27 = vld [vmem:[%s2485_s1 + $0xb0] sm:$0xff]   ;;  %v2006_v31 = vld [vmem:[%s2485_s1 + $0xb8] sm:$0xff]  }
  0x12   : > { %1843 = vmatpush3.bf16.msra.mxu1 %v1986_v11  ;;  %1732 = vmatprep.subr.bf16.mxu0 %v1987_v12  ;;  %v2007_v32 = vld [vmem:[%s2328_s12] ss:$16 sps:$4 sm:$0xff]   ;;  %v2009_v33 = vld [vmem:[%s2328_s12 + $0x4] ss:$16 sps:$4 sm:$0xff]   ;;  %v2010_v34 = vld [vmem:[%s2328_s12 + $0x8] ss:$16 sps:$4 sm:$0xff]  }
  0x13   : > { %1844 = vmatprep.subr.bf16.mxu1 %v1988_v13  ;;  %v2012_v35 = vld [vmem:[%s2328_s12 + $0xc] ss:$16 sps:$4 sm:$0xff]   ;;  %1008 = vmatprep.mubr.bf16.mxu0 %v2009_v33  ;;  %v2013_v36 = vld [vmem:[%s2328_s12 + $0x24] ss:$16 sps:$4 sm:$0xff]   ;;  %v2017_v38 = vld [vmem:[%s2328_s12 + $0x20] ss:$16 sps:$4 sm:$0xff]  }
  0x14   : > { %1169 = vmatprep.mubr.bf16.mxu1 %v2012_v35  ;;  %v2015_v37 = vld [vmem:[%s2328_s12 + $0x2c] ss:$16 sps:$4 sm:$0xff]   ;;  %v2018_v39 = vld [vmem:[%s2328_s12 + $0x28] ss:$16 sps:$4 sm:$0xff]   ;;  %v2019_v40 = vld [vmem:[%s2328_s12 + $0x44] ss:$16 sps:$4 sm:$0xff]  }
  0x15   : > { %1733 = vmatpush3.bf16.msra.mxu0 %v1989_v14  ;;  %v2021_v41 = vld [vmem:[%s2328_s12 + $0x4c] ss:$16 sps:$4 sm:$0xff]   ;;  %v2023_v42 = vld [vmem:[%s2328_s12 + $0x40] ss:$16 sps:$4 sm:$0xff]   ;;  %v2024_v43 = vld [vmem:[%s2328_s12 + $0x48] ss:$16 sps:$4 sm:$0xff]  }
  0x16   : > { %1845 = vmatpush3.bf16.msra.mxu1 %v1990_v15  ;;  %1734 = vmatprep.subr.bf16.mxu0 %v1991_v16  ;;  %v2025_v44 = vld [vmem:[%s2328_s12 + $0x64] ss:$16 sps:$4 sm:$0xff]   ;;  %v2027_v45 = vld [vmem:[%s2328_s12 + $0x6c] ss:$16 sps:$4 sm:$0xff]   ;;  %v2029_v46 = vld [vmem:[%s2328_s12 + $0x60] ss:$16 sps:$4 sm:$0xff]  }
  0x17   : > { %1846 = vmatprep.subr.bf16.mxu1 %v1992_v17  ;;  %v2030_v47 = vld [vmem:[%s2328_s12 + $0x68] ss:$16 sps:$4 sm:$0xff]   ;;  %v2031_v48 = vld [vmem:[%s2328_s12 + $0x84] ss:$16 sps:$4 sm:$0xff]   ;;  %v2033_v49 = vld [vmem:[%s2328_s12 + $0x8c] ss:$16 sps:$4 sm:$0xff]  }
  0x18   : > { %v2035_v50 = vld [vmem:[%s2328_s12 + $0x80] ss:$16 sps:$4 sm:$0xff]   ;;  %v2036_v51 = vld [vmem:[%s2328_s12 + $0x88] ss:$16 sps:$4 sm:$0xff]   ;;  %v2037_v52 = vld [vmem:[%s2328_s12 + $0xa4] ss:$16 sps:$4 sm:$0xff]  }
  0x19   : > { %1735 = vmatpush3.bf16.msra.mxu0 %v1993_v18  ;;  %v2039_v53 = vld [vmem:[%s2328_s12 + $0xac] ss:$16 sps:$4 sm:$0xff]   ;;  %v2041_v54 = vld [vmem:[%s2328_s12 + $0xa0] ss:$16 sps:$4 sm:$0xff]   ;;  %v2042_v55 = vld [vmem:[%s2328_s12 + $0xa8] ss:$16 sps:$4 sm:$0xff]  }
  0x1a   : > { %1847 = vmatpush3.bf16.msra.mxu1 %v1994_v19  ;;  %1736 = vmatprep.subr.bf16.mxu0 %v1995_v20  ;;  %v2043_v56 = vld [vmem:[%s2328_s12 + $0xc4] ss:$16 sps:$4 sm:$0xff]   ;;  %v2045_v57 = vld [vmem:[%s2328_s12 + $0xcc] ss:$16 sps:$4 sm:$0xff]   ;;  %v2047_v58 = vld [vmem:[%s2328_s12 + $0xc0] ss:$16 sps:$4 sm:$0xff]  }
  0x1b   : > { %1848 = vmatprep.subr.bf16.mxu1 %v1996_v21  ;;  %v2048_v59 = vld [vmem:[%s2328_s12 + $0xc8] ss:$16 sps:$4 sm:$0xff]   ;;  %v2049_v60 = vld [vmem:[%s2328_s12 + $0xe4] ss:$16 sps:$4 sm:$0xff]   ;;  %v2051_v61 = vld [vmem:[%s2328_s12 + $0xec] ss:$16 sps:$4 sm:$0xff]  }
  0x1c   : > { %v2053_v62 = vld [vmem:[%s2328_s12 + $0xe0] ss:$16 sps:$4 sm:$0xff]   ;;  %v2054_v63 = vld [vmem:[%s2328_s12 + $0xe8] ss:$16 sps:$4 sm:$0xff]   ;;  %v2055_v0 = vld [vmem:[%s2328_s12 + $0x104] ss:$16 sps:$4 sm:$0xff]  }
  0x1d   : > { %1737 = vmatpush3.bf16.msra.mxu0 %v1997_v22  ;;  %v2057_v1 = vld [vmem:[%s2328_s12 + $0x10c] ss:$16 sps:$4 sm:$0xff]   ;;  %v2059_v2 = vld [vmem:[%s2328_s12 + $0x100] ss:$16 sps:$4 sm:$0xff]   ;;  %v2060_v3 = vld [vmem:[%s2328_s12 + $0x108] ss:$16 sps:$4 sm:$0xff]  }
  0x1e   : > { %1849 = vmatpush3.bf16.msra.mxu1 %v1998_v23  ;;  %1738 = vmatprep.subr.bf16.mxu0 %v1999_v24  ;;  %v2061_v4 = vld [vmem:[%s2328_s12 + $0x124] ss:$16 sps:$4 sm:$0xff]   ;;  %v2063_v5 = vld [vmem:[%s2328_s12 + $0x12c] ss:$16 sps:$4 sm:$0xff]   ;;  %v2065_v6 = vld [vmem:[%s2328_s12 + $0x120] ss:$16 sps:$4 sm:$0xff]  }
  0x1f   : > { %1850 = vmatprep.subr.bf16.mxu1 %v2000_v25  ;;  %v2066_v7 = vld [vmem:[%s2328_s12 + $0x128] ss:$16 sps:$4 sm:$0xff]   ;;  %v2067_v8 = vld [vmem:[%s2328_s12 + $0x144] ss:$16 sps:$4 sm:$0xff]   ;;  %v2069_v9 = vld [vmem:[%s2328_s12 + $0x14c] ss:$16 sps:$4 sm:$0xff]  }
  0x20   : > { %v2071_v10 = vld [vmem:[%s2328_s12 + $0x140] ss:$16 sps:$4 sm:$0xff]   ;;  %v2072_v11 = vld [vmem:[%s2328_s12 + $0x148] ss:$16 sps:$4 sm:$0xff]   ;;  %v2073_v12 = vld [vmem:[%s2328_s12 + $0x164] ss:$16 sps:$4 sm:$0xff]  }
  0x21   : > { %1739 = vmatpush3.bf16.msra.mxu0 %v2001_v26  ;;  %v2075_v13 = vld [vmem:[%s2328_s12 + $0x16c] ss:$16 sps:$4 sm:$0xff]   ;;  %v2077_v14 = vld [vmem:[%s2328_s12 + $0x160] ss:$16 sps:$4 sm:$0xff]   ;;  %v2078_v15 = vld [vmem:[%s2328_s12 + $0x168] ss:$16 sps:$4 sm:$0xff]  }
  0x22   : > { %1851 = vmatpush3.bf16.msra.mxu1 %v2002_v27  ;;  %1740 = vmatprep.subr.bf16.mxu0 %v2003_v28  ;;  %v2079_v16 = vld [vmem:[%s2328_s12 + $0x184] ss:$16 sps:$4 sm:$0xff]   ;;  %v2081_v17 = vld [vmem:[%s2328_s12 + $0x18c] ss:$16 sps:$4 sm:$0xff]   ;;  %v2083_v18 = vld [vmem:[%s2328_s12 + $0x180] ss:$16 sps:$4 sm:$0xff]  }
  0x23   : > { %1852 = vmatprep.subr.bf16.mxu1 %v2004_v29  ;;  %v2084_v19 = vld [vmem:[%s2328_s12 + $0x188] ss:$16 sps:$4 sm:$0xff]   ;;  %v2085_v20 = vld [vmem:[%s2328_s12 + $0x1a4] ss:$16 sps:$4 sm:$0xff]   ;;  %v2087_v21 = vld [vmem:[%s2328_s12 + $0x1ac] ss:$16 sps:$4 sm:$0xff]  }
  0x24   : > { %v2089_v22 = vld [vmem:[%s2328_s12 + $0x1a0] ss:$16 sps:$4 sm:$0xff]   ;;  %v2090_v23 = vld [vmem:[%s2328_s12 + $0x1a8] ss:$16 sps:$4 sm:$0xff]   ;;  %v2091_v24 = vld [vmem:[%s2328_s12 + $0x1c4] ss:$16 sps:$4 sm:$0xff]  }
  0x25   : > { %1741 = vmatpush3.bf16.msra.mxu0 %v2005_v30  ;;  %v2093_v25 = vld [vmem:[%s2328_s12 + $0x1cc] ss:$16 sps:$4 sm:$0xff]   ;;  %v2095_v26 = vld [vmem:[%s2328_s12 + $0x1c0] ss:$16 sps:$4 sm:$0xff]   ;;  %v2096_v27 = vld [vmem:[%s2328_s12 + $0x1c8] ss:$16 sps:$4 sm:$0xff]  }
  0x26   : > { %1853 = vmatpush3.bf16.msra.mxu1 %v2006_v31  ;;  %v2097_v28 = vld [vmem:[%s2328_s12 + $0x1e4] ss:$16 sps:$4 sm:$0xff]   ;;  %v2099_v29 = vld [vmem:[%s2328_s12 + $0x1ec] ss:$16 sps:$4 sm:$0xff]   ;;  %v2101_v30 = vld [vmem:[%s2328_s12 + $0x1e0] ss:$16 sps:$4 sm:$0xff]  }
  0x27   : > { %v2102_v31 = vld [vmem:[%s2328_s12 + $0x1e8] ss:$16 sps:$4 sm:$0xff]  }
  0x28   : > { %1009 = vmatmul.mubr.bf16.vlgmr.msra.gmra.mrb[0].mxu0 %v2007_v32 }
  0x29   : > { %1170 = vmatmul.mubr.bf16.vlgmr.msra.gmra.mrb[0].mxu1 %v2010_v34  ;;  %1016 = vmatprep.mubr.bf16.mxu0 %v2013_v36 }
  0x2a   : > { %1177 = vmatprep.mubr.bf16.mxu1 %v2015_v37 }
  0x30   : > { %1017 = vmatmul.mubr.bf16.gmra.mrb[4].mxu0 %v2017_v38 }
  0x31   : > { %1178 = vmatmul.mubr.bf16.gmra.mrb[4].mxu1 %v2018_v39  ;;  %1024 = vmatprep.mubr.bf16.mxu0 %v2019_v40 }
  0x32   : > { %1185 = vmatprep.mubr.bf16.mxu1 %v2021_v41 }
  0x38   : > { %1025 = vmatmul.mubr.bf16.gmra.mrb[8].mxu0 %v2023_v42 }
  0x39   : > { %1186 = vmatmul.mubr.bf16.gmra.mrb[8].mxu1 %v2024_v43  ;;  %1032 = vmatprep.mubr.bf16.mxu0 %v2025_v44 }
  0x3a   : > { %1193 = vmatprep.mubr.bf16.mxu1 %v2027_v45  ;;  %v2403_v45 = vld [vmem:[%s2486_s2] ss:$0 sm:$0xff] }
  0x40   : > { %1033 = vmatmul.mubr.bf16.gmra.mrb[12].mxu0 %v2029_v46 }
  0x41   : > { %1194 = vmatmul.mubr.bf16.gmra.mrb[12].mxu1 %v2030_v47  ;;  %1040 = vmatprep.mubr.bf16.mxu0 %v2031_v48 }
  0x42   : > { %1201 = vmatprep.mubr.bf16.mxu1 %v2033_v49 }
  0x48   : > { %1041 = vmatmul.mubr.bf16.gmra.mrb[16].mxu0 %v2035_v50 }
  0x49   : > { %1202 = vmatmul.mubr.bf16.gmra.mrb[16].mxu1 %v2036_v51  ;;  %1048 = vmatprep.mubr.bf16.mxu0 %v2037_v52 }
  0x4a   : > { %1209 = vmatprep.mubr.bf16.mxu1 %v2039_v53 }
  0x50   : > { %1049 = vmatmul.mubr.bf16.gmra.mrb[20].mxu0 %v2041_v54 }
  0x51   : > { %1210 = vmatmul.mubr.bf16.gmra.mrb[20].mxu1 %v2042_v55  ;;  %1056 = vmatprep.mubr.bf16.mxu0 %v2043_v56 }
  0x52   : > { %1217 = vmatprep.mubr.bf16.mxu1 %v2045_v57 }
  0x58   : > { %1057 = vmatmul.mubr.bf16.gmra.mrb[24].mxu0 %v2047_v58 }
  0x59   : > { %1218 = vmatmul.mubr.bf16.gmra.mrb[24].mxu1 %v2048_v59  ;;  %1064 = vmatprep.mubr.bf16.mxu0 %v2049_v60 }
  0x5a   : > { %1225 = vmatprep.mubr.bf16.mxu1 %v2051_v61 }
  0x60   : > { %1065 = vmatmul.mubr.bf16.gmra.mrb[28].mxu0 %v2053_v62 }
  0x61   : > { %1226 = vmatmul.mubr.bf16.gmra.mrb[28].mxu1 %v2054_v63  ;;  %1072 = vmatprep.mubr.bf16.mxu0 %v2055_v0 }
  0x62   : > { %1233 = vmatprep.mubr.bf16.mxu1 %v2057_v1 }
  0x68   : > { %1073 = vmatmul.mubr.bf16.gmra.mrb[32].mxu0 %v2059_v2 }
  0x69   : > { %1234 = vmatmul.mubr.bf16.gmra.mrb[32].mxu1 %v2060_v3  ;;  %1080 = vmatprep.mubr.bf16.mxu0 %v2061_v4 }
  0x6a   : > { %1241 = vmatprep.mubr.bf16.mxu1 %v2063_v5 }
  0x70   : > { %1081 = vmatmul.mubr.bf16.gmra.mrb[36].mxu0 %v2065_v6 }
  0x71   : > { %1242 = vmatmul.mubr.bf16.gmra.mrb[36].mxu1 %v2066_v7  ;;  %1088 = vmatprep.mubr.bf16.mxu0 %v2067_v8 }
  0x72   : > { %1249 = vmatprep.mubr.bf16.mxu1 %v2069_v9 }
  0x78   : > { %1089 = vmatmul.mubr.bf16.gmra.mrb[40].mxu0 %v2071_v10 }
  0x79   : > { %1250 = vmatmul.mubr.bf16.gmra.mrb[40].mxu1 %v2072_v11  ;;  %1096 = vmatprep.mubr.bf16.mxu0 %v2073_v12 }
  0x7a   : > { %1257 = vmatprep.mubr.bf16.mxu1 %v2075_v13 }
  0x80   : > { %1097 = vmatmul.mubr.bf16.gmra.mrb[44].mxu0 %v2077_v14 }
  0x81   : > { %1258 = vmatmul.mubr.bf16.gmra.mrb[44].mxu1 %v2078_v15  ;;  %1104 = vmatprep.mubr.bf16.mxu0 %v2079_v16 }
  0x82   : > { %1265 = vmatprep.mubr.bf16.mxu1 %v2081_v17 }
  0x88   : > { %1105 = vmatmul.mubr.bf16.gmra.mrb[48].mxu0 %v2083_v18 }
  0x89   : > { %1266 = vmatmul.mubr.bf16.gmra.mrb[48].mxu1 %v2084_v19  ;;  %1112 = vmatprep.mubr.bf16.mxu0 %v2085_v20 }
  0x8a   : > { %1273 = vmatprep.mubr.bf16.mxu1 %v2087_v21 }
  0x90   : > { %1113 = vmatmul.mubr.bf16.gmra.mrb[52].mxu0 %v2089_v22 }
  0x91   : > { %1274 = vmatmul.mubr.bf16.gmra.mrb[52].mxu1 %v2090_v23  ;;  %1120 = vmatprep.mubr.bf16.mxu0 %v2091_v24 }
  0x92   : > { %1281 = vmatprep.mubr.bf16.mxu1 %v2093_v25 }
  0x98   : > { %1121 = vmatmul.mubr.bf16.gmra.mrb[56].mxu0 %v2095_v26 }
  0x99   : > { %1282 = vmatmul.mubr.bf16.gmra.mrb[56].mxu1 %v2096_v27  ;;  %1128 = vmatprep.mubr.bf16.mxu0 %v2097_v28 }
  0x9a   : > { %1289 = vmatprep.mubr.bf16.mxu1 %v2099_v29 }
  0xa0   : > { %1129 = vmatmul.mubr.bf16.gmra.mrb[60].mxu0 %v2101_v30 }
  0xa1   : > { %1290 = vmatmul.mubr.bf16.gmra.mrb[60].mxu1 %v2102_v31 }
  0xfb   : > { %v1742_v32 = vpop.f32.mrb[0].mxu0 }
  0xfc   : > { %v1854_v33 = vpop.f32.mrb[0].mxu1  ;;  %v1743_v34 = vpop.f32.mrb[1].mxu0 }
  0xfd   : > { %v1744_v35 = vadd.f32 %v1743_v34, %v1742_v32  ;;  %v1855_v36 = vpop.f32.mrb[1].mxu1  ;;  %v1745_v37 = vpop.f32.mrb[2].mxu0 }
  0xfe   : > { %v1856_v38 = vadd.f32 %v1855_v36, %v1854_v33  ;;  %v1857_v39 = vpop.f32.mrb[2].mxu1  ;;  %v1746_v40 = vpop.f32.mrb[3].mxu0 }
  0xff   : > { %v1747_v41 = vadd.f32 %v1746_v40, %v1745_v37  ;;  %v1858_v42 = vpop.f32.mrb[3].mxu1 }
 0x100   : > { %v1172_v43 = vadd.f32 %v1856_v38, %v1744_v35  ;;  %v1859_v44 = vadd.f32 %v1858_v42, %v1857_v39 }
 0x102   : > { %v1175_v46 = vadd.f32 %v1859_v44, %v1747_v41  ;;  %v1404_v48 = vadd.f32 %v2403_v45, %v1172_v43 }
 0x103   : > { %v1748_v47 = vpop.f32.mrb[4].mxu0 }
 0x104   : > { %v1860_v49 = vpop.f32.mrb[4].mxu1  ;;  %v1749_v50 = vpop.f32.mrb[5].mxu0  ;;  %2103 = vtanh.f32 %v1404_v48  ;;  %v1405_v54 = vadd.f32 %v2403_v45, %v1175_v46 }
 0x105   : > { %v1750_v51 = vadd.f32 %v1749_v50, %v1748_v47  ;;  %v1861_v52 = vpop.f32.mrb[5].mxu1  ;;  %v1751_v53 = vpop.f32.mrb[6].mxu0 }
 0x106   : > { %v1862_v55 = vadd.f32 %v1861_v52, %v1860_v49  ;;  %v1863_v56 = vpop.f32.mrb[6].mxu1  ;;  %v1752_v57 = vpop.f32.mrb[7].mxu0  ;;  %2105 = vtanh.f32 %v1405_v54 }
 0x107   : > { %v1753_v58 = vadd.f32 %v1752_v57, %v1751_v53  ;;  %v1864_v59 = vpop.f32.mrb[7].mxu1 }
 0x108   : > { %v1180_v60 = vadd.f32 %v1862_v55, %v1750_v51  ;;  %v1865_v61 = vadd.f32 %v1864_v59, %v1863_v56 }
 0x10a   : > { %v1183_v62 = vadd.f32 %v1865_v61, %v1753_v58  ;;  %v1406_v0 = vadd.f32 %v2403_v45, %v1180_v60 }
 0x10b   : > { %v1754_v63 = vpop.f32.mrb[8].mxu0 }
 0x10c   : > { %v1866_v1 = vpop.f32.mrb[8].mxu1  ;;  %v1755_v2 = vpop.f32.mrb[9].mxu0  ;;  %2107 = vtanh.f32 %v1406_v0  ;;  %v1407_v6 = vadd.f32 %v2403_v45, %v1183_v62 }
 0x10d   : > { %v1756_v3 = vadd.f32 %v1755_v2, %v1754_v63  ;;  %v1867_v4 = vpop.f32.mrb[9].mxu1  ;;  %v1757_v5 = vpop.f32.mrb[10].mxu0 }
 0x10e   : > { %v1868_v7 = vadd.f32 %v1867_v4, %v1866_v1  ;;  %v1869_v8 = vpop.f32.mrb[10].mxu1  ;;  %v1758_v9 = vpop.f32.mrb[11].mxu0  ;;  %2109 = vtanh.f32 %v1407_v6 }
 0x10f   : > { %v1759_v10 = vadd.f32 %v1758_v9, %v1757_v5  ;;  %v1870_v11 = vpop.f32.mrb[11].mxu1  ;;  %v2104_v12 = vpop.eup %2103 }
 0x110   : > { %v1188_v13 = vadd.f32 %v1868_v7, %v1756_v3  ;;  %v1871_v14 = vadd.f32 %v1870_v11, %v1869_v8  ;;  %1468 = vst [vmem:[%s2412_s20] sm:$0xff] %v2104_v12  ;;  %v2106_v15 = vpop.eup %2105 }
 0x111   : > { %1469 = vst [vmem:[%s2412_s20 + $0x8] sm:$0xff] %v2106_v15 }
 0x112   : > { %v1191_v16 = vadd.f32 %v1871_v14, %v1759_v10  ;;  %v1408_v18 = vadd.f32 %v2403_v45, %v1188_v13 }
 0x113   : > { %v1760_v17 = vpop.f32.mrb[12].mxu0 }
 0x114   : > { %v1872_v19 = vpop.f32.mrb[12].mxu1  ;;  %v1761_v20 = vpop.f32.mrb[13].mxu0  ;;  %2111 = vtanh.f32 %v1408_v18  ;;  %v1409_v24 = vadd.f32 %v2403_v45, %v1191_v16 }
 0x115   : > { %v1762_v21 = vadd.f32 %v1761_v20, %v1760_v17  ;;  %v1873_v22 = vpop.f32.mrb[13].mxu1  ;;  %v1763_v23 = vpop.f32.mrb[14].mxu0 }
 0x116   : > { %v1874_v25 = vadd.f32 %v1873_v22, %v1872_v19  ;;  %v1875_v26 = vpop.f32.mrb[14].mxu1  ;;  %v1764_v27 = vpop.f32.mrb[15].mxu0  ;;  %2113 = vtanh.f32 %v1409_v24 }
 0x117   : > { %v1765_v28 = vadd.f32 %v1764_v27, %v1763_v23  ;;  %v1876_v29 = vpop.f32.mrb[15].mxu1  ;;  %v2108_v30 = vpop.eup %2107 }
 0x118   : > { %v1196_v31 = vadd.f32 %v1874_v25, %v1762_v21  ;;  %v1877_v32 = vadd.f32 %v1876_v29, %v1875_v26  ;;  %1470 = vst [vmem:[%s2412_s20 + $0x10] sm:$0xff] %v2108_v30  ;;  %v2110_v33 = vpop.eup %2109 }
 0x119   : > { %1471 = vst [vmem:[%s2412_s20 + $0x18] sm:$0xff] %v2110_v33 }
 0x11a   : > { %v1199_v34 = vadd.f32 %v1877_v32, %v1765_v28  ;;  %v1410_v36 = vadd.f32 %v2403_v45, %v1196_v31 }
 0x11b   : > { %v1766_v35 = vpop.f32.mrb[16].mxu0 }
 0x11c   : > { %v1878_v37 = vpop.f32.mrb[16].mxu1  ;;  %v1767_v38 = vpop.f32.mrb[17].mxu0  ;;  %2115 = vtanh.f32 %v1410_v36  ;;  %v1411_v42 = vadd.f32 %v2403_v45, %v1199_v34 }
 0x11d   : > { %v1768_v39 = vadd.f32 %v1767_v38, %v1766_v35  ;;  %v1879_v40 = vpop.f32.mrb[17].mxu1  ;;  %v1769_v41 = vpop.f32.mrb[18].mxu0 }
 0x11e   : > { %v1880_v43 = vadd.f32 %v1879_v40, %v1878_v37  ;;  %v1881_v44 = vpop.f32.mrb[18].mxu1  ;;  %v1770_v46 = vpop.f32.mrb[19].mxu0  ;;  %2117 = vtanh.f32 %v1411_v42 }
 0x11f   : > { %v1771_v47 = vadd.f32 %v1770_v46, %v1769_v41  ;;  %v1882_v48 = vpop.f32.mrb[19].mxu1  ;;  %v2112_v49 = vpop.eup %2111 }
 0x120   : > { %v1204_v50 = vadd.f32 %v1880_v43, %v1768_v39  ;;  %v1883_v51 = vadd.f32 %v1882_v48, %v1881_v44  ;;  %1472 = vst [vmem:[%s2412_s20 + $0x20] sm:$0xff] %v2112_v49  ;;  %v2114_v52 = vpop.eup %2113 }
 0x121   : > { %1473 = vst [vmem:[%s2412_s20 + $0x28] sm:$0xff] %v2114_v52 }
 0x122   : > { %v1207_v53 = vadd.f32 %v1883_v51, %v1771_v47  ;;  %v1412_v55 = vadd.f32 %v2403_v45, %v1204_v50 }
 0x123   : > { %v1772_v54 = vpop.f32.mrb[20].mxu0 }
 0x124   : > { %v1884_v56 = vpop.f32.mrb[20].mxu1  ;;  %v1773_v57 = vpop.f32.mrb[21].mxu0  ;;  %2119 = vtanh.f32 %v1412_v55  ;;  %v1413_v61 = vadd.f32 %v2403_v45, %v1207_v53 }
 0x125   : > { %v1774_v58 = vadd.f32 %v1773_v57, %v1772_v54  ;;  %v1885_v59 = vpop.f32.mrb[21].mxu1  ;;  %v1775_v60 = vpop.f32.mrb[22].mxu0 }
 0x126   : > { %v1886_v62 = vadd.f32 %v1885_v59, %v1884_v56  ;;  %v1887_v63 = vpop.f32.mrb[22].mxu1  ;;  %v1776_v0 = vpop.f32.mrb[23].mxu0  ;;  %2121 = vtanh.f32 %v1413_v61 }
 0x127   : > { %v1777_v1 = vadd.f32 %v1776_v0, %v1775_v60  ;;  %v1888_v2 = vpop.f32.mrb[23].mxu1  ;;  %v2116_v3 = vpop.eup %2115 }
 0x128   : > { %v1212_v4 = vadd.f32 %v1886_v62, %v1774_v58  ;;  %v1889_v5 = vadd.f32 %v1888_v2, %v1887_v63  ;;  %1474 = vst [vmem:[%s2412_s20 + $0x30] sm:$0xff] %v2116_v3  ;;  %v2118_v6 = vpop.eup %2117 }
 0x129   : > { %1475 = vst [vmem:[%s2412_s20 + $0x38] sm:$0xff] %v2118_v6 }
 0x12a   : > { %v1215_v7 = vadd.f32 %v1889_v5, %v1777_v1  ;;  %v1414_v9 = vadd.f32 %v2403_v45, %v1212_v4 }
 0x12b   : > { %v1778_v8 = vpop.f32.mrb[24].mxu0 }
 0x12c   : > { %v1890_v10 = vpop.f32.mrb[24].mxu1  ;;  %v1779_v11 = vpop.f32.mrb[25].mxu0  ;;  %2123 = vtanh.f32 %v1414_v9  ;;  %v1415_v15 = vadd.f32 %v2403_v45, %v1215_v7 }
 0x12d   : > { %v1780_v12 = vadd.f32 %v1779_v11, %v1778_v8  ;;  %v1891_v13 = vpop.f32.mrb[25].mxu1  ;;  %v1781_v14 = vpop.f32.mrb[26].mxu0 }
 0x12e   : > { %v1892_v16 = vadd.f32 %v1891_v13, %v1890_v10  ;;  %v1893_v17 = vpop.f32.mrb[26].mxu1  ;;  %v1782_v18 = vpop.f32.mrb[27].mxu0  ;;  %2125 = vtanh.f32 %v1415_v15 }
 0x12f   : > { %v1783_v19 = vadd.f32 %v1782_v18, %v1781_v14  ;;  %v1894_v20 = vpop.f32.mrb[27].mxu1  ;;  %v2120_v21 = vpop.eup %2119 }
 0x130   : > { %v1220_v22 = vadd.f32 %v1892_v16, %v1780_v12  ;;  %v1895_v23 = vadd.f32 %v1894_v20, %v1893_v17  ;;  %1476 = vst [vmem:[%s2412_s20 + $0x40] sm:$0xff] %v2120_v21  ;;  %v2122_v24 = vpop.eup %2121 }
 0x131   : > { %1477 = vst [vmem:[%s2412_s20 + $0x48] sm:$0xff] %v2122_v24 }
 0x132   : > { %v1223_v25 = vadd.f32 %v1895_v23, %v1783_v19  ;;  %v1416_v27 = vadd.f32 %v2403_v45, %v1220_v22 }
 0x133   : > { %v1784_v26 = vpop.f32.mrb[28].mxu0 }
 0x134   : > { %v1896_v28 = vpop.f32.mrb[28].mxu1  ;;  %v1785_v29 = vpop.f32.mrb[29].mxu0  ;;  %2127 = vtanh.f32 %v1416_v27  ;;  %v1417_v33 = vadd.f32 %v2403_v45, %v1223_v25 }
 0x135   : > { %v1786_v30 = vadd.f32 %v1785_v29, %v1784_v26  ;;  %v1897_v31 = vpop.f32.mrb[29].mxu1  ;;  %v1787_v32 = vpop.f32.mrb[30].mxu0 }
 0x136   : > { %v1898_v34 = vadd.f32 %v1897_v31, %v1896_v28  ;;  %v1899_v35 = vpop.f32.mrb[30].mxu1  ;;  %v1788_v36 = vpop.f32.mrb[31].mxu0  ;;  %2129 = vtanh.f32 %v1417_v33 }
 0x137   : > { %v1789_v37 = vadd.f32 %v1788_v36, %v1787_v32  ;;  %v1900_v38 = vpop.f32.mrb[31].mxu1  ;;  %v2124_v39 = vpop.eup %2123 }
 0x138   : > { %v1228_v40 = vadd.f32 %v1898_v34, %v1786_v30  ;;  %v1901_v41 = vadd.f32 %v1900_v38, %v1899_v35  ;;  %1478 = vst [vmem:[%s2412_s20 + $0x50] sm:$0xff] %v2124_v39  ;;  %v2126_v42 = vpop.eup %2125 }
 0x139   : > { %1479 = vst [vmem:[%s2412_s20 + $0x58] sm:$0xff] %v2126_v42 }
 0x13a   : > { %v1231_v43 = vadd.f32 %v1901_v41, %v1789_v37  ;;  %v1418_v46 = vadd.f32 %v2403_v45, %v1228_v40 }
 0x13b   : > { %v1790_v44 = vpop.f32.mrb[32].mxu0 }
 0x13c   : > { %v1902_v47 = vpop.f32.mrb[32].mxu1  ;;  %v1791_v48 = vpop.f32.mrb[33].mxu0  ;;  %2131 = vtanh.f32 %v1418_v46  ;;  %v1419_v52 = vadd.f32 %v2403_v45, %v1231_v43 }
 0x13d   : > { %v1792_v49 = vadd.f32 %v1791_v48, %v1790_v44  ;;  %v1903_v50 = vpop.f32.mrb[33].mxu1  ;;  %v1793_v51 = vpop.f32.mrb[34].mxu0 }
 0x13e   : > { %v1904_v53 = vadd.f32 %v1903_v50, %v1902_v47  ;;  %v1905_v54 = vpop.f32.mrb[34].mxu1  ;;  %v1794_v55 = vpop.f32.mrb[35].mxu0  ;;  %2133 = vtanh.f32 %v1419_v52 }
 0x13f   : > { %v1795_v56 = vadd.f32 %v1794_v55, %v1793_v51  ;;  %v1906_v57 = vpop.f32.mrb[35].mxu1  ;;  %v2128_v58 = vpop.eup %2127 }
 0x140   : > { %v1236_v59 = vadd.f32 %v1904_v53, %v1792_v49  ;;  %v1907_v60 = vadd.f32 %v1906_v57, %v1905_v54  ;;  %1480 = vst [vmem:[%s2412_s20 + $0x60] sm:$0xff] %v2128_v58  ;;  %v2130_v61 = vpop.eup %2129 }
 0x141   : > { %1481 = vst [vmem:[%s2412_s20 + $0x68] sm:$0xff] %v2130_v61 }
 0x142   : > { %v1239_v62 = vadd.f32 %v1907_v60, %v1795_v56  ;;  %v1420_v0 = vadd.f32 %v2403_v45, %v1236_v59 }
 0x143   : > { %v1796_v63 = vpop.f32.mrb[36].mxu0 }
 0x144   : > { %v1908_v1 = vpop.f32.mrb[36].mxu1  ;;  %v1797_v2 = vpop.f32.mrb[37].mxu0  ;;  %2135 = vtanh.f32 %v1420_v0  ;;  %v1421_v6 = vadd.f32 %v2403_v45, %v1239_v62 }
 0x145   : > { %v1798_v3 = vadd.f32 %v1797_v2, %v1796_v63  ;;  %v1909_v4 = vpop.f32.mrb[37].mxu1  ;;  %v1799_v5 = vpop.f32.mrb[38].mxu0 }
 0x146   : > { %v1910_v7 = vadd.f32 %v1909_v4, %v1908_v1  ;;  %v1911_v8 = vpop.f32.mrb[38].mxu1  ;;  %v1800_v9 = vpop.f32.mrb[39].mxu0  ;;  %2137 = vtanh.f32 %v1421_v6 }
 0x147   : > { %v1801_v10 = vadd.f32 %v1800_v9, %v1799_v5  ;;  %v1912_v11 = vpop.f32.mrb[39].mxu1  ;;  %v2132_v12 = vpop.eup %2131 }
 0x148   : > { %v1244_v13 = vadd.f32 %v1910_v7, %v1798_v3  ;;  %v1913_v14 = vadd.f32 %v1912_v11, %v1911_v8  ;;  %1482 = vst [vmem:[%s2412_s20 + $0x70] sm:$0xff] %v2132_v12  ;;  %v2134_v15 = vpop.eup %2133 }
 0x149   : > { %1483 = vst [vmem:[%s2412_s20 + $0x78] sm:$0xff] %v2134_v15 }
 0x14a   : > { %v1247_v16 = vadd.f32 %v1913_v14, %v1801_v10  ;;  %v1422_v18 = vadd.f32 %v2403_v45, %v1244_v13 }
 0x14b   : > { %v1802_v17 = vpop.f32.mrb[40].mxu0 }
 0x14c   : > { %v1914_v19 = vpop.f32.mrb[40].mxu1  ;;  %v1803_v20 = vpop.f32.mrb[41].mxu0  ;;  %2139 = vtanh.f32 %v1422_v18  ;;  %v1423_v24 = vadd.f32 %v2403_v45, %v1247_v16 }
 0x14d   : > { %v1804_v21 = vadd.f32 %v1803_v20, %v1802_v17  ;;  %v1915_v22 = vpop.f32.mrb[41].mxu1  ;;  %v1805_v23 = vpop.f32.mrb[42].mxu0 }
 0x14e   : > { %v1916_v25 = vadd.f32 %v1915_v22, %v1914_v19  ;;  %v1917_v26 = vpop.f32.mrb[42].mxu1  ;;  %v1806_v27 = vpop.f32.mrb[43].mxu0  ;;  %2141 = vtanh.f32 %v1423_v24 }
 0x14f   : > { %v1807_v28 = vadd.f32 %v1806_v27, %v1805_v23  ;;  %v1918_v29 = vpop.f32.mrb[43].mxu1  ;;  %v2136_v30 = vpop.eup %2135 }
 0x150   : > { %v1252_v31 = vadd.f32 %v1916_v25, %v1804_v21  ;;  %v1919_v32 = vadd.f32 %v1918_v29, %v1917_v26  ;;  %1484 = vst [vmem:[%s2412_s20 + $0x80] sm:$0xff] %v2136_v30  ;;  %v2138_v33 = vpop.eup %2137 }
 0x151   : > { %1485 = vst [vmem:[%s2412_s20 + $0x88] sm:$0xff] %v2138_v33 }
 0x152   : > { %v1255_v34 = vadd.f32 %v1919_v32, %v1807_v28  ;;  %v1424_v36 = vadd.f32 %v2403_v45, %v1252_v31 }
 0x153   : > { %v1808_v35 = vpop.f32.mrb[44].mxu0 }
 0x154   : > { %v1920_v37 = vpop.f32.mrb[44].mxu1  ;;  %v1809_v38 = vpop.f32.mrb[45].mxu0  ;;  %2143 = vtanh.f32 %v1424_v36  ;;  %v1425_v42 = vadd.f32 %v2403_v45, %v1255_v34 }
 0x155   : > { %v1810_v39 = vadd.f32 %v1809_v38, %v1808_v35  ;;  %v1921_v40 = vpop.f32.mrb[45].mxu1  ;;  %v1811_v41 = vpop.f32.mrb[46].mxu0 }
 0x156   : > { %v1922_v43 = vadd.f32 %v1921_v40, %v1920_v37  ;;  %v1923_v44 = vpop.f32.mrb[46].mxu1  ;;  %v1812_v46 = vpop.f32.mrb[47].mxu0  ;;  %2145 = vtanh.f32 %v1425_v42 }
 0x157   : > { %v1813_v47 = vadd.f32 %v1812_v46, %v1811_v41  ;;  %v1924_v48 = vpop.f32.mrb[47].mxu1  ;;  %v2140_v49 = vpop.eup %2139 }
 0x158   : > { %v1260_v50 = vadd.f32 %v1922_v43, %v1810_v39  ;;  %v1925_v51 = vadd.f32 %v1924_v48, %v1923_v44  ;;  %1486 = vst [vmem:[%s2412_s20 + $0x90] sm:$0xff] %v2140_v49  ;;  %v2142_v52 = vpop.eup %2141 }
 0x159   : > { %1487 = vst [vmem:[%s2412_s20 + $0x98] sm:$0xff] %v2142_v52 }
 0x15a   : > { %v1263_v53 = vadd.f32 %v1925_v51, %v1813_v47  ;;  %v1426_v55 = vadd.f32 %v2403_v45, %v1260_v50 }
 0x15b   : > { %v1814_v54 = vpop.f32.mrb[48].mxu0 }
 0x15c   : > { %v1926_v56 = vpop.f32.mrb[48].mxu1  ;;  %v1815_v57 = vpop.f32.mrb[49].mxu0  ;;  %2147 = vtanh.f32 %v1426_v55  ;;  %v1427_v61 = vadd.f32 %v2403_v45, %v1263_v53 }
 0x15d   : > { %v1816_v58 = vadd.f32 %v1815_v57, %v1814_v54  ;;  %v1927_v59 = vpop.f32.mrb[49].mxu1  ;;  %v1817_v60 = vpop.f32.mrb[50].mxu0 }
 0x15e   : > { %v1928_v62 = vadd.f32 %v1927_v59, %v1926_v56  ;;  %v1929_v63 = vpop.f32.mrb[50].mxu1  ;;  %v1818_v0 = vpop.f32.mrb[51].mxu0  ;;  %2149 = vtanh.f32 %v1427_v61 }
 0x15f   : > { %v1819_v1 = vadd.f32 %v1818_v0, %v1817_v60  ;;  %v1930_v2 = vpop.f32.mrb[51].mxu1  ;;  %v2144_v3 = vpop.eup %2143 }
 0x160   : > { %v1268_v4 = vadd.f32 %v1928_v62, %v1816_v58  ;;  %v1931_v5 = vadd.f32 %v1930_v2, %v1929_v63  ;;  %1488 = vst [vmem:[%s2412_s20 + $0xa0] sm:$0xff] %v2144_v3  ;;  %v2146_v6 = vpop.eup %2145 }
 0x161   : > { %1489 = vst [vmem:[%s2412_s20 + $0xa8] sm:$0xff] %v2146_v6 }
 0x162   : > { %v1271_v7 = vadd.f32 %v1931_v5, %v1819_v1  ;;  %v1428_v9 = vadd.f32 %v2403_v45, %v1268_v4 }
 0x163   : > { %v1820_v8 = vpop.f32.mrb[52].mxu0 }
 0x164   : > { %v1932_v10 = vpop.f32.mrb[52].mxu1  ;;  %v1821_v11 = vpop.f32.mrb[53].mxu0  ;;  %2151 = vtanh.f32 %v1428_v9  ;;  %v1429_v15 = vadd.f32 %v2403_v45, %v1271_v7 }
 0x165   : > { %v1822_v12 = vadd.f32 %v1821_v11, %v1820_v8  ;;  %v1933_v13 = vpop.f32.mrb[53].mxu1  ;;  %v1823_v14 = vpop.f32.mrb[54].mxu0 }
 0x166   : > { %v1934_v16 = vadd.f32 %v1933_v13, %v1932_v10  ;;  %v1935_v17 = vpop.f32.mrb[54].mxu1  ;;  %v1824_v18 = vpop.f32.mrb[55].mxu0  ;;  %2153 = vtanh.f32 %v1429_v15 }
 0x167   : > { %v1825_v19 = vadd.f32 %v1824_v18, %v1823_v14  ;;  %v1936_v20 = vpop.f32.mrb[55].mxu1  ;;  %v2148_v21 = vpop.eup %2147 }
 0x168   : > { %v1276_v22 = vadd.f32 %v1934_v16, %v1822_v12  ;;  %v1937_v23 = vadd.f32 %v1936_v20, %v1935_v17  ;;  %1490 = vst [vmem:[%s2412_s20 + $0xb0] sm:$0xff] %v2148_v21  ;;  %v2150_v24 = vpop.eup %2149 }
 0x169   : > { %1491 = vst [vmem:[%s2412_s20 + $0xb8] sm:$0xff] %v2150_v24 }
 0x16a   : > { %v1279_v25 = vadd.f32 %v1937_v23, %v1825_v19  ;;  %v1430_v27 = vadd.f32 %v2403_v45, %v1276_v22 }
 0x16b   : > { %v1826_v26 = vpop.f32.mrb[56].mxu0 }
 0x16c   : > { %v1938_v28 = vpop.f32.mrb[56].mxu1  ;;  %v1827_v29 = vpop.f32.mrb[57].mxu0  ;;  %2155 = vtanh.f32 %v1430_v27  ;;  %v1431_v33 = vadd.f32 %v2403_v45, %v1279_v25 }
 0x16d   : > { %v1828_v30 = vadd.f32 %v1827_v29, %v1826_v26  ;;  %v1939_v31 = vpop.f32.mrb[57].mxu1  ;;  %v1829_v32 = vpop.f32.mrb[58].mxu0 }
 0x16e   : > { %v1940_v34 = vadd.f32 %v1939_v31, %v1938_v28  ;;  %v1941_v35 = vpop.f32.mrb[58].mxu1  ;;  %v1830_v36 = vpop.f32.mrb[59].mxu0  ;;  %2157 = vtanh.f32 %v1431_v33 }
 0x16f   : > { %v1831_v37 = vadd.f32 %v1830_v36, %v1829_v32  ;;  %v1942_v38 = vpop.f32.mrb[59].mxu1  ;;  %v2152_v39 = vpop.eup %2151 }
 0x170   : > { %v1284_v40 = vadd.f32 %v1940_v34, %v1828_v30  ;;  %v1943_v41 = vadd.f32 %v1942_v38, %v1941_v35  ;;  %1492 = vst [vmem:[%s2412_s20 + $0xc0] sm:$0xff] %v2152_v39  ;;  %v2154_v42 = vpop.eup %2153 }
 0x171   : > { %1493 = vst [vmem:[%s2412_s20 + $0xc8] sm:$0xff] %v2154_v42 }
 0x172   : > { %v1287_v43 = vadd.f32 %v1943_v41, %v1831_v37  ;;  %v1432_v46 = vadd.f32 %v2403_v45, %v1284_v40 }
 0x173   : > { %v1832_v44 = vpop.f32.mrb[60].mxu0 }
 0x174   : > { %v1944_v47 = vpop.f32.mrb[60].mxu1  ;;  %v1833_v48 = vpop.f32.mrb[61].mxu0  ;;  %2159 = vtanh.f32 %v1432_v46  ;;  %v1433_v52 = vadd.f32 %v2403_v45, %v1287_v43 }
 0x175   : > { %v1834_v49 = vadd.f32 %v1833_v48, %v1832_v44  ;;  %v1945_v50 = vpop.f32.mrb[61].mxu1  ;;  %v1835_v51 = vpop.f32.mrb[62].mxu0 }
 0x176   : > { %v1946_v53 = vadd.f32 %v1945_v50, %v1944_v47  ;;  %v1947_v54 = vpop.f32.mrb[62].mxu1  ;;  %v1836_v55 = vpop.f32.mrb[63].mxu0  ;;  %2161 = vtanh.f32 %v1433_v52 }
 0x177   : > { %v1837_v56 = vadd.f32 %v1836_v55, %v1835_v51  ;;  %v1948_v57 = vpop.f32.mrb[63].mxu1  ;;  %v2156_v58 = vpop.eup %2155 }
 0x178   : > { %v1292_v59 = vadd.f32 %v1946_v53, %v1834_v49  ;;  %v1949_v60 = vadd.f32 %v1948_v57, %v1947_v54  ;;  %1494 = vst [vmem:[%s2412_s20 + $0xd0] sm:$0xff] %v2156_v58  ;;  %v2158_v61 = vpop.eup %2157 }
 0x179   : > { %1495 = vst [vmem:[%s2412_s20 + $0xd8] sm:$0xff] %v2158_v61 }
 0x17a   : > { %v1295_v62 = vadd.f32 %v1949_v60, %v1837_v56  ;;  %v1434_v63 = vadd.f32 %v2403_v45, %v1292_v59 }
 0x17c   : > { %2163 = vtanh.f32 %v1434_v63  ;;  %v1435_v0 = vadd.f32 %v2403_v45, %v1295_v62 }
 0x17e   : > { %v2160_v1 = vpop.eup %2159  ;;  %2165 = vtanh.f32 %v1435_v0 }
 0x17f   : > { %1496 = vst [vmem:[%s2412_s20 + $0xe0] sm:$0xff] %v2160_v1 }
 0x180   : > { %v2162_v2 = vpop.eup %2161 }
 0x181   : > { %1497 = vst [vmem:[%s2412_s20 + $0xe8] sm:$0xff] %v2162_v2 }
 0x186   : > { %v2164_v3 = vpop.eup %2163 }
 0x187   : > { %1498 = vst [vmem:[%s2412_s20 + $0xf0] sm:$0xff] %v2164_v3 }
 0x188   : > { %v2166_v4 = vpop.eup %2165 }
 0x189   : > { %1499 = vst [vmem:[%s2412_s20 + $0xf8] sm:$0xff] %v2166_v4 }
 0x18a PF: > { %s13_s14 = sadd.s32 1, %s2189_s14   ;;  %s2488_s12 = smov %s2185_s13 }
 0x18b   : > { %p10_p5 = scmp.ge.s32.totalorder %s13_s14, 4   ;;  %s2489_s13 = smov %s2491_s15 }
 0x18d   :  { %12 = sbr.rel (!%p10_p5) target bundleno = 2 (0x2), region = 76 }

</bundles_post_ra>
